<compile_context>
chip_gen: v7x
topology: tpu7x:2x2x1
jax: 0.10.0
libtpu: 0.0.40
codegen_flags: <defaults>
</compile_context>

<pallas_src>
import jax
import jax.numpy as jnp
from jax.experimental import pallas as pl
from jax.experimental.pallas import tpu as pltpu


def _round_up(x, m):
    return (x + m - 1) // m * m


def _pick_tile(dim, cap, align):
    """Return (tile, padded_dim): tile is a multiple of `align` and <= cap
    (or the whole padded dim when that is smaller); padded_dim % tile == 0."""
    dp = _round_up(dim, align)
    t = min(cap, dp)
    t = (t // align) * align
    dp = _round_up(dp, t)
    return t, dp


# ----------------------------------------------------------------------------
# Tiled GEMM (+bias) kernel  — used for the 1x1 projection conv
# ----------------------------------------------------------------------------
def _gemm_bias_kernel(a_ref, w_ref, b_ref, o_ref):
    """o[i,j] = sum_k a[i,k] @ w[k,j] + b[j].  K is the last ('arbitrary') grid
    axis; the f32 output block is resident across K and accumulated directly
    (no separate VMEM accumulator scratch)."""
    @pl.when(pl.program_id(2) == 0)
    def _init():
        o_ref[...] = jnp.zeros_like(o_ref)

    o_ref[...] += jnp.dot(a_ref[...], w_ref[...],
                          preferred_element_type=jnp.float32)

    @pl.when(pl.program_id(2) == pl.num_programs(2) - 1)
    def _finalize():
        o_ref[...] += b_ref[...].astype(jnp.float32)


def pallas_matmul_bias(a, w_p, b_p, tm_cap=256):
    """a: (M, Kp) float; w_p: (Kp, Np) bf16 (pre-padded); b_p: (1, Np) f32.
    Returns (M, Np) f32.  bf16 MXU operands, M/N grid axes parallel."""
    M, Kp = a.shape
    Kp2, Np = w_p.shape
    assert Kp == Kp2
    tm, Mp = _pick_tile(M, tm_cap, 8)
    tn = 256 if Np % 256 == 0 else 128
    tk = 512 if Kp % 512 == 0 else (256 if Kp % 256 == 0 else 128)
    a_p = jnp.pad(a.astype(jnp.float32), ((0, Mp - M), (0, 0))).astype(jnp.bfloat16)

    out = pl.pallas_call(
        _gemm_bias_kernel,
        out_shape=jax.ShapeDtypeStruct((Mp, Np), jnp.float32),
        grid_spec=pltpu.PrefetchScalarGridSpec(
            num_scalar_prefetch=0,
            grid=(Mp // tm, Np // tn, Kp // tk),
            in_specs=[
                pl.BlockSpec((tm, tk), lambda i, j, k: (i, k)),
                pl.BlockSpec((tk, tn), lambda i, j, k: (k, j)),
                pl.BlockSpec((1, tn), lambda i, j, k: (0, j)),
            ],
            out_specs=pl.BlockSpec((tm, tn), lambda i, j, k: (i, j)),
        ),
        compiler_params=pltpu.CompilerParams(
            dimension_semantics=("parallel", "parallel", "arbitrary")),
    )(a_p, w_p, b_p)
    return out[:M, :]


def conv1x1_pallas(x_nhwc, w_p, b_p, stride, cout):
    """1x1 conv with stride and bias (residual projection).  No im2col needed:
    a strided spatial subsample feeds the tiled GEMM directly."""
    N, H, W, Cin = x_nhwc.shape
    xs = x_nhwc[:, ::stride, ::stride, :]
    _, Ho, Wo, _ = xs.shape
    M = N * Ho * Wo
    Cinp, _ = w_p.shape
    a = xs.reshape(M, Cin).astype(jnp.float32)
    a = jnp.pad(a, ((0, 0), (0, Cinp - Cin)))
    y = pallas_matmul_bias(a, w_p, b_p)               # (M, Coutp) f32
    return y[:, :cout].reshape(N, Ho, Wo, cout)


# ----------------------------------------------------------------------------
# Direct (im2col-free) 3x3 convolution kernel
# ----------------------------------------------------------------------------
def _make_conv3x3_kernel(kh, kw, stride, Ho, Wo8):
    def kernel(x_ref, w_ref, o_ref):
        # x_ref: (P, Hq, Wq, Cinp) bf16   (P = stride*stride parity planes)
        # w_ref: (kh*kw, Cinp, tn) bf16
        # o_ref: (Ho*Wo8, tn) f32
        acc = jnp.zeros(o_ref.shape, jnp.float32)
        for di in range(kh):
            for dj in range(kw):
                p = (di % stride) * stride + (dj % stride)
                hs, ws = di // stride, dj // stride
                a = x_ref[p, hs:hs + Ho, ws:ws + Wo8, :]
                a = a.reshape(Ho * Wo8, a.shape[-1])
                acc = acc + jnp.dot(a, w_ref[di * kw + dj],
                                    preferred_element_type=jnp.float32)
        o_ref[...] = acc
    return kernel


def conv3x3_pallas(x_nhwc, w_packed, stride, cout):
    """3x3 conv, padding=1, stride in {1,2}, NO bias (the consumer is a
    BatchNorm whose batch-mean subtraction cancels a channel bias exactly).

    The padded activation is rearranged into stride-parity planes so every tap
    becomes a unit-stride (Ho, Wo8) window — the 9x im2col HBM blow-up is gone;
    each grid step keeps one image's planes resident in VMEM."""
    N, H, W, Cin = x_nhwc.shape
    kh = kw = 3
    s = stride
    Ho = (H + 2 - kh) // s + 1
    Wo = (W + 2 - kw) // s + 1
    Wo8 = _round_up(Wo, 8)                     # keeps the in-kernel reshape layout-clean
    taps, Cinp, Coutp = w_packed.shape
    assert taps == kh * kw and Cinp >= Cin
    tn = 256 if Coutp % 256 == 0 else 128

    # zero-pad spatially by 1 and channels up to the packed lane width
    xp = jnp.pad(x_nhwc.astype(jnp.float32),
                 ((0, 0), (1, 1), (1, 1), (0, Cinp - Cin)))

    # parity planes: tap (di, dj) reads plane (di%s, dj%s) at offset (di//s, dj//s)
    Hq = Ho + (kh - 1) // s
    Wq = Wo8 + (kw - 1) // s
    planes = []
    for a in range(s):
        for b in range(s):
            pln = xp[:, a::s, b::s, :][:, :Hq, :Wq, :]
            pln = jnp.pad(pln, ((0, 0), (0, Hq - pln.shape[1]),
                                (0, Wq - pln.shape[2]), (0, 0)))
            planes.append(pln)
    x_planes = jnp.stack(planes, axis=1).astype(jnp.bfloat16)   # (N, P, Hq, Wq, Cinp)
    P = s * s

    kernel = _make_conv3x3_kernel(kh, kw, s, Ho, Wo8)
    y = pl.pallas_call(
        kernel,
        out_shape=jax.ShapeDtypeStruct((N, Ho * Wo8, Coutp), jnp.float32),
        grid_spec=pltpu.PrefetchScalarGridSpec(
            num_scalar_prefetch=0,
            grid=(N, Coutp // tn),
            in_specs=[
                pl.BlockSpec((None, P, Hq, Wq, Cinp), lambda n, j: (n, 0, 0, 0, 0)),
                pl.BlockSpec((kh * kw, Cinp, tn), lambda n, j: (0, 0, j)),
            ],
            out_specs=pl.BlockSpec((None, Ho * Wo8, tn), lambda n, j: (n, 0, j)),
        ),
        compiler_params=pltpu.CompilerParams(
            dimension_semantics=("parallel", "parallel")),
    )(x_planes, w_packed)

    y = y.reshape(N, Ho, Wo8, Coutp)[:, :, :Wo, :cout]
    return y                                           # (N, Ho, Wo, cout) f32


# ----------------------------------------------------------------------------
# Fused BatchNorm (training-mode batch statistics) + residual + ReLU
# ----------------------------------------------------------------------------
def _bn_stats_kernel(y_ref, sum_ref, sq_ref):
    @pl.when(pl.program_id(0) == 0)
    def _init():
        sum_ref[...] = jnp.zeros_like(sum_ref)
        sq_ref[...] = jnp.zeros_like(sq_ref)

    y = y_ref[...]
    sum_ref[...] += jnp.sum(y, axis=0, keepdims=True)
    sq_ref[...] += jnp.sum(y * y, axis=0, keepdims=True)


def _make_bn_apply_kernel(relu, has_res):
    def _apply(y, scale, shift, res):
        out = y * scale + shift
        if res is not None:
            out = out + res
        if relu:
            out = jnp.maximum(out, 0.0)
        return out

    if has_res:
        def kernel(y_ref, sc_ref, sh_ref, r_ref, o_ref):
            o_ref[...] = _apply(y_ref[...], sc_ref[...], sh_ref[...], r_ref[...])
    else:
        def kernel(y_ref, sc_ref, sh_ref, o_ref):
            o_ref[...] = _apply(y_ref[...], sc_ref[...], sh_ref[...], None)
    return kernel


def pallas_batchnorm_act(y, gamma, beta, residual=None, relu=True, eps=1e-5,
                         tm_cap=1024):
    """y: (M, C) rows (M = N*H*W).  BatchNorm with batch statistics per channel,
    fused with optional residual add and ReLU.  Two tiled passes over M keep
    VMEM residency bounded by the tile instead of the full activation."""
    # TODO(synk): running_mean/running_var buffer updates (training-side state of
    # nn.BatchNorm2d) are not tracked; forward uses batch statistics only.
    y = y.astype(jnp.float32)
    M, C = y.shape
    Cp = _round_up(C, 128)
    tm, Mp = _pick_tile(M, tm_cap, 8)
    y_p = jnp.pad(y, ((0, Mp - M), (0, Cp - C)))       # zero rows are stat-neutral

    # pass 1: per-channel sum / sum-of-squares (reduction over the M grid axis)
    sums, sqs = pl.pallas_call(
        _bn_stats_kernel,
        out_shape=(jax.ShapeDtypeStruct((1, Cp), jnp.float32),
                   jax.ShapeDtypeStruct((1, Cp), jnp.float32)),
        grid_spec=pltpu.PrefetchScalarGridSpec(
            num_scalar_prefetch=0,
            grid=(Mp // tm,),
            in_specs=[pl.BlockSpec((tm, Cp), lambda i: (i, 0))],
            out_specs=(pl.BlockSpec((1, Cp), lambda i: (0, 0)),
                       pl.BlockSpec((1, Cp), lambda i: (0, 0))),
        ),
        compiler_params=pltpu.CompilerParams(
            dimension_semantics=("arbitrary",)),
    )(y_p)

    # tiny per-channel math in plain JAX (biased variance, as PyTorch uses for
    # the normalization itself)
    mean = sums[:, :C] / M
    var = sqs[:, :C] / M - mean * mean
    scale = gamma.reshape(1, C).astype(jnp.float32) * jax.lax.rsqrt(var + eps)
    shift = beta.reshape(1, C).astype(jnp.float32) - mean * scale
    scale_p = jnp.pad(scale, ((0, 0), (0, Cp - C)))
    shift_p = jnp.pad(shift, ((0, 0), (0, Cp - C)))

    args = [y_p, scale_p, shift_p]
    in_specs = [pl.BlockSpec((tm, Cp), lambda i: (i, 0)),
                pl.BlockSpec((1, Cp), lambda i: (0, 0)),
                pl.BlockSpec((1, Cp), lambda i: (0, 0))]
    if residual is not None:
        r_p = jnp.pad(residual.astype(jnp.float32), ((0, Mp - M), (0, Cp - C)))
        args.append(r_p)
        in_specs.append(pl.BlockSpec((tm, Cp), lambda i: (i, 0)))

    # pass 2: fused scale/shift (+ residual) (+ ReLU), tiled & parallel over M
    out = pl.pallas_call(
        _make_bn_apply_kernel(relu, residual is not None),
        out_shape=jax.ShapeDtypeStruct((Mp, Cp), jnp.float32),
        grid_spec=pltpu.PrefetchScalarGridSpec(
            num_scalar_prefetch=0,
            grid=(Mp // tm,),
            in_specs=in_specs,
            out_specs=pl.BlockSpec((tm, Cp), lambda i: (i, 0)),
        ),
        compiler_params=pltpu.CompilerParams(
            dimension_semantics=("parallel",)),
    )(*args)
    return out[:M, :C]


# ----------------------------------------------------------------------------
# Parameters (PyTorch layout) + one-time packing (pad / transpose / bf16 cast)
# ----------------------------------------------------------------------------
def init_res_block_params(key, input_channels, num_channels, use_1x1conv, strides):
    ks = jax.random.split(key, 10)

    def conv_w(k, cout, cin, kh, kw):
        fan_in = cin * kh * kw
        return (jax.random.normal(k, (cout, cin, kh, kw), jnp.float32)
                / jnp.sqrt(jnp.float32(fan_in)))

    p = {
        "strides": strides, "use_1x1conv": use_1x1conv,
        "conv1_w": conv_w(ks[0], num_channels, input_channels, 3, 3),
        "conv1_b": 0.01 * jax.random.normal(ks[1], (num_channels,), jnp.float32),
        "conv2_w": conv_w(ks[2], num_channels, num_channels, 3, 3),
        "conv2_b": 0.01 * jax.random.normal(ks[3], (num_channels,), jnp.float32),
        "bn1_g": 1.0 + 0.1 * jax.random.normal(ks[4], (num_channels,), jnp.float32),
        "bn1_b": 0.1 * jax.random.normal(ks[5], (num_channels,), jnp.float32),
        "bn2_g": 1.0 + 0.1 * jax.random.normal(ks[6], (num_channels,), jnp.float32),
        "bn2_b": 0.1 * jax.random.normal(ks[7], (num_channels,), jnp.float32),
    }
    if use_1x1conv:
        p["conv3_w"] = conv_w(ks[8], num_channels, input_channels, 1, 1)
        p["conv3_b"] = 0.01 * jax.random.normal(ks[9], (num_channels,), jnp.float32)
    return p


def _pack_conv3x3_weight(w_oihw):
    cout, cin, kh, kw = w_oihw.shape
    cinp, coutp = _round_up(cin, 128), _round_up(cout, 128)
    w = jnp.transpose(w_oihw, (2, 3, 1, 0))                       # (kh, kw, Cin, Cout)
    w = jnp.pad(w, ((0, 0), (0, 0), (0, cinp - cin), (0, coutp - cout)))
    return w.reshape(kh * kw, cinp, coutp).astype(jnp.bfloat16)


def _pack_conv1x1(w_oihw, b):
    cout, cin = w_oihw.shape[0], w_oihw.shape[1]
    cinp, coutp = _round_up(cin, 128), _round_up(cout, 128)
    w = jnp.transpose(w_oihw.reshape(cout, cin), (1, 0))          # (Cin, Cout)
    w = jnp.pad(w, ((0, cinp - cin), (0, coutp - cout))).astype(jnp.bfloat16)
    b_p = jnp.pad(b.reshape(1, cout).astype(jnp.float32), ((0, 0), (0, coutp - cout)))
    return w, b_p


def pack_res_block_params(raw):
    """Pad/transpose/cast weights once so the per-call path does no weight prep.
    conv1_b / conv2_b are intentionally dropped: the following BatchNorm (batch
    statistics) subtracts the channel mean, cancelling those biases exactly."""
    packed = {
        "strides": raw["strides"], "use_1x1conv": raw["use_1x1conv"],
        "num_channels": raw["conv1_w"].shape[0],
        "w1": _pack_conv3x3_weight(raw["conv1_w"]),
        "w2": _pack_conv3x3_weight(raw["conv2_w"]),
        "bn1_g": raw["bn1_g"], "bn1_b": raw["bn1_b"],
        "bn2_g": raw["bn2_g"], "bn2_b": raw["bn2_b"],
    }
    if raw["use_1x1conv"]:
        packed["w3"], packed["b3"] = _pack_conv1x1(raw["conv3_w"], raw["conv3_b"])
    return packed


# ----------------------------------------------------------------------------
# Res_Block forward (NCHW in / NCHW out, NHWC internally)
# ----------------------------------------------------------------------------
def res_block_forward(x_nchw, p):
    x = jnp.transpose(x_nchw.astype(jnp.float32), (0, 2, 3, 1))   # NCHW -> NHWC
    s = p["strides"]
    c = p["num_channels"]

    y = conv3x3_pallas(x, p["w1"], s, c)                          # conv1
    N, Ho, Wo, _ = y.shape
    y = pallas_batchnorm_act(y.reshape(N * Ho * Wo, c),
                             p["bn1_g"], p["bn1_b"], relu=True)   # bn1 + relu
    y = conv3x3_pallas(y.reshape(N, Ho, Wo, c), p["w2"], 1, c)    # conv2
    y = y.reshape(N * Ho * Wo, c)

    if p["use_1x1conv"]:
        res = conv1x1_pallas(x, p["w3"], p["b3"], s, c).reshape(N * Ho * Wo, c)
    else:
        res = x.reshape(N * Ho * Wo, c)   # identity path (Cin == C, stride == 1)

    out = pallas_batchnorm_act(y, p["bn2_g"], p["bn2_b"],
                               residual=res, relu=True)           # bn2 + add + relu
    return jnp.transpose(out.reshape(N, Ho, Wo, c), (0, 3, 1, 2))  # back to NCHW


if __name__ == "__main__":
    key = jax.random.PRNGKey(0)
    kx, k1, k2 = jax.random.split(key, 3)
    x = jax.random.normal(kx, (2, 4, 16, 16), jnp.float32)        # NCHW

    # identity-residual block: Res_Block(4, 4)
    p1 = pack_res_block_params(
        init_res_block_params(k1, 4, 4, use_1x1conv=False, strides=1))
    y1 = jax.block_until_ready(res_block_forward(x, p1))
    assert y1.shape == (2, 4, 16, 16), y1.shape
    assert bool(jnp.all(jnp.isfinite(y1)))
    assert bool(jnp.all(y1 >= 0.0))

    # projection block: Res_Block(4, 8, use_1x1conv=True, strides=2)
    p2 = pack_res_block_params(
        init_res_block_params(k2, 4, 8, use_1x1conv=True, strides=2))
    y2 = jax.block_until_ready(res_block_forward(x, p2))
    assert y2.shape == (2, 8, 8, 8), y2.shape
    assert bool(jnp.all(jnp.isfinite(y2)))
    assert bool(jnp.all(y2 >= 0.0))

    print("KERNEL_OK")
</pallas_src>

<mosaic_0001>
module attributes {stable_mosaic.version = 11 : i64} {
  func.func @kernel(%arg0: i32, %arg1: i32, %arg2: memref<1x1x18x18x128xbf16, #tpu.memory_space<vmem>>, %arg3: memref<9x128x128xbf16, #tpu.memory_space<vmem>>, %arg4: memref<1x256x128xf32, #tpu.memory_space<vmem>>) attributes {dimension_semantics = [#tpu.dimension_semantics<parallel>, #tpu.dimension_semantics<parallel>], iteration_bounds = array<i64: 2, 1>, scalar_prefetch = 0 : i64, scratch_operands = 0 : i64, tpu.core_type = #tpu.core_type<tc>, window_params = [{transform_indices = @transform_0, window_bounds = array<i64: 1, 1, 18, 18, 128>}, {transform_indices = @transform_1, window_bounds = array<i64: 9, 128, 128>}, {transform_indices = @transform_2, window_bounds = array<i64: 1, 256, 128>}]} {
    %cst = arith.constant 0.000000e+00 : f32
    %0 = vector.broadcast %cst : f32 to vector<256x128xf32>
    %c0 = arith.constant 0 : index
    %c0_0 = arith.constant 0 : index
    %c0_1 = arith.constant 0 : index
    %c0_2 = arith.constant 0 : index
    %c0_3 = arith.constant 0 : index
    %1 = vector.load %arg2[%c0, %c0_0, %c0_1, %c0_2, %c0_3] : memref<1x1x18x18x128xbf16, #tpu.memory_space<vmem>>, vector<1x1x16x16x128xbf16>
    %2 = vector.shape_cast %1 : vector<1x1x16x16x128xbf16> to vector<16x16x128xbf16>
    %3 = vector.shape_cast %2 : vector<16x16x128xbf16> to vector<256x128xbf16>
    %c0_4 = arith.constant 0 : index
    %c0_5 = arith.constant 0 : index
    %c0_6 = arith.constant 0 : index
    %4 = vector.load %arg3[%c0_4, %c0_5, %c0_6] : memref<9x128x128xbf16, #tpu.memory_space<vmem>>, vector<1x128x128xbf16>
    %5 = vector.shape_cast %4 : vector<1x128x128xbf16> to vector<128x128xbf16>
    %cst_7 = arith.constant dense<0.000000e+00> : vector<256x128xf32>
    %6 = tpu.matmul %3, %5, %cst_7 {dimension_numbers = #tpu.dot_dimension_numbers<[1], [0], [0], [1], [0, 0, 1, 1], [], []>} : vector<256x128xbf16>, vector<128x128xbf16>, vector<256x128xf32> -> vector<256x128xf32>
    %7 = arith.addf %0, %6 : vector<256x128xf32>
    %c0_8 = arith.constant 0 : index
    %c0_9 = arith.constant 0 : index
    %c0_10 = arith.constant 0 : index
    %c1 = arith.constant 1 : index
    %c0_11 = arith.constant 0 : index
    %8 = vector.load %arg2[%c0_8, %c0_9, %c0_10, %c1, %c0_11] : memref<1x1x18x18x128xbf16, #tpu.memory_space<vmem>>, vector<1x1x16x16x128xbf16>
    %9 = vector.shape_cast %8 : vector<1x1x16x16x128xbf16> to vector<16x16x128xbf16>
    %10 = vector.shape_cast %9 : vector<16x16x128xbf16> to vector<256x128xbf16>
    %c1_12 = arith.constant 1 : index
    %c0_13 = arith.constant 0 : index
    %c0_14 = arith.constant 0 : index
    %11 = vector.load %arg3[%c1_12, %c0_13, %c0_14] : memref<9x128x128xbf16, #tpu.memory_space<vmem>>, vector<1x128x128xbf16>
    %12 = vector.shape_cast %11 : vector<1x128x128xbf16> to vector<128x128xbf16>
    %cst_15 = arith.constant dense<0.000000e+00> : vector<256x128xf32>
    %13 = tpu.matmul %10, %12, %cst_15 {dimension_numbers = #tpu.dot_dimension_numbers<[1], [0], [0], [1], [0, 0, 1, 1], [], []>} : vector<256x128xbf16>, vector<128x128xbf16>, vector<256x128xf32> -> vector<256x128xf32>
    %14 = arith.addf %7, %13 : vector<256x128xf32>
    %c0_16 = arith.constant 0 : index
    %c0_17 = arith.constant 0 : index
    %c0_18 = arith.constant 0 : index
    %c2 = arith.constant 2 : index
    %c0_19 = arith.constant 0 : index
    %15 = vector.load %arg2[%c0_16, %c0_17, %c0_18, %c2, %c0_19] : memref<1x1x18x18x128xbf16, #tpu.memory_space<vmem>>, vector<1x1x16x16x128xbf16>
    %16 = vector.shape_cast %15 : vector<1x1x16x16x128xbf16> to vector<16x16x128xbf16>
    %17 = vector.shape_cast %16 : vector<16x16x128xbf16> to vector<256x128xbf16>
    %c2_20 = arith.constant 2 : index
    %c0_21 = arith.constant 0 : index
    %c0_22 = arith.constant 0 : index
    %18 = vector.load %arg3[%c2_20, %c0_21, %c0_22] : memref<9x128x128xbf16, #tpu.memory_space<vmem>>, vector<1x128x128xbf16>
    %19 = vector.shape_cast %18 : vector<1x128x128xbf16> to vector<128x128xbf16>
    %cst_23 = arith.constant dense<0.000000e+00> : vector<256x128xf32>
    %20 = tpu.matmul %17, %19, %cst_23 {dimension_numbers = #tpu.dot_dimension_numbers<[1], [0], [0], [1], [0, 0, 1, 1], [], []>} : vector<256x128xbf16>, vector<128x128xbf16>, vector<256x128xf32> -> vector<256x128xf32>
    %21 = arith.addf %14, %20 : vector<256x128xf32>
    %c0_24 = arith.constant 0 : index
    %c0_25 = arith.constant 0 : index
    %c1_26 = arith.constant 1 : index
    %c0_27 = arith.constant 0 : index
    %c0_28 = arith.constant 0 : index
    %22 = vector.load %arg2[%c0_24, %c0_25, %c1_26, %c0_27, %c0_28] : memref<1x1x18x18x128xbf16, #tpu.memory_space<vmem>>, vector<1x1x16x16x128xbf16>
    %23 = vector.shape_cast %22 : vector<1x1x16x16x128xbf16> to vector<16x16x128xbf16>
    %24 = vector.shape_cast %23 : vector<16x16x128xbf16> to vector<256x128xbf16>
    %c3 = arith.constant 3 : index
    %c0_29 = arith.constant 0 : index
    %c0_30 = arith.constant 0 : index
    %25 = vector.load %arg3[%c3, %c0_29, %c0_30] : memref<9x128x128xbf16, #tpu.memory_space<vmem>>, vector<1x128x128xbf16>
    %26 = vector.shape_cast %25 : vector<1x128x128xbf16> to vector<128x128xbf16>
    %cst_31 = arith.constant dense<0.000000e+00> : vector<256x128xf32>
    %27 = tpu.matmul %24, %26, %cst_31 {dimension_numbers = #tpu.dot_dimension_numbers<[1], [0], [0], [1], [0, 0, 1, 1], [], []>} : vector<256x128xbf16>, vector<128x128xbf16>, vector<256x128xf32> -> vector<256x128xf32>
    %28 = arith.addf %21, %27 : vector<256x128xf32>
    %c0_32 = arith.constant 0 : index
    %c0_33 = arith.constant 0 : index
    %c1_34 = arith.constant 1 : index
    %c1_35 = arith.constant 1 : index
    %c0_36 = arith.constant 0 : index
    %29 = vector.load %arg2[%c0_32, %c0_33, %c1_34, %c1_35, %c0_36] : memref<1x1x18x18x128xbf16, #tpu.memory_space<vmem>>, vector<1x1x16x16x128xbf16>
    %30 = vector.shape_cast %29 : vector<1x1x16x16x128xbf16> to vector<16x16x128xbf16>
    %31 = vector.shape_cast %30 : vector<16x16x128xbf16> to vector<256x128xbf16>
    %c4 = arith.constant 4 : index
    %c0_37 = arith.constant 0 : index
    %c0_38 = arith.constant 0 : index
    %32 = vector.load %arg3[%c4, %c0_37, %c0_38] : memref<9x128x128xbf16, #tpu.memory_space<vmem>>, vector<1x128x128xbf16>
    %33 = vector.shape_cast %32 : vector<1x128x128xbf16> to vector<128x128xbf16>
    %cst_39 = arith.constant dense<0.000000e+00> : vector<256x128xf32>
    %34 = tpu.matmul %31, %33, %cst_39 {dimension_numbers = #tpu.dot_dimension_numbers<[1], [0], [0], [1], [0, 0, 1, 1], [], []>} : vector<256x128xbf16>, vector<128x128xbf16>, vector<256x128xf32> -> vector<256x128xf32>
    %35 = arith.addf %28, %34 : vector<256x128xf32>
    %c0_40 = arith.constant 0 : index
    %c0_41 = arith.constant 0 : index
    %c1_42 = arith.constant 1 : index
    %c2_43 = arith.constant 2 : index
    %c0_44 = arith.constant 0 : index
    %36 = vector.load %arg2[%c0_40, %c0_41, %c1_42, %c2_43, %c0_44] : memref<1x1x18x18x128xbf16, #tpu.memory_space<vmem>>, vector<1x1x16x16x128xbf16>
    %37 = vector.shape_cast %36 : vector<1x1x16x16x128xbf16> to vector<16x16x128xbf16>
    %38 = vector.shape_cast %37 : vector<16x16x128xbf16> to vector<256x128xbf16>
    %c5 = arith.constant 5 : index
    %c0_45 = arith.constant 0 : index
    %c0_46 = arith.constant 0 : index
    %39 = vector.load %arg3[%c5, %c0_45, %c0_46] : memref<9x128x128xbf16, #tpu.memory_space<vmem>>, vector<1x128x128xbf16>
    %40 = vector.shape_cast %39 : vector<1x128x128xbf16> to vector<128x128xbf16>
    %cst_47 = arith.constant dense<0.000000e+00> : vector<256x128xf32>
    %41 = tpu.matmul %38, %40, %cst_47 {dimension_numbers = #tpu.dot_dimension_numbers<[1], [0], [0], [1], [0, 0, 1, 1], [], []>} : vector<256x128xbf16>, vector<128x128xbf16>, vector<256x128xf32> -> vector<256x128xf32>
    %42 = arith.addf %35, %41 : vector<256x128xf32>
    %c0_48 = arith.constant 0 : index
    %c0_49 = arith.constant 0 : index
    %c2_50 = arith.constant 2 : index
    %c0_51 = arith.constant 0 : index
    %c0_52 = arith.constant 0 : index
    %43 = vector.load %arg2[%c0_48, %c0_49, %c2_50, %c0_51, %c0_52] : memref<1x1x18x18x128xbf16, #tpu.memory_space<vmem>>, vector<1x1x16x16x128xbf16>
    %44 = vector.shape_cast %43 : vector<1x1x16x16x128xbf16> to vector<16x16x128xbf16>
    %45 = vector.shape_cast %44 : vector<16x16x128xbf16> to vector<256x128xbf16>
    %c6 = arith.constant 6 : index
    %c0_53 = arith.constant 0 : index
    %c0_54 = arith.constant 0 : index
    %46 = vector.load %arg3[%c6, %c0_53, %c0_54] : memref<9x128x128xbf16, #tpu.memory_space<vmem>>, vector<1x128x128xbf16>
    %47 = vector.shape_cast %46 : vector<1x128x128xbf16> to vector<128x128xbf16>
    %cst_55 = arith.constant dense<0.000000e+00> : vector<256x128xf32>
    %48 = tpu.matmul %45, %47, %cst_55 {dimension_numbers = #tpu.dot_dimension_numbers<[1], [0], [0], [1], [0, 0, 1, 1], [], []>} : vector<256x128xbf16>, vector<128x128xbf16>, vector<256x128xf32> -> vector<256x128xf32>
    %49 = arith.addf %42, %48 : vector<256x128xf32>
    %c0_56 = arith.constant 0 : index
    %c0_57 = arith.constant 0 : index
    %c2_58 = arith.constant 2 : index
    %c1_59 = arith.constant 1 : index
    %c0_60 = arith.constant 0 : index
    %50 = vector.load %arg2[%c0_56, %c0_57, %c2_58, %c1_59, %c0_60] : memref<1x1x18x18x128xbf16, #tpu.memory_space<vmem>>, vector<1x1x16x16x128xbf16>
    %51 = vector.shape_cast %50 : vector<1x1x16x16x128xbf16> to vector<16x16x128xbf16>
    %52 = vector.shape_cast %51 : vector<16x16x128xbf16> to vector<256x128xbf16>
    %c7 = arith.constant 7 : index
    %c0_61 = arith.constant 0 : index
    %c0_62 = arith.constant 0 : index
    %53 = vector.load %arg3[%c7, %c0_61, %c0_62] : memref<9x128x128xbf16, #tpu.memory_space<vmem>>, vector<1x128x128xbf16>
    %54 = vector.shape_cast %53 : vector<1x128x128xbf16> to vector<128x128xbf16>
    %cst_63 = arith.constant dense<0.000000e+00> : vector<256x128xf32>
    %55 = tpu.matmul %52, %54, %cst_63 {dimension_numbers = #tpu.dot_dimension_numbers<[1], [0], [0], [1], [0, 0, 1, 1], [], []>} : vector<256x128xbf16>, vector<128x128xbf16>, vector<256x128xf32> -> vector<256x128xf32>
    %56 = arith.addf %49, %55 : vector<256x128xf32>
    %c0_64 = arith.constant 0 : index
    %c0_65 = arith.constant 0 : index
    %c2_66 = arith.constant 2 : index
    %c2_67 = arith.constant 2 : index
    %c0_68 = arith.constant 0 : index
    %57 = vector.load %arg2[%c0_64, %c0_65, %c2_66, %c2_67, %c0_68] : memref<1x1x18x18x128xbf16, #tpu.memory_space<vmem>>, vector<1x1x16x16x128xbf16>
    %58 = vector.shape_cast %57 : vector<1x1x16x16x128xbf16> to vector<16x16x128xbf16>
    %59 = vector.shape_cast %58 : vector<16x16x128xbf16> to vector<256x128xbf16>
    %c8 = arith.constant 8 : index
    %c0_69 = arith.constant 0 : index
    %c0_70 = arith.constant 0 : index
    %60 = vector.load %arg3[%c8, %c0_69, %c0_70] : memref<9x128x128xbf16, #tpu.memory_space<vmem>>, vector<1x128x128xbf16>
    %61 = vector.shape_cast %60 : vector<1x128x128xbf16> to vector<128x128xbf16>
    %cst_71 = arith.constant dense<0.000000e+00> : vector<256x128xf32>
    %62 = tpu.matmul %59, %61, %cst_71 {dimension_numbers = #tpu.dot_dimension_numbers<[1], [0], [0], [1], [0, 0, 1, 1], [], []>} : vector<256x128xbf16>, vector<128x128xbf16>, vector<256x128xf32> -> vector<256x128xf32>
    %63 = arith.addf %56, %62 : vector<256x128xf32>
    %c0_72 = arith.constant 0 : index
    %c0_73 = arith.constant 0 : index
    %c0_74 = arith.constant 0 : index
    %64 = vector.load %arg4[%c0_72, %c0_73, %c0_74] : memref<1x256x128xf32, #tpu.memory_space<vmem>>, vector<1x256x128xf32>
    %65 = vector.shape_cast %64 : vector<1x256x128xf32> to vector<256x128xf32>
    %66 = vector.shape_cast %63 : vector<256x128xf32> to vector<1x256x128xf32>
    tpu.vector_store %arg4[%c0_72, %c0_73, %c0_74], %66 {strides = array<i32>} : memref<1x256x128xf32, #tpu.memory_space<vmem>>, vector<1x256x128xf32>,
    return
  }
  func.func @transform_0(%arg0: i32, %arg1: i32) -> (i32, i32, i32, i32, i32) {
    %c0_i32 = arith.constant 0 : i32
    %c0_i32_0 = arith.constant 0 : i32
    %c0_i32_1 = arith.constant 0 : i32
    %c0_i32_2 = arith.constant 0 : i32
    %c0_i32_3 = arith.constant 0 : i32
    return %arg0, %c0_i32, %c0_i32_0, %c0_i32_1, %c0_i32_2 : i32, i32, i32, i32, i32
  }
  func.func @transform_1(%arg0: i32, %arg1: i32) -> (i32, i32, i32) {
    %c0_i32 = arith.constant 0 : i32
    %c0_i32_0 = arith.constant 0 : i32
    %c0_i32_1 = arith.constant 0 : i32
    return %c0_i32, %c0_i32_0, %arg1 : i32, i32, i32
  }
  func.func @transform_2(%arg0: i32, %arg1: i32) -> (i32, i32, i32) {
    %c0_i32 = arith.constant 0 : i32
    %c0_i32_0 = arith.constant 0 : i32
    return %arg0, %c0_i32, %arg1 : i32, i32, i32
  }
}

</mosaic_0001>

<bundles_post_ra>
// kernel: tpu_custom_call.1
= control target key start
LH: loop header
LB: loop body
LE: loop exit
PB: predicated region body
PF: predicated region fallthrough
CT: control target
= control target key end

     0   :  { %7 = vsyncpa [#allocation3], 0  ;;  %s8893_s0 = inlined_call_operand.vmem [shape: bf16[2,1,18,18,128], index: 0, kind: input, shape index: {}]   ;;  %s8894_s1 = inlined_call_operand.vmem [shape: bf16[9,128,128], index: 1, kind: input, shape index: {}]   ;;  %s8895_s2 = inlined_call_operand.hbm [shape: f32[2,256,128], index: 2, kind: output, shape index: {}]  }
   0x1   :  { %9 = vsyncpa [#allocation3 + $0x1], 0  ;;  %s6981_s9 = smov 0   ;;  %s6983_s10 = smov 0  }
   0x2   :  { %s6985_s11 = smov 0   ;;  %s6987_s12 = smov 0  }
   0x3   :  { %s6989_s13 = smov 0   ;;  %s6991_s14 = smov 0  }
   0x4 LB: > { %s5117_s15 = sadd.s32 4294967295, %s6961_s14   ;;  %s5118_s16 = sadd.s32 4294967294, %s6961_s14   ;;  %s6961_s14 = sphi %s6991_s14, %s15_s14   ;;  %s6957_s13 = sphi %s6989_s13, %s8968_s13   ;;  %s6953_s12 = sphi %s6987_s12, %s8967_s12   ;;  %s6949_s11 = sphi %s6985_s11, %s8966_s11   ;;  %s6945_s10 = sphi %s6983_s10, %s8965_s10   ;;  %s6941_s9 = sphi %s6981_s9, %s8964_s9  }
   0x5   : > { %s27_s17 = sadd.s32 1, %s6957_s13  ;;  %s88_s18 = sadd.s32 1, %s6949_s11 }
   0x6   : > { %p29_p0 = scmp.ge.s32.totalorder %s27_s17, 2  ;;  %p98_p1 = scmp.ne.s32.totalorder %s6949_s11, %s6945_s10 }
   0x7   : > { %p99_p2 = scmp.eq.s32.totalorder %s5117_s15, 1  ;;  %p104_p3 = scmp.ne.s32.totalorder %s6945_s10, %s6941_s9 }
   0x8   : > { %s8970_s17 = smov (%p29_p0, %s27_s17), 0  ;;  %p105_p5 = scmp.eq.s32.totalorder %s5118_s16, 1 }
   0x9   : > { %p7021_p4 = por %p99_p2, %p98_p1  ;;  %s83_s20 = ssub.s32 %s6957_s13, %s8970_s17 }
   0xa   : > { %p5122_p6 = scmp.ge.s32.totalorder %s6961_s14, 1  ;;  %p86_p7 = scmp.eq.s32.totalorder %s83_s20, 0 }
   0xb   : > { %p7028_p8 = por %p105_p5, %p104_p3  ;;  %p138_p9 = scmp.lt.s32.totalorder %s6961_s14, 3 }
   0xc   : > { %s7034_s22 = scalar_select %p86_p7, %s6949_s11, %s88_s18  }
   0xd   : > { %p139_p10 = pnand %p5122_p6, %p138_p9 }
   0xf   : > { %142 = sbr.rel (%p139_p10) target bundleno = 607 (0x25f), region = 28 }
  0x16   : > { %v6693_v0 = vld [vmem:[%s8894_s1 + $0x40] sm:$0xff]   ;;  %p164_p11 = scmp.lt.s32.totalorder %s6953_s12, 1  ;;  %v6695_v2 = vld [vmem:[%s8894_s1 + $0x48] sm:$0xff]   ;;  %v6697_v4 = vld [vmem:[%s8894_s1 + $0x50] sm:$0xff]   ;;  %vm238_vm0 = vsmask.f32 3328 }
  0x17   : > { %v6694_v1 = vld [vmem:[%s8894_s1 + $0x100] sm:$0xff]   ;;  %5931 = vmatprep.subr.bf16.mxu1 %v6693_v0  ;;  %v6696_v3 = vld [vmem:[%s8894_s1 + $0x108] sm:$0xff]   ;;  %v6698_v5 = vld [vmem:[%s8894_s1 + $0x110] sm:$0xff]   ;;  %vm239_vm1 = vsmask.f32 7440  ;;  %vm1268_vm3 = vcmask 1042432  }
  0x18   : > { %6123 = vmatprep.subr.bf16.mxu0 %v6694_v1  ;;  %5932 = vmatpush3.bf16.msra.mxu1 %v6693_v0  ;;  %s165_s7 = scalar_select %p164_p11, %s6953_s12, 1  ;;  %v6699_v6 = vld [vmem:[%s8894_s1 + $0x58] sm:$0xff]   ;;  %v6701_v8 = vld [vmem:[%s8894_s1 + $0x60] sm:$0xff]   ;;  %v6703_v10 = vld [vmem:[%s8894_s1 + $0x68] sm:$0xff]   ;;  %vm1269_vm4 = vcmask 1046532  }
  0x19   : > { %6124 = vmatpush3.bf16.msra.mxu0 %v6694_v1  ;;  %5933 = vmatprep.subr.bf16.mxu1 %v6695_v2  ;;  %v6700_v7 = vld [vmem:[%s8894_s1 + $0x118] sm:$0xff]   ;;  %v6702_v9 = vld [vmem:[%s8894_s1 + $0x120] sm:$0xff]   ;;  %v6704_v11 = vld [vmem:[%s8894_s1 + $0x128] sm:$0xff]   ;;  %s5714_s8 = sshll.u32 %s6953_s12, 12  ;;  %s6963_s24 = smov [#allocation2]  }
  0x1a   : > { %6125 = vmatprep.subr.bf16.mxu0 %v6696_v3  ;;  %s6635_s20 = smul.u32 216, %s165_s7  ;;  %v6705_v25 = vld [vmem:[%s8894_s1 + $0x70] sm:$0xff]   ;;  %v6707_v36 = vld [vmem:[%s8894_s1 + $0x78] sm:$0xff]   ;;  %vm7103_vm2 = vmor %vm238_vm0, %vm239_vm1  ;;  %s6887_s25 = sshll.u32 %s6963_s24, 4  ;;  %s6888_s25 = int_to_ptr.vmem [resolvable:$false] %s6887_s25 }
  0x1b   : > { %v6706_v30 = vld [vmem:[%s8894_s1 + $0x130] sm:$0xff]   ;;  %v6708_v51 = vld [vmem:[%s8894_s1 + $0x138] sm:$0xff]   ;;  %vm7349_vm5 = vmor %vm1268_vm3, %vm1269_vm4  ;;  %s6889_s26 = scalar_lea.vmem %s6888_s25, 8192 }
  0x1c   : > { %5934 = vmatpush3.bf16.msra.mxu1 %v6695_v2  ;;  %s7071_s29 = scalar_lea.vmem %s8893_s0, %s6635_s20  ;;  %s8838_s20 = scalar_lea.hbm %s8895_s2, %s5714_s8 }
  0x1d   : > { %6126 = vmatpush3.bf16.msra.mxu0 %v6696_v3  ;;  %5935 = vmatprep.subr.bf16.mxu1 %v6697_v4  ;;  %v174_v12 = vld [vmem:[%s7071_s29] sm:$0xf]  ;;  %v175_v13 = vld [vmem:[%s7071_s29 + $0x4] sm:$0xf]  ;;  %v222_v14 = vld [vmem:[%s7071_s29 + $0x8] sm:$0x1] }
  0x1e   : > { %6127 = vmatprep.subr.bf16.mxu0 %v6698_v5  ;;  %v242_v15 = vshrl.u32 %v174_v12, 16  ;;  %v245_v16 = vshll.u32 %v174_v12, 16  ;;  %v251_v17 = vshll.u32 %v175_v13, 16  ;;  %v255_v18 = vshrl.u32 %v175_v13, 16  ;;  %v5317_v20 = vld [vmem:[%s7071_s29 + $0xc] sm:$0xf] }
  0x1f   : > { %v261_v19 = vshll.u32 %v222_v14, 16  ;;  %v7084_v23 = vld [vmem:[%s7071_s29 + $0x10] sm:$0xf]  ;;  %v7087_v24 = vld [vmem:[%s7071_s29 + $0x14] sm:$0x1]  ;;  %v2141_v29 = vshrl.u32 %v5317_v20, 16 }
  0x20   : > { %5936 = vmatpush3.bf16.msra.mxu1 %v6697_v4  ;;  %v244_v21 = vrot.slane %v242_v15, 4  ;;  %v247_v22 = vrot.slane %v245_v16, 5  ;;  %v253_v26 = vrot.slane %v251_v17, 5  ;;  %v257_v27 = vrot.slane %v255_v18, 4  ;;  %v176_v35 = vld [vmem:[%s7071_s29 + $0xc] sm:$0xf] }
  0x21   : > { %6128 = vmatpush3.bf16.msra.mxu0 %v6698_v5  ;;  %5937 = vmatprep.subr.bf16.mxu1 %v6699_v6  ;;  %v263_v28 = vrot.slane %v261_v19, 5  ;;  %v2144_v32 = vshll.u32 %v5317_v20, 16  ;;  %v2150_v33 = vshll.u32 %v7084_v23, 16  ;;  %v2154_v34 = vshrl.u32 %v7084_v23, 16  ;;  %v177_v42 = vld [vmem:[%s7071_s29 + $0x10] sm:$0xf] }
  0x22   : > { %6129 = vmatprep.subr.bf16.mxu0 %v6700_v7  ;;  %v248_v31 = vor.u32 %v247_v22, %v244_v21  ;;  %v258_v38 = vor.u32 %v257_v27, %v253_v26  ;;  %v2143_v39 = vrot.slane %v2141_v29, 4  ;;  %v2160_v40 = vshll.u32 %v7087_v24, 16  ;;  %v223_v55 = vld [vmem:[%s7071_s29 + $0x14] sm:$0x1]  ;;  %v5320_v57 = vld [vmem:[%s7071_s29 + $0x18] sm:$0xf] }
  0x23   : > { %v2915_v41 = vrot.slane %v7087_v24, 5  ;;  %v2146_v44 = vrot.slane %v2144_v32, 5  ;;  %v2152_v45 = vrot.slane %v2150_v33, 5  ;;  %v2156_v46 = vrot.slane %v2154_v34, 4  ;;  %v7120_v62 = vld [vmem:[%s7071_s29 + $0x1c] sm:$0xf] }
  0x24   : > { %5938 = vmatpush3.bf16.msra.mxu1 %v6699_v6  ;;  %v249_v43 = vrot.slane %v248_v31, 4  ;;  %v259_v47 = vrot.slane %v258_v38, 4  ;;  %v2162_v48 = vrot.slane %v2160_v40, 5  ;;  %v266_v49 = vshrl.u32 %v176_v35, 16  ;;  %v6709_v3 = vld [vmem:[%s8894_s1] sm:$0xff]  }
  0x25   : > { %6130 = vmatpush3.bf16.msra.mxu0 %v6700_v7  ;;  %5939 = vmatprep.subr.bf16.mxu1 %v6701_v8  ;;  %v269_v50 = vshll.u32 %v176_v35, 16  ;;  %v2147_v53 = vor.u32 %v2146_v44, %v2143_v39  ;;  %v2157_v54 = vor.u32 %v2156_v46, %v2152_v45  ;;  %v275_v56 = vshll.u32 %v177_v42, 16  ;;  %v7128_v4 = vld [vmem:[%s8894_s1 + $0x140] sm:$0xff]   ;;  %v178_v21 = vld [vmem:[%s7071_s29 + $0x18] sm:$0xf]  ;;  %v6712_v46 = vld [vmem:[%s8894_s1 + $0x8] sm:$0xff]  }
  0x26   : > { %6131 = vmatprep.subr.bf16.mxu0 %v6702_v9  ;;  %v254_v52 = vsel %vm7103_vm2, %v249_v43, %v253_v26  ;;  %v264_v58 = vsel %vm7103_vm2, %v259_v47, %v263_v28  ;;  %v268_v59 = vrot.slane %v266_v49, 4  ;;  %v279_v61 = vshrl.u32 %v177_v42, 16  ;;  %v179_v28 = vld [vmem:[%s7071_s29 + $0x1c] sm:$0xf]  ;;  %v224_v33 = vld [vmem:[%s7071_s29 + $0x20] sm:$0x1] }
  0x27   : > { %v271_v60 = vrot.slane %v269_v50, 5  ;;  %v5141_v63 = vcombine.low %v254_v52, %v264_v58  ;;  %v2148_v0 = vrot.slane %v2147_v53, 4  ;;  %v2158_v1 = vrot.slane %v2157_v54, 4  ;;  %v5323_v39 = vld [vmem:[%s7071_s29 + $0x24] sm:$0xf] }
  0x28   : > { %5940 = vmatpush3.bf16.msra.mxu1 %v6701_v8  ;;  %v277_v2 = vrot.slane %v275_v56, 5  ;;  %v281_v6 = vrot.slane %v279_v61, 4  ;;  %v285_v7 = vshll.u32 %v223_v55, 16  ;;  %v7131_v8 = vld [vmem:[%s7071_s29 + $0x20] sm:$0x1]  ;;  %v2168_v12 = vshll.u32 %v5320_v57, 16 }
  0x29   : > { %6132 = vmatpush3.bf16.msra.mxu0 %v6702_v9  ;;  %5941 = vmatprep.subr.bf16.mxu1 %v6703_v10  ;;  %v272_v5 = vor.u32 %v271_v60, %v268_v59  ;;  %v2153_v9 = vsel %vm7103_vm2, %v2148_v0, %v2152_v45  ;;  %v2174_v19 = vshll.u32 %v7120_v62, 16  ;;  %v2178_v20 = vshrl.u32 %v7120_v62, 16  ;;  %v7156_v45 = vld [vmem:[%s7071_s29 + $0x28] sm:$0xf]  ;;  %v180_v52 = vld [vmem:[%s7071_s29 + $0x24] sm:$0xf] }
  0x2a   : > { %6133 = vmatprep.subr.bf16.mxu0 %v6704_v11  ;;  %5947 = vmatprep.mubr.bf16.mxu1 %v5141_v63  ;;  %v282_v15 = vor.u32 %v281_v6, %v277_v2  ;;  %v287_v16 = vrot.slane %v285_v7, 5  ;;  %v2170_v18 = vrot.slane %v2168_v12, 5  ;;  %v2184_v26 = vshll.u32 %v7131_v8, 16  ;;  %v6711_v63 = vld [vmem:[%s8894_s1 + $0x148] sm:$0xff]  }
  0x2b   : > { %v273_v14 = vrot.slane %v272_v5, 4  ;;  %v2919_v27 = vrot.slane %v7120_v62, 5  ;;  %v2180_v31 = vrot.slane %v2178_v20, 4  ;;  %v2922_v32 = vrot.slane %v7131_v8, 5  ;;  %v181_v5 = vld [vmem:[%s7071_s29 + $0x28] sm:$0xf] }
  0x2c   : > { %5942 = vmatpush3.bf16.msra.mxu1 %v6703_v10  ;;  %v2163_v10 = vsel %vm7103_vm2, %v2158_v1, %v2162_v48  ;;  %v2186_v35 = vrot.slane %v2184_v26, 5  ;;  %v290_v38 = vshrl.u32 %v178_v21, 16  ;;  %v293_v44 = vshll.u32 %v178_v21, 16 }
  0x2d   : > { %6134 = vmatpush3.bf16.msra.mxu0 %v6704_v11  ;;  %5943 = vmatprep.subr.bf16.mxu1 %v6705_v25  ;;  %v2165_v11 = vshrl.u32 %v5320_v57, 16  ;;  %v5381_v13 = vcombine.low %v2153_v9, %v2163_v10  ;;  %v278_v22 = vsel %vm7103_vm2, %v273_v14, %v277_v2  ;;  %v299_v48 = vshll.u32 %v179_v28, 16 }
  0x2e   : > { %6135 = vmatprep.subr.bf16.mxu0 %v6706_v30  ;;  %v292_v47 = vrot.slane %v290_v38, 4  ;;  %v303_v49 = vshrl.u32 %v179_v28, 16  ;;  %v309_v50 = vshll.u32 %v224_v33, 16  ;;  %v295_v55 = vrot.slane %v293_v44, 5  ;;  %v7187_v33 = vld [vmem:[%s7071_s29 + $0x34] sm:$0xf] }
  0x2f   : > { %v2167_v17 = vrot.slane %v2165_v11, 4  ;;  %6139 = vmatprep.mubr.bf16.mxu0 %v5381_v13  ;;  %v2189_v56 = vshrl.u32 %v5323_v39, 16  ;;  %v301_v57 = vrot.slane %v299_v48, 5  ;;  %v2192_v60 = vshll.u32 %v5323_v39, 16  ;;  %v225_v11 = vld [vmem:[%s7071_s29 + $0x2c] sm:$0x1] }
  0x30   : > { %5944 = vmatpush3.bf16.msra.mxu1 %v6705_v25  ;;  %v283_v25 = vrot.slane %v282_v15, 4  ;;  %v305_v58 = vrot.slane %v303_v49, 4  ;;  %v311_v59 = vrot.slane %v309_v50, 5  ;;  %v296_v0 = vor.u32 %v295_v55, %v292_v47  ;;  %v6714_v48 = vld [vmem:[%s8894_s1 + $0x158] sm:$0xff]  }
  0x31   : > { %6136 = vmatpush3.bf16.msra.mxu0 %v6706_v30  ;;  %5945 = vmatprep.subr.bf16.mxu1 %v6707_v36  ;;  %v2171_v29 = vor.u32 %v2170_v18, %v2167_v17  ;;  %v2176_v30 = vrot.slane %v2174_v19, 5  ;;  %v2191_v1 = vrot.slane %v2189_v56, 4  ;;  %v2198_v2 = vshll.u32 %v7156_v45, 16 }
  0x32   : > { %6137 = vmatprep.subr.bf16.mxu0 %v6708_v51  ;;  %v288_v34 = vsel %vm7103_vm2, %v283_v25, %v287_v16  ;;  %v306_v7 = vor.u32 %v305_v58, %v301_v57  ;;  %v2194_v9 = vrot.slane %v2192_v60, 5  ;;  %v2202_v10 = vshrl.u32 %v7156_v45, 16  ;;  %v5326_v16 = vld [vmem:[%s7071_s29 + $0x30] sm:$0xf]  ;;  %v6721_v60 = vld [vmem:[%s8894_s1 + $0x20] sm:$0xff]  }
  0x33   : > { %v5142_v40 = vcombine.low %v278_v22, %v288_v34  ;;  %v2172_v42 = vrot.slane %v2171_v29, 4  ;;  %v2181_v43 = vor.u32 %v2180_v31, %v2176_v30  ;;  %v297_v12 = vrot.slane %v296_v0, 4  ;;  %v6718_v34 = vld [vmem:[%s8894_s1 + $0x18] sm:$0xff]  }
  0x34   : > { %5946 = vmatpush3.bf16.msra.mxu1 %v6707_v36  ;;  %v7152_v36 = vrot.slane %v2919_v27, 4  ;;  %v2200_v13 = vrot.slane %v2198_v2, 5  ;;  %v314_v15 = vshrl.u32 %v180_v52, 16  ;;  %v307_v17 = vrot.slane %v306_v7, 4  ;;  %v226_v2 = vld [vmem:[%s7071_s29 + $0x38] sm:$0x1] }
  0x35   : > { %6138 = vmatpush3.bf16.msra.mxu0 %v6708_v51  ;;  %5979 = vmatprep.subr.bf16.mxu1 %v6709_v3  ;;  %v7162_v51 = vld [vmem:[%s7071_s29 + $0x2c] sm:$0x1]  ;;  %v2177_v53 = vsel %vm7103_vm2, %v2172_v42, %v2176_v30  ;;  %v2182_v54 = vrot.slane %v2181_v43, 4  ;;  %v2195_v18 = vor.u32 %v2194_v9, %v2191_v1  ;;  %v2204_v19 = vrot.slane %v2202_v10, 4  ;;  %v5329_v9 = vld [vmem:[%s7071_s29 + $0x3c] sm:$0xf] }
  0x36   : > { %6171 = vmatprep.subr.bf16.mxu0 %v7128_v4  ;;  %v2208_v14 = vshll.u32 %v7162_v51, 16  ;;  %v317_v20 = vshll.u32 %v180_v52, 16  ;;  %v302_v21 = vsel %vm7103_vm2, %v297_v12, %v301_v57  ;;  %v316_v25 = vrot.slane %v314_v15, 4 }
  0x37   : > { %5948 = vmatmul.mubr.bf16.vlgmr.msra.gmra.mrb[0].mxu1 %v5142_v40  ;;  %v2187_v61 = vsel %vm7103_vm2, %v2182_v54, %v2186_v35  ;;  %v323_v26 = vshll.u32 %v181_v5, 16  ;;  %v312_v28 = vsel %vm7103_vm2, %v307_v17, %v311_v59  ;;  %v2196_v29 = vrot.slane %v2195_v18, 4  ;;  %v182_v54 = vld [vmem:[%s7071_s29 + $0x30] sm:$0xf]  ;;  %v183_v59 = vld [vmem:[%s7071_s29 + $0x34] sm:$0xf] }
  0x38   : > { %5980 = vmatpush3.bf16.msra.mxu1 %v6709_v3  ;;  %v6715_v3 = vld [vmem:[%s8894_s1 + $0x10] sm:$0xff]   ;;  %v5382_v6 = vcombine.low %v2177_v53, %v2187_v61  ;;  %v2210_v22 = vrot.slane %v2208_v14, 5  ;;  %v2205_v30 = vor.u32 %v2204_v19, %v2200_v13  ;;  %v319_v31 = vrot.slane %v317_v20, 5  ;;  %v6723_v14 = vld [vmem:[%s8894_s1 + $0x28] sm:$0xff]   ;;  %v7221_v19 = vld [vmem:[%s7071_s29 + $0x40] sm:$0xf] }
  0x39   : > { %5981 = vmatprep.subr.bf16.mxu1 %v6712_v46  ;;  %v5143_v35 = vcombine.low %v302_v21, %v312_v28  ;;  %v325_v38 = vrot.slane %v323_v26, 5  ;;  %v327_v39 = vshrl.u32 %v181_v5, 16  ;;  %v333_v40 = vshll.u32 %v225_v11, 16  ;;  %v6716_v20 = vld [vmem:[%s8894_s1 + $0x160] sm:$0xff]  }
  0x3a   : > { %6140 = vmatmul.mubr.bf16.vlgmr.msra.gmra.mrb[0].mxu0 %v5382_v6  ;;  %v2201_v42 = vsel %vm7103_vm2, %v2196_v29, %v2200_v13  ;;  %v2206_v43 = vrot.slane %v2205_v30, 4  ;;  %v320_v44 = vor.u32 %v319_v31, %v316_v25  ;;  %v2213_v47 = vshrl.u32 %v5326_v16, 16  ;;  %v7229_v28 = vld [vmem:[%s7071_s29 + $0x44] sm:$0x1] }
  0x3b   : > { %6172 = vmatpush3.bf16.msra.mxu0 %v7128_v4  ;;  %v6713_v4 = vld [vmem:[%s8894_s1 + $0x150] sm:$0xff]   ;;  %5951 = vmatprep.mubr.bf16.mxu1 %v5143_v35  ;;  %v329_v49 = vrot.slane %v327_v39, 4  ;;  %v335_v50 = vrot.slane %v333_v40, 5  ;;  %v2216_v52 = vshll.u32 %v5326_v16, 16  ;;  %v2222_v53 = vshll.u32 %v7187_v33, 16 }
  0x3c   : > { %5982 = vmatpush3.bf16.msra.mxu1 %v6712_v46  ;;  %6173 = vmatprep.subr.bf16.mxu0 %v6711_v63  ;;  %v7198_v46 = vld [vmem:[%s7071_s29 + $0x38] sm:$0x1]  ;;  %v2211_v55 = vsel %vm7103_vm2, %v2206_v43, %v2210_v22  ;;  %v321_v56 = vrot.slane %v320_v44, 4  ;;  %v2215_v57 = vrot.slane %v2213_v47, 4  ;;  %v2226_v58 = vshrl.u32 %v7187_v33, 16  ;;  %v6725_v35 = vld [vmem:[%s8894_s1 + $0x30] sm:$0xff]  }
  0x3d   : > { %5983 = vmatprep.subr.bf16.mxu1 %v6715_v3  ;;  %v5383_v61 = vcombine.low %v2201_v42, %v2211_v55  ;;  %v2218_v0 = vrot.slane %v2216_v52, 5  ;;  %v2224_v1 = vrot.slane %v2222_v53, 5  ;;  %v2232_v6 = vshll.u32 %v7198_v46, 16  ;;  %v185_v55 = vld [vmem:[%s7071_s29 + $0x40] sm:$0xf] }
  0x3e   : > { %v326_v5 = vsel %vm7103_vm2, %v321_v56, %v325_v38  ;;  %v338_v7 = vshrl.u32 %v182_v54, 16  ;;  %v341_v12 = vshll.u32 %v182_v54, 16  ;;  %v347_v13 = vshll.u32 %v183_v59, 16 }
  0x3f   : > { %6174 = vmatpush3.bf16.msra.mxu0 %v6711_v63  ;;  %v330_v63 = vor.u32 %v329_v49, %v325_v38  ;;  %6143 = vmatprep.mubr.bf16.mxu0 %v5383_v61  ;;  %v2219_v11 = vor.u32 %v2218_v0, %v2215_v57  ;;  %v2234_v16 = vrot.slane %v2232_v6, 5  ;;  %v351_v18 = vshrl.u32 %v183_v59, 16 }
  0x40   : > { %5984 = vmatpush3.bf16.msra.mxu1 %v6715_v3  ;;  %6175 = vmatprep.subr.bf16.mxu0 %v6713_v4  ;;  %v2228_v3 = vrot.slane %v2226_v58, 4  ;;  %v340_v17 = vrot.slane %v338_v7, 4  ;;  %v343_v25 = vrot.slane %v341_v12, 5  ;;  %v349_v26 = vrot.slane %v347_v13, 5 }
  0x41   : > { %5985 = vmatprep.subr.bf16.mxu1 %v6718_v34  ;;  %v331_v10 = vrot.slane %v330_v63, 4  ;;  %v2220_v22 = vrot.slane %v2219_v11, 4  ;;  %v353_v31 = vrot.slane %v351_v18, 4  ;;  %v2237_v40 = vshrl.u32 %v5329_v9, 16  ;;  %v227_v63 = vld [vmem:[%s7071_s29 + $0x44] sm:$0x1] }
  0x42   : > { %v2229_v15 = vor.u32 %v2228_v3, %v2224_v1  ;;  %v344_v39 = vor.u32 %v343_v25, %v340_v17  ;;  %v2240_v42 = vshll.u32 %v5329_v9, 16  ;;  %v2246_v49 = vshll.u32 %v7221_v19, 16  ;;  %v5332_v9 = vld [vmem:[%s7071_s29 + $0x48] sm:$0xf] }
  0x43   : > { %6176 = vmatpush3.bf16.msra.mxu0 %v6713_v4  ;;  %v336_v21 = vsel %vm7103_vm2, %v331_v10, %v335_v50  ;;  %v357_v4 = vshll.u32 %v226_v2, 16  ;;  %v2225_v38 = vsel %vm7103_vm2, %v2220_v22, %v2224_v1  ;;  %v354_v44 = vor.u32 %v353_v31, %v349_v26  ;;  %v6727_v2 = vld [vmem:[%s8894_s1 + $0x38] sm:$0xff]   ;;  %v7262_v22 = vld [vmem:[%s7071_s29 + $0x50] sm:$0x1] }
  0x44   : > { %5986 = vmatpush3.bf16.msra.mxu1 %v6718_v34  ;;  %6177 = vmatprep.subr.bf16.mxu0 %v6714_v48  ;;  %v5144_v29 = vcombine.low %v326_v5, %v336_v21  ;;  %v2230_v30 = vrot.slane %v2229_v15, 4  ;;  %v184_v34 = vld [vmem:[%s7071_s29 + $0x3c] sm:$0xf]  ;;  %v345_v52 = vrot.slane %v344_v39, 4  ;;  %v2239_v53 = vrot.slane %v2237_v40, 4  ;;  %v6719_v15 = vld [vmem:[%s8894_s1 + $0x170] sm:$0xff]  }
  0x45   : > { %5987 = vmatprep.subr.bf16.mxu1 %v6721_v60  ;;  %v359_v47 = vrot.slane %v357_v4, 5  ;;  %v2242_v54 = vrot.slane %v2240_v42, 5  ;;  %v355_v56 = vrot.slane %v354_v44, 4  ;;  %v2248_v57 = vrot.slane %v2246_v49, 5  ;;  %v6720_v31 = vld [vmem:[%s8894_s1 + $0x178] sm:$0xff]   ;;  %v7273_v4 = vld [vmem:[%s8894_s1 + $0x80] sm:$0xff]  }
  0x46   : > { %5952 = vmatmul.mubr.bf16.gmra.mrb[4].mxu1 %v5144_v29  ;;  %v2235_v43 = vsel %vm7103_vm2, %v2230_v30, %v2234_v16  ;;  %v2250_v58 = vshrl.u32 %v7221_v19, 16  ;;  %v2256_v59 = vshll.u32 %v7229_v28, 16  ;;  %v362_v0 = vshrl.u32 %v184_v34, 16  ;;  %v186_v30 = vld [vmem:[%s7071_s29 + $0x48] sm:$0xf] }
  0x47   : > { %6178 = vmatpush3.bf16.msra.mxu0 %v6714_v48  ;;  %v5384_v50 = vcombine.low %v2225_v38, %v2235_v43  ;;  %v6717_v48 = vld [vmem:[%s8894_s1 + $0x168] sm:$0xff]   ;;  %v2243_v61 = vor.u32 %v2242_v54, %v2239_v53  ;;  %v365_v1 = vshll.u32 %v184_v34, 16  ;;  %v360_v5 = vsel %vm7103_vm2, %v355_v56, %v359_v47  ;;  %v228_v54 = vld [vmem:[%s7071_s29 + $0x50] sm:$0x1] }
  0x48   : > { %5988 = vmatpush3.bf16.msra.mxu1 %v6721_v60  ;;  %6179 = vmatprep.subr.bf16.mxu0 %v6716_v20  ;;  %v350_v60 = vsel %vm7103_vm2, %v345_v52, %v349_v26  ;;  %v2252_v3 = vrot.slane %v2250_v58, 4  ;;  %v2258_v6 = vrot.slane %v2256_v59, 5  ;;  %v371_v7 = vshll.u32 %v185_v55, 16  ;;  %v187_v53 = vld [vmem:[%s7071_s29 + $0x4c] sm:$0xf] }
  0x49   : > { %5989 = vmatprep.subr.bf16.mxu1 %v6723_v14  ;;  %6144 = vmatmul.mubr.bf16.gmra.mrb[4].mxu0 %v5384_v50  ;;  %v5145_v10 = vcombine.low %v350_v60, %v360_v5  ;;  %v2244_v11 = vrot.slane %v2243_v61, 4  ;;  %v364_v12 = vrot.slane %v362_v0, 4  ;;  %v367_v13 = vrot.slane %v365_v1, 5  ;;  %v5335_v58 = vld [vmem:[%s7071_s29 + $0x54] sm:$0xf] }
  0x4a   : > { %v2253_v16 = vor.u32 %v2252_v3, %v2248_v57  ;;  %v373_v17 = vrot.slane %v371_v7, 5  ;;  %v375_v18 = vshrl.u32 %v185_v55, 16  ;;  %v381_v21 = vshll.u32 %v227_v63, 16  ;;  %v7287_v0 = vld [vmem:[%s7071_s29 + $0x58] sm:$0xf] }
  0x4b   : > { %6180 = vmatpush3.bf16.msra.mxu0 %v6716_v20  ;;  %5955 = vmatprep.mubr.bf16.mxu1 %v5145_v10  ;;  %v2249_v20 = vsel %vm7103_vm2, %v2244_v11, %v2248_v57  ;;  %v368_v25 = vor.u32 %v367_v13, %v364_v12  ;;  %v2261_v26 = vshrl.u32 %v5332_v9, 16  ;;  %v2264_v29 = vshll.u32 %v5332_v9, 16 }
  0x4c   : > { %5990 = vmatpush3.bf16.msra.mxu1 %v6723_v14  ;;  %v7256_v14 = vld [vmem:[%s7071_s29 + $0x4c] sm:$0xf]  ;;  %6181 = vmatprep.subr.bf16.mxu0 %v6717_v48  ;;  %v2254_v34 = vrot.slane %v2253_v16, 4  ;;  %v383_v38 = vrot.slane %v381_v21, 5  ;;  %v2280_v52 = vshll.u32 %v7262_v22, 16  ;;  %v386_v61 = vshrl.u32 %v186_v30, 16 }
  0x4d   : > { %5991 = vmatprep.subr.bf16.mxu1 %v6725_v35  ;;  %v2270_v39 = vshll.u32 %v7256_v14, 16  ;;  %v369_v40 = vrot.slane %v368_v25, 4  ;;  %v2263_v42 = vrot.slane %v2261_v26, 4  ;;  %v2266_v43 = vrot.slane %v2264_v29, 5 }
  0x4e   : > { %v2274_v44 = vshrl.u32 %v7256_v14, 16  ;;  %v2259_v47 = vsel %vm7103_vm2, %v2254_v34, %v2258_v6  ;;  %v2282_v60 = vrot.slane %v2280_v52, 5  ;;  %v389_v63 = vshll.u32 %v186_v30, 16  ;;  %v7292_v6 = vld [vmem:[%s8894_s1 + $0x180] sm:$0xff]  }
  0x4f   : > { %6182 = vmatpush3.bf16.msra.mxu0 %v6717_v48  ;;  %v2272_v50 = vrot.slane %v2270_v39, 5  ;;  %v5385_v55 = vcombine.low %v2249_v20, %v2259_v47  ;;  %v374_v48 = vsel %vm7103_vm2, %v369_v40, %v373_v17  ;;  %v2267_v56 = vor.u32 %v2266_v43, %v2263_v42  ;;  %v7299_v20 = vld [vmem:[%s7071_s29 + $0x5c] sm:$0x1]  ;;  %v189_v43 = vld [vmem:[%s7071_s29 + $0x58] sm:$0xf] }
  0x50   : > { %5992 = vmatpush3.bf16.msra.mxu1 %v6725_v35  ;;  %v377_v35 = vrot.slane %v375_v18, 4  ;;  %6183 = vmatprep.subr.bf16.mxu0 %v6719_v15  ;;  %v2276_v57 = vrot.slane %v2274_v44, 4  ;;  %v399_v3 = vshrl.u32 %v187_v53, 16  ;;  %v388_v9 = vrot.slane %v386_v61, 4  ;;  %v5338_v52 = vld [vmem:[%s7071_s29 + $0x60] sm:$0xf] }
  0x51   : > { %5993 = vmatprep.subr.bf16.mxu1 %v6727_v2  ;;  %6147 = vmatprep.mubr.bf16.mxu0 %v5385_v55  ;;  %v2268_v1 = vrot.slane %v2267_v56, 4  ;;  %v391_v10 = vrot.slane %v389_v63, 5  ;;  %v405_v11 = vshll.u32 %v228_v54, 16  ;;  %v2285_v25 = vshrl.u32 %v5335_v58, 16 }
  0x52   : > { %v378_v49 = vor.u32 %v377_v35, %v373_v17  ;;  %v2277_v5 = vor.u32 %v2276_v57, %v2272_v50  ;;  %v401_v18 = vrot.slane %v399_v3, 4  ;;  %v2288_v29 = vshll.u32 %v5335_v58, 16  ;;  %v188_v35 = vld [vmem:[%s7071_s29 + $0x54] sm:$0xf] }
  0x53   : > { %6184 = vmatpush3.bf16.msra.mxu0 %v6719_v15  ;;  %v2273_v13 = vsel %vm7103_vm2, %v2268_v1, %v2272_v50  ;;  %v392_v17 = vor.u32 %v391_v10, %v388_v9  ;;  %v407_v21 = vrot.slane %v405_v11, 5  ;;  %v2294_v30 = vshll.u32 %v7287_v0, 16  ;;  %v229_v50 = vld [vmem:[%s7071_s29 + $0x5c] sm:$0x1] }
  0x54   : > { %5994 = vmatpush3.bf16.msra.mxu1 %v6727_v2  ;;  %v379_v59 = vrot.slane %v378_v49, 4  ;;  %v395_v2 = vshll.u32 %v187_v53, 16  ;;  %6185 = vmatprep.subr.bf16.mxu0 %v6720_v31  ;;  %v2278_v15 = vrot.slane %v2277_v5, 4  ;;  %v2298_v34 = vshrl.u32 %v7287_v0, 16 }
  0x55   : > { %6027 = vmatprep.subr.bf16.mxu1 %v7273_v4  ;;  %v393_v39 = vrot.slane %v392_v17, 4  ;;  %v2287_v42 = vrot.slane %v2285_v25, 4  ;;  %v2296_v44 = vrot.slane %v2294_v30, 5  ;;  %v2304_v49 = vshll.u32 %v7299_v20, 16  ;;  %v7323_v17 = vld [vmem:[%s7071_s29 + $0x68] sm:$0x1] }
  0x56   : > { %v384_v7 = vsel %vm7103_vm2, %v379_v59, %v383_v38  ;;  %v397_v16 = vrot.slane %v395_v2, 5  ;;  %v2283_v26 = vsel %vm7103_vm2, %v2278_v15, %v2282_v60  ;;  %v2300_v47 = vrot.slane %v2298_v34, 4  ;;  %v7314_v60 = vld [vmem:[%s7071_s29 + $0x64] sm:$0xf]  ;;  %v7327_v25 = vld [vmem:[%s7071_s29 + $0x60] sm:$0xf] }
  0x57   : > { %v5146_v12 = vcombine.low %v374_v48, %v384_v7  ;;  %6186 = vmatpush3.bf16.msra.mxu0 %v6720_v31  ;;  %v5386_v38 = vcombine.low %v2273_v13, %v2283_v26  ;;  %v2290_v31 = vrot.slane %v2288_v29, 5  ;;  %v410_v55 = vshrl.u32 %v188_v35, 16 }
  0x58   : > { %6219 = vmatprep.subr.bf16.mxu0 %v7292_v6  ;;  %v402_v40 = vor.u32 %v401_v18, %v397_v16  ;;  %v398_v53 = vsel %vm7103_vm2, %v393_v39, %v397_v16  ;;  %v413_v48 = vshll.u32 %v188_v35, 16  ;;  %v2301_v57 = vor.u32 %v2300_v47, %v2296_v44  ;;  %v7330_v35 = vld [vmem:[%s7071_s29 + $0x64] sm:$0xf] }
  0x59   : > { %5956 = vmatmul.mubr.bf16.gmra.mrb[8].mxu1 %v5146_v12  ;;  %6148 = vmatmul.mubr.bf16.gmra.mrb[8].mxu0 %v5386_v38  ;;  %v2291_v56 = vor.u32 %v2290_v31, %v2287_v42  ;;  %v2306_v58 = vrot.slane %v2304_v49, 5  ;;  %v419_v59 = vshll.u32 %v189_v43, 16  ;;  %v412_v63 = vrot.slane %v410_v55, 4 }
  0x5a   : > { %v403_v54 = vrot.slane %v402_v40, 4  ;;  %v415_v1 = vrot.slane %v413_v48, 5  ;;  %v423_v5 = vshrl.u32 %v189_v43, 16  ;;  %v2302_v7 = vrot.slane %v2301_v57, 4  ;;  %v230_v43 = vld [vmem:[%s7071_s29 + $0x68] sm:$0x1] }
  0x5b   : > { %v2292_v3 = vrot.slane %v2291_v56, 4  ;;  %v421_v9 = vrot.slane %v419_v59, 5  ;;  %v429_v12 = vshll.u32 %v229_v50, 16  ;;  %v2309_v13 = vshrl.u32 %v5338_v52, 16  ;;  %v5405_v50 = vld [vmem:[%s7071_s29 + $0xc] sm:$0xe] }
  0x5c   : > { %v408_v61 = vsel %vm7103_vm2, %v403_v54, %v407_v21  ;;  %v416_v10 = vor.u32 %v415_v1, %v412_v63  ;;  %v425_v11 = vrot.slane %v423_v5, 4  ;;  %v2307_v16 = vsel %vm7103_vm2, %v2302_v7, %v2306_v58  ;;  %v7345_v5 = vld [vmem:[%s7071_s29 + $0x6c] sm:$0xf] }
  0x5d   : > { %v5147_v2 = vcombine.low %v398_v53, %v408_v61  ;;  %v2297_v15 = vsel %vm7103_vm2, %v2292_v3, %v2296_v44  ;;  %v2312_v18 = vshll.u32 %v5338_v52, 16  ;;  %v2318_v21 = vshll.u32 %v7314_v60, 16 }
  0x5e   : > { %v5387_v26 = vcombine.low %v2297_v15, %v2307_v16  ;;  %v417_v29 = vrot.slane %v416_v10, 4  ;;  %v426_v30 = vor.u32 %v425_v11, %v421_v9  ;;  %v431_v34 = vrot.slane %v429_v12, 5 }
  0x5f   : > { %5959 = vmatprep.mubr.bf16.mxu1 %v5147_v2  ;;  %v2311_v38 = vrot.slane %v2309_v13, 4  ;;  %v2314_v39 = vrot.slane %v2312_v18, 5  ;;  %v2320_v40 = vrot.slane %v2318_v21, 5  ;;  %v2322_v42 = vshrl.u32 %v7314_v60, 16  ;;  %v7357_v21 = vld [vmem:[%s7071_s29 + $0x70] sm:$0xf] }
  0x60   : > { %6151 = vmatprep.mubr.bf16.mxu0 %v5387_v26  ;;  %v422_v31 = vsel %vm7103_vm2, %v417_v29, %v421_v9  ;;  %v427_v44 = vrot.slane %v426_v30, 4  ;;  %v2328_v47 = vshll.u32 %v7323_v17, 16  ;;  %v434_v49 = vshrl.u32 %v7327_v25, 16  ;;  %v6811_v9 = vld [vmem:[%s7071_s29 + $0xb4] sm:$0xff]  }
  0x61   : > { %v2315_v52 = vor.u32 %v2314_v39, %v2311_v38  ;;  %v2324_v53 = vrot.slane %v2322_v42, 4  ;;  %v437_v54 = vshll.u32 %v7327_v25, 16  ;;  %v443_v55 = vshll.u32 %v7330_v35, 16 }
  0x62   : > { %v432_v48 = vsel %vm7103_vm2, %v427_v44, %v431_v34  ;;  %v2330_v56 = vrot.slane %v2328_v47, 5  ;;  %v436_v57 = vrot.slane %v434_v49, 4  ;;  %v447_v58 = vshrl.u32 %v7330_v35, 16  ;;  %v7368_v47 = vld [vmem:[%s7071_s29 + $0x78] sm:$0xf] }
  0x63   : > { %v5148_v59 = vcombine.low %v422_v31, %v432_v48  ;;  %v2316_v61 = vrot.slane %v2315_v52, 4  ;;  %v2325_v63 = vor.u32 %v2324_v53, %v2320_v40  ;;  %v439_v1 = vrot.slane %v437_v54, 5  ;;  %v7379_v54 = vld [vmem:[%s7071_s29 + $0x7c] sm:$0xf] }
  0x64   : > { %v445_v2 = vrot.slane %v443_v55, 5  ;;  %v449_v3 = vrot.slane %v447_v58, 4  ;;  %v453_v7 = vshll.u32 %v230_v43, 16  ;;  %v5421_v10 = vrot.slane %v5405_v50, 9  ;;  %v232_v58 = vld [vmem:[%s7071_s29 + $0x80] sm:$0x1] }
  0x65   : > { %5960 = vmatmul.mubr.bf16.gmra.mrb[12].mxu1 %v5148_v59  ;;  %v2321_v11 = vsel %vm7103_vm2, %v2316_v61, %v2320_v40  ;;  %v2326_v12 = vrot.slane %v2325_v63, 4  ;;  %v440_v13 = vor.u32 %v439_v1, %v436_v57  ;;  %v2912_v15 = vrot.slane %v7084_v23, 5  ;;  %v231_v40 = vld [vmem:[%s7071_s29 + $0x74] sm:$0x1]  ;;  %v5406_v23 = vld [vmem:[%s7071_s29 + $0x18] sm:$0xe] }
  0x66   : > { %v450_v16 = vor.u32 %v449_v3, %v445_v2  ;;  %v455_v18 = vrot.slane %v453_v7, 5  ;;  %v458_v26 = vshrl.u32 %v7345_v5, 16  ;;  %v461_v29 = vshll.u32 %v7345_v5, 16 }
  0x67   : > { %v2331_v30 = vsel %vm7103_vm2, %v2326_v12, %v2330_v56  ;;  %v441_v34 = vrot.slane %v440_v13, 4  ;;  %v2913_v38 = vsel %vm7349_vm5, %v5421_v10, %v2912_v15  ;;  %v2914_v39 = vrot.slane %v2912_v15, 4  ;;  %v5407_v13 = vld [vmem:[%s7071_s29 + $0x24] sm:$0xe] }
  0x68   : > { %v5388_v42 = vcombine.low %v2321_v11, %v2331_v30  ;;  %v451_v43 = vrot.slane %v450_v16, 4  ;;  %v460_v31 = vrot.slane %v458_v26, 4  ;;  %v463_v44 = vrot.slane %v461_v29, 5  ;;  %v7401_v16 = vld [vmem:[%s7071_s29 + $0x84] sm:$0xf]  ;;  %v6724_v29 = vld [vmem:[%s8894_s1 + $0x188] sm:$0xff]  }
  0x69   : > { %v446_v49 = vsel %vm7103_vm2, %v441_v34, %v445_v2  ;;  %v2916_v50 = vsel %vm7349_vm5, %v2914_v39, %v2915_v41  ;;  %v467_v52 = vshll.u32 %v7357_v21, 16  ;;  %v471_v53 = vshrl.u32 %v7357_v21, 16 }
  0x6a   : > { %6152 = vmatmul.mubr.bf16.gmra.mrb[12].mxu0 %v5388_v42  ;;  %v456_v55 = vsel %vm7103_vm2, %v451_v43, %v455_v18  ;;  %v5453_v48 = vcombine.low %v2913_v38, %v2916_v50  ;;  %v464_v56 = vor.u32 %v463_v44, %v460_v31  ;;  %v477_v57 = vshll.u32 %v231_v40, 16  ;;  %v7409_v40 = vld [vmem:[%s7071_s29 + $0x88] sm:$0xf]  ;;  %v233_v31 = vld [vmem:[%s7071_s29 + $0x8c] sm:$0x1] }
  0x6b   : > { %v5149_v59 = vcombine.low %v446_v49, %v456_v55  ;;  %v469_v24 = vrot.slane %v467_v52, 5  ;;  %v473_v61 = vrot.slane %v471_v53, 4  ;;  %v5422_v63 = vrot.slane %v5406_v23, 9 }
  0x6c   : > { %6187 = vmatprep.mubr.bf16.mxu0 %v5453_v48  ;;  %v465_v41 = vrot.slane %v464_v56, 4  ;;  %v479_v1 = vrot.slane %v477_v57, 5  ;;  %v2923_v2 = vsel %vm7349_vm5, %v7152_v36, %v2922_v32  ;;  %v482_v3 = vshrl.u32 %v7368_v47, 16 }
  0x6d   : > { %5963 = vmatprep.mubr.bf16.mxu1 %v5149_v59  ;;  %v474_v7 = vor.u32 %v473_v61, %v469_v24  ;;  %v2920_v10 = vsel %vm7349_vm5, %v5422_v63, %v2919_v27  ;;  %v485_v11 = vshll.u32 %v7368_v47, 16  ;;  %v491_v12 = vshll.u32 %v7379_v54, 16 }
  0x6e   : > { %v470_v8 = vsel %vm7103_vm2, %v465_v41, %v469_v24  ;;  %v5454_v15 = vcombine.low %v2920_v10, %v2923_v2  ;;  %v484_v32 = vrot.slane %v482_v3, 4  ;;  %v495_v36 = vshrl.u32 %v7379_v54, 16  ;;  %v7430_v2 = vld [vmem:[%s7071_s29 + $0x90] sm:$0xf]  ;;  %v7433_v3 = vld [vmem:[%s7071_s29 + $0x94] sm:$0xf] }
  0x6f   : > { %v475_v62 = vrot.slane %v474_v7, 4  ;;  %v487_v18 = vrot.slane %v485_v11, 5  ;;  %v493_v26 = vrot.slane %v491_v12, 5  ;;  %v501_v27 = vshll.u32 %v232_v58, 16 }
  0x70   : > { %v497_v30 = vrot.slane %v495_v36, 4  ;;  %v5423_v34 = vrot.slane %v5407_v13, 9  ;;  %v2926_v38 = vrot.slane %v7156_v45, 5  ;;  %v2929_v39 = vrot.slane %v7162_v51, 5  ;;  %v5408_v45 = vld [vmem:[%s7071_s29 + $0x30] sm:$0xe] }
  0x71   : > { %v480_v23 = vsel %vm7103_vm2, %v475_v62, %v479_v1  ;;  %v488_v42 = vor.u32 %v487_v18, %v484_v32  ;;  %v503_v43 = vrot.slane %v501_v27, 5  ;;  %v506_v44 = vshrl.u32 %v7401_v16, 16  ;;  %v234_v62 = vld [vmem:[%s7071_s29 + $0x98] sm:$0x1] }
  0x72   : > { %v5150_v49 = vcombine.low %v470_v8, %v480_v23  ;;  %6188 = vmatmul.mubr.bf16.vlgmr.msra.gmra.mrb[0].mxu0 %v5454_v15  ;;  %v498_v50 = vor.u32 %v497_v30, %v493_v26  ;;  %v2927_v52 = vsel %vm7349_vm5, %v5423_v34, %v2926_v38  ;;  %v2928_v53 = vrot.slane %v2926_v38, 4  ;;  %v6728_v30 = vld [vmem:[%s8894_s1 + $0x198] sm:$0xff]  }
  0x73   : > { %6220 = vmatpush3.bf16.msra.mxu0 %v7292_v6  ;;  %v489_v51 = vrot.slane %v488_v42, 4  ;;  %v508_v55 = vrot.slane %v506_v44, 4  ;;  %v509_v48 = vshll.u32 %v7401_v16, 16  ;;  %v515_v56 = vshll.u32 %v7409_v40, 16  ;;  %v6726_v6 = vld [vmem:[%s8894_s1 + $0x190] sm:$0xff]  }
  0x74   : > { %5964 = vmatmul.mubr.bf16.gmra.mrb[16].mxu1 %v5150_v49  ;;  %v499_v57 = vrot.slane %v498_v50, 4  ;;  %v2930_v58 = vsel %vm7349_vm5, %v2928_v53, %v2929_v39  ;;  %v519_v59 = vshrl.u32 %v7409_v40, 16  ;;  %v525_v24 = vshll.u32 %v233_v31, 16  ;;  %6221 = vmatprep.subr.bf16.mxu0 %v6724_v29  ;;  %v5409_v38 = vld [vmem:[%s7071_s29 + $0x3c] sm:$0xe] }
  0x75   : > { %v494_v61 = vsel %vm7103_vm2, %v489_v51, %v493_v26  ;;  %v5455_v63 = vcombine.low %v2927_v52, %v2930_v58  ;;  %v511_v41 = vrot.slane %v509_v48, 5  ;;  %v517_v1 = vrot.slane %v515_v56, 5  ;;  %v7451_v31 = vld [vmem:[%s7071_s29 + $0x9c] sm:$0xf]  ;;  %v7460_v48 = vld [vmem:[%s7071_s29 + $0xa0] sm:$0xf] }
  0x76   : > { %v504_v7 = vsel %vm7103_vm2, %v499_v57, %v503_v43  ;;  %v521_v10 = vrot.slane %v519_v59, 4  ;;  %v527_v11 = vrot.slane %v525_v24, 5  ;;  %v5424_v12 = vrot.slane %v5408_v45, 9  ;;  %v6732_v56 = vld [vmem:[%s8894_s1 + $0x1a0] sm:$0xff]  }
  0x77   : > { %v5151_v13 = vcombine.low %v494_v61, %v504_v7  ;;  %6191 = vmatprep.mubr.bf16.mxu0 %v5455_v63  ;;  %v512_v8 = vor.u32 %v511_v41, %v508_v55  ;;  %v2933_v15 = vrot.slane %v7187_v33, 5  ;;  %v2936_v32 = vrot.slane %v7198_v46, 5  ;;  %6222 = vmatpush3.bf16.msra.mxu0 %v6724_v29  ;;  %v235_v61 = vld [vmem:[%s7071_s29 + $0xa4] sm:$0x1] }
  0x78   : > { %v522_v36 = vor.u32 %v521_v10, %v517_v1  ;;  %v530_v18 = vshrl.u32 %v7430_v2, 16  ;;  %v533_v26 = vshll.u32 %v7430_v2, 16  ;;  %v539_v27 = vshll.u32 %v7433_v3, 16  ;;  %6223 = vmatprep.subr.bf16.mxu0 %v6726_v6 }
  0x79   : > { %5967 = vmatprep.mubr.bf16.mxu1 %v5151_v13  ;;  %v513_v34 = vrot.slane %v512_v8, 4  ;;  %v2934_v33 = vsel %vm7349_vm5, %v5424_v12, %v2933_v15  ;;  %v2935_v46 = vrot.slane %v2933_v15, 4  ;;  %v543_v29 = vshrl.u32 %v7433_v3, 16  ;;  %v5410_v15 = vld [vmem:[%s7071_s29 + $0x48] sm:$0xe] }
  0x7a   : > { %v523_v39 = vrot.slane %v522_v36, 4  ;;  %v532_v23 = vrot.slane %v530_v18, 4  ;;  %v535_v42 = vrot.slane %v533_v26, 5  ;;  %v541_v43 = vrot.slane %v539_v27, 5  ;;  %v7485_v27 = vld [vmem:[%s7071_s29 + $0xa8] sm:$0xf] }
  0x7b   : > { %v518_v44 = vsel %vm7103_vm2, %v513_v34, %v517_v1  ;;  %v2937_v49 = vsel %vm7349_vm5, %v2935_v46, %v2936_v32  ;;  %v545_v50 = vrot.slane %v543_v29, 4  ;;  %v549_v52 = vshll.u32 %v234_v62, 16  ;;  %6224 = vmatpush3.bf16.msra.mxu0 %v6726_v6  ;;  %v6736_v32 = vld [vmem:[%s8894_s1 + $0x1a8] sm:$0xff]  }
  0x7c   : > { %v528_v53 = vsel %vm7103_vm2, %v523_v39, %v527_v11  ;;  %v5456_v45 = vcombine.low %v2934_v33, %v2937_v49  ;;  %v536_v51 = vor.u32 %v535_v42, %v532_v23  ;;  %v5425_v55 = vrot.slane %v5409_v38, 9  ;;  %6225 = vmatprep.subr.bf16.mxu0 %v6728_v30  ;;  %v7488_v29 = vld [vmem:[%s7071_s29 + $0xac] sm:$0xf] }
  0x7d   : > { %v5152_v57 = vcombine.low %v518_v44, %v528_v53  ;;  %v546_v58 = vor.u32 %v545_v50, %v541_v43  ;;  %v551_v59 = vrot.slane %v549_v52, 5  ;;  %v2940_v24 = vrot.slane %v7221_v19, 5  ;;  %v5411_v53 = vld [vmem:[%s7071_s29 + $0x54] sm:$0xe] }
  0x7e   : > { %6192 = vmatmul.mubr.bf16.gmra.mrb[4].mxu0 %v5456_v45  ;;  %v537_v6 = vrot.slane %v536_v51, 4  ;;  %v2943_v63 = vrot.slane %v7229_v28, 5  ;;  %v554_v41 = vshrl.u32 %v7451_v31, 16  ;;  %v557_v1 = vshll.u32 %v7451_v31, 16  ;;  %v6740_v45 = vld [vmem:[%s8894_s1 + $0x1b0] sm:$0xff]  }
  0x7f   : > { %5968 = vmatmul.mubr.bf16.gmra.mrb[20].mxu1 %v5152_v57  ;;  %v547_v7 = vrot.slane %v546_v58, 4  ;;  %v2941_v10 = vsel %vm7349_vm5, %v5425_v55, %v2940_v24  ;;  %v2942_v11 = vrot.slane %v2940_v24, 4  ;;  %v563_v12 = vshll.u32 %v7460_v48, 16  ;;  %6226 = vmatpush3.bf16.msra.mxu0 %v6728_v30 }
  0x80   : > { %v542_v19 = vsel %vm7103_vm2, %v537_v6, %v541_v43  ;;  %v556_v13 = vrot.slane %v554_v41, 4  ;;  %v559_v28 = vrot.slane %v557_v1, 5  ;;  %v567_v8 = vshrl.u32 %v7460_v48, 16  ;;  %6227 = vmatprep.subr.bf16.mxu0 %v6732_v56  ;;  %v236_v43 = vld [vmem:[%s7071_s29 + $0xb0] sm:$0x1] }
  0x81   : > { %v552_v36 = vsel %vm7103_vm2, %v547_v7, %v551_v59  ;;  %v2944_v62 = vsel %vm7349_vm5, %v2942_v11, %v2943_v63  ;;  %v565_v18 = vrot.slane %v563_v12, 5  ;;  %v573_v26 = vshll.u32 %v235_v61, 16  ;;  %v7508_v41 = vld [vmem:[%s7071_s29 + $0xb4] sm:$0xf]  ;;  %v7513_v12 = vld [vmem:[%s7071_s29 + $0xb8] sm:$0xf] }
  0x82   : > { %v5153_v30 = vcombine.low %v542_v19, %v552_v36  ;;  %v5457_v34 = vcombine.low %v2941_v10, %v2944_v62  ;;  %v560_v33 = vor.u32 %v559_v28, %v556_v13  ;;  %v569_v46 = vrot.slane %v567_v8, 4  ;;  %v237_v19 = vld [vmem:[%s7071_s29 + $0xbc] sm:$0x1] }
  0x83   : > { %v575_v38 = vrot.slane %v573_v26, 5  ;;  %v5426_v39 = vrot.slane %v5410_v15, 9  ;;  %v2947_v23 = vrot.slane %v7256_v14, 5  ;;  %v2950_v42 = vrot.slane %v7262_v22, 5  ;;  %6228 = vmatpush3.bf16.msra.mxu0 %v6732_v56  ;;  %v6744_v13 = vld [vmem:[%s8894_s1 + $0x1b8] sm:$0xff]  }
  0x84   : > { %5971 = vmatprep.mubr.bf16.mxu1 %v5153_v30  ;;  %6195 = vmatprep.mubr.bf16.mxu0 %v5457_v34  ;;  %v561_v44 = vrot.slane %v560_v33, 4  ;;  %v570_v49 = vor.u32 %v569_v46, %v565_v18  ;;  %v578_v50 = vshrl.u32 %v7485_v27, 16  ;;  %v581_v52 = vshll.u32 %v7485_v27, 16  ;;  %v5412_v30 = vld [vmem:[%s7071_s29 + $0x60] sm:$0xe] }
  0x85   : > { %v2948_v14 = vsel %vm7349_vm5, %v5426_v39, %v2947_v23  ;;  %v2949_v22 = vrot.slane %v2947_v23, 4  ;;  %v587_v51 = vshll.u32 %v7488_v29, 16  ;;  %v591_v55 = vshrl.u32 %v7488_v29, 16  ;;  %6229 = vmatprep.subr.bf16.mxu0 %v6736_v32  ;;  %v5342_v39 = vld [vmem:[%s7071_s29 + $0x70] sm:$0xf] }
  0x86   : > { %v566_v56 = vsel %vm7103_vm2, %v561_v44, %v565_v18  ;;  %v571_v57 = vrot.slane %v570_v49, 4  ;;  %v580_v58 = vrot.slane %v578_v50, 4  ;;  %v583_v59 = vrot.slane %v581_v52, 5  ;;  %v7535_v44 = vld [vmem:[%s8894_s1 + $0x1c0] sm:$0xff]  }
  0x87   : > { %v2951_v24 = vsel %vm7349_vm5, %v2949_v22, %v2950_v42  ;;  %v589_v61 = vrot.slane %v587_v51, 5  ;;  %v593_v6 = vrot.slane %v591_v55, 4  ;;  %v597_v63 = vshll.u32 %v236_v43, 16  ;;  %6230 = vmatpush3.bf16.msra.mxu0 %v6736_v32  ;;  %v5413_v43 = vld [vmem:[%s7071_s29 + $0x6c] sm:$0xe] }
  0x88   : > { %v576_v1 = vsel %vm7103_vm2, %v571_v57, %v575_v38  ;;  %v5458_v7 = vcombine.low %v2948_v14, %v2951_v24  ;;  %v584_v10 = vor.u32 %v583_v59, %v580_v58  ;;  %v5427_v11 = vrot.slane %v5411_v53, 9  ;;  %6231 = vmatprep.subr.bf16.mxu0 %v6740_v45  ;;  %v5343_v55 = vld [vmem:[%s7071_s29 + $0x74] sm:$0x1]  ;;  %v5414_v24 = vld [vmem:[%s7071_s29 + $0x78] sm:$0xe] }
  0x89   : > { %v5154_v28 = vcombine.low %v566_v56, %v576_v1  ;;  %v594_v8 = vor.u32 %v593_v6, %v589_v61  ;;  %v599_v15 = vrot.slane %v597_v63, 5  ;;  %v2954_v32 = vrot.slane %v7287_v0, 5 }
  0x8a   : > { %6196 = vmatmul.mubr.bf16.gmra.mrb[8].mxu0 %v5458_v7  ;;  %v585_v36 = vrot.slane %v584_v10, 4  ;;  %v2957_v62 = vrot.slane %v7299_v20, 5  ;;  %v602_v18 = vshrl.u32 %v7508_v41, 16  ;;  %v605_v26 = vshll.u32 %v7508_v41, 16 }
  0x8b   : > { %5972 = vmatmul.mubr.bf16.gmra.mrb[24].mxu1 %v5154_v28  ;;  %v595_v34 = vrot.slane %v594_v8, 4  ;;  %v2955_v33 = vsel %vm7349_vm5, %v5427_v11, %v2954_v32  ;;  %v2956_v46 = vrot.slane %v2954_v32, 4  ;;  %v611_v38 = vshll.u32 %v7513_v12, 16  ;;  %6232 = vmatpush3.bf16.msra.mxu0 %v6740_v45  ;;  %v7548_v11 = vld [vmem:[%s7071_s29 + $0x7c] sm:$0xf] }
  0x8c   : > { %v590_v0 = vsel %vm7103_vm2, %v585_v36, %v589_v61  ;;  %v604_v20 = vrot.slane %v602_v18, 4  ;;  %v607_v23 = vrot.slane %v605_v26, 5  ;;  %v615_v42 = vshrl.u32 %v7513_v12, 16  ;;  %6233 = vmatprep.subr.bf16.mxu0 %v6744_v13  ;;  %v6813_v36 = vld [vmem:[%s7071_s29] sm:$0xf] }
  0x8d   : > { %v600_v49 = vsel %vm7103_vm2, %v595_v34, %v599_v15  ;;  %v2958_v50 = vsel %vm7349_vm5, %v2956_v46, %v2957_v62  ;;  %v613_v52 = vrot.slane %v611_v38, 5  ;;  %v621_v53 = vshll.u32 %v237_v19, 16  ;;  %v5348_v15 = vld [vmem:[%s7071_s29 + $0x88] sm:$0xf]  ;;  %v7563_v62 = vld [vmem:[%s7071_s29 + $0x4] sm:$0xf] }
  0x8e   : > { %v5155_v45 = vcombine.low %v590_v0, %v600_v49  ;;  %v5459_v14 = vcombine.low %v2955_v33, %v2958_v50  ;;  %v608_v22 = vor.u32 %v607_v23, %v604_v20  ;;  %v617_v51 = vrot.slane %v615_v42, 4  ;;  %v5349_v26 = vld [vmem:[%s7071_s29 + $0x8c] sm:$0x1]  ;;  %v5352_v23 = vld [vmem:[%s7071_s29 + $0x98] sm:$0x1] }
  0x8f   : > { %v623_v56 = vrot.slane %v621_v53, 5  ;;  %v5428_v57 = vrot.slane %v5412_v30, 9  ;;  %v2961_v58 = vrot.slane %v7314_v60, 5  ;;  %v2964_v59 = vrot.slane %v7323_v17, 5  ;;  %6234 = vmatpush3.bf16.msra.mxu0 %v6744_v13  ;;  %v7551_v17 = vld [vmem:[%s7071_s29 + $0x80] sm:$0x1] }
  0x90   : > { %5975 = vmatprep.mubr.bf16.mxu1 %v5155_v45  ;;  %6199 = vmatprep.mubr.bf16.mxu0 %v5459_v14  ;;  %v609_v61 = vrot.slane %v608_v22, 4  ;;  %v618_v6 = vor.u32 %v617_v51, %v613_v52  ;;  %v5429_v63 = vrot.slane %v5413_v43, 9  ;;  %v2968_v1 = vrot.slane %v5342_v39, 5  ;;  %v5415_v30 = vld [vmem:[%s7071_s29 + $0x84] sm:$0xe] }
  0x91   : > { %v2962_v7 = vsel %vm7349_vm5, %v5428_v57, %v2961_v58  ;;  %v2963_v10 = vrot.slane %v2961_v58, 4  ;;  %v2971_v60 = vrot.slane %v5343_v55, 5  ;;  %6267 = vmatprep.subr.bf16.mxu0 %v7535_v44  ;;  %v5165_v18 = vcombine.low %v6813_v36, %v7563_v62  ;;  %v5351_v39 = vld [vmem:[%s7071_s29 + $0x94] sm:$0xf]  ;;  %v5416_v42 = vld [vmem:[%s7071_s29 + $0x90] sm:$0xe] }
  0x92   : > { %v614_v19 = vsel %vm7103_vm2, %v609_v61, %v613_v52  ;;  %v619_v13 = vrot.slane %v618_v6, 4  ;;  %v2969_v28 = vsel %vm7349_vm5, %v5429_v63, %v2968_v1  ;;  %v2970_v8 = vrot.slane %v2968_v1, 4  ;;  %v5417_v50 = vld [vmem:[%s7071_s29 + $0x9c] sm:$0xe]  ;;  %v5354_v14 = vld [vmem:[%s7071_s29 + $0xa0] sm:$0xf] }
  0x93   : > { %v2965_v32 = vsel %vm7349_vm5, %v2963_v10, %v2964_v59  ;;  %v5430_v38 = vrot.slane %v5414_v24, 9  ;;  %v2975_v43 = vrot.slane %v7548_v11, 5  ;;  %v2978_v49 = vrot.slane %v7551_v17, 5  ;;  %v5355_v22 = vld [vmem:[%s7071_s29 + $0xa4] sm:$0x1] }
  0x94   : > { %v624_v34 = vsel %vm7103_vm2, %v619_v13, %v623_v56  ;;  %v5460_v33 = vcombine.low %v2962_v7, %v2965_v32  ;;  %v2972_v46 = vsel %vm7349_vm5, %v2970_v8, %v2971_v60  ;;  %v5431_v52 = vrot.slane %v5415_v30, 9  ;;  %v5357_v59 = vld [vmem:[%s7071_s29 + $0xac] sm:$0xf]  ;;  %v7587_v61 = vld [vmem:[%s7071_s29 + $0x10] sm:$0xf] }
  0x95   : > { %v5156_v0 = vcombine.low %v614_v19, %v624_v34  ;;  %v5461_v20 = vcombine.low %v2969_v28, %v2972_v46  ;;  %v2982_v53 = vrot.slane %v5348_v15, 5  ;;  %v2985_v45 = vrot.slane %v5349_v26, 5  ;;  %v6815_v24 = vld [vmem:[%s7071_s29 + $0xc] sm:$0xf]  ;;  %v6817_v8 = vld [vmem:[%s7071_s29 + $0x18] sm:$0xf] }
  0x96   : > { %6200 = vmatmul.mubr.bf16.gmra.mrb[12].mxu0 %v5460_v33  ;;  %v2976_v51 = vsel %vm7349_vm5, %v5430_v38, %v2975_v43  ;;  %v2977_v55 = vrot.slane %v2975_v43, 4  ;;  %v2989_v58 = vrot.slane %v5351_v39, 5  ;;  %v5166_v6 = vcombine.low %v6815_v24, %v7587_v61  ;;  %v6735_v19 = vld [vmem:[%s8894_s1 + $0x88] sm:$0xff]   ;;  %v7599_v15 = vld [vmem:[%s7071_s29 + $0x1c] sm:$0xf] }
  0x97   : > { %5976 = vmatmul.mubr.bf16.gmra.mrb[28].mxu1 %v5156_v0  ;;  %6203 = vmatprep.mubr.bf16.mxu0 %v5461_v20  ;;  %v2983_v56 = vsel %vm7349_vm5, %v5431_v52, %v2982_v53  ;;  %v2984_v57 = vrot.slane %v2982_v53, 4  ;;  %v5432_v1 = vrot.slane %v5416_v42, 9  ;;  %v2992_v7 = vrot.slane %v5352_v23, 5  ;;  %v5358_v30 = vld [vmem:[%s7071_s29 + $0xb0] sm:$0x1] }
  0x98   : > { %5995 = vmatprep.mubr.bf16.mxu1 %v5165_v18  ;;  %v2979_v63 = vsel %vm7349_vm5, %v2977_v55, %v2978_v49  ;;  %v2991_v13 = vrot.slane %v2989_v58, 4  ;;  %v5433_v28 = vrot.slane %v5417_v50, 9  ;;  %v5167_v32 = vcombine.low %v6817_v8, %v7599_v15  ;;  %v5418_v34 = vld [vmem:[%s7071_s29 + $0xa8] sm:$0xe]  ;;  %v5360_v33 = vld [vmem:[%s7071_s29 + $0xb8] sm:$0xf] }
  0x99   : > { %v5462_v10 = vcombine.low %v2976_v51, %v2979_v63  ;;  %v2986_v60 = vsel %vm7349_vm5, %v2984_v57, %v2985_v45  ;;  %v2996_v18 = vrot.slane %v5354_v14, 5  ;;  %v2999_v26 = vrot.slane %v5355_v22, 5  ;;  %v5361_v20 = vld [vmem:[%s7071_s29 + $0xbc] sm:$0x1]  ;;  %v5419_v23 = vld [vmem:[%s7071_s29 + $0xb4] sm:$0xe] }
  0x9a   : > { %v5463_v36 = vcombine.low %v2983_v56, %v2986_v60  ;;  %v3003_v38 = vrot.slane %v5357_v59, 5  ;;  %v2990_v39 = vsel %vm7349_vm5, %v5432_v1, %v2989_v58  ;;  %v2993_v0 = vsel %vm7349_vm5, %v2991_v13, %v2992_v7  ;;  %v6739_v50 = vld [vmem:[%s8894_s1 + $0x90] sm:$0xff]   ;;  %v5363_v53 = vld [vmem:[%s7071_s29 + $0xc4] sm:$0xf]  ;;  %v7622_v51 = vld [vmem:[%s7071_s29 + $0x28] sm:$0xf] }
  0x9b   : > { %v2998_v46 = vrot.slane %v2996_v18, 4  ;;  %v2997_v42 = vsel %vm7349_vm5, %v5433_v28, %v2996_v18  ;;  %v3010_v49 = vrot.slane %v5360_v33, 5  ;;  %v5434_v52 = vrot.slane %v5418_v34, 9  ;;  %v6819_v22 = vld [vmem:[%s7071_s29 + $0x24] sm:$0xf]  ;;  %v6743_v1 = vld [vmem:[%s8894_s1 + $0x98] sm:$0xff]  }
  0x9c   : > { %v5464_v45 = vcombine.low %v2990_v39, %v2993_v0  ;;  %v3005_v14 = vrot.slane %v3003_v38, 4  ;;  %v5168_v55 = vcombine.low %v6819_v22, %v7622_v51  ;;  %v6821_v57 = vld [vmem:[%s7071_s29 + $0x30] sm:$0xf]  ;;  %v7627_v58 = vld [vmem:[%s7071_s29 + $0x34] sm:$0xf]  ;;  %v5435_v24 = vrot.slane %v5419_v23, 9 }
  0x9d   : > { %v3000_v43 = vsel %vm7349_vm5, %v2998_v46, %v2999_v26  ;;  %v5169_v59 = vcombine.low %v6821_v57, %v7627_v58  ;;  %v3013_v63 = vrot.slane %v5361_v20, 5  ;;  %v5420_v7 = vld [vmem:[%s7071_s29 + $0xc0] sm:$0xe]  ;;  %v3004_v60 = vsel %vm7349_vm5, %v5434_v52, %v3003_v38  ;;  %v5364_v8 = vld [vmem:[%s7071_s29 + $0xc8] sm:$0x1]  ;;  %v6746_v22 = vld [vmem:[%s7071_s29 + $0x18] sm:$0xff]  }
  0x9e   : > { %6204 = vmatmul.mubr.bf16.gmra.mrb[16].mxu0 %v5462_v10  ;;  %v5465_v56 = vcombine.low %v2997_v42, %v3000_v43  ;;  %v3017_v10 = vrot.slane %v5363_v53, 5  ;;  %v3011_v13 = vsel %vm7349_vm5, %v5435_v24, %v3010_v49  ;;  %v5436_v18 = vrot.slane %v5420_v7, 9  ;;  %v6823_v26 = vld [vmem:[%s7071_s29 + $0x3c] sm:$0xf]  ;;  %v6825_v39 = vld [vmem:[%s7071_s29 + $0x48] sm:$0xf] }
  0x9f   : > { %5996 = vmatmul.mubr.bf16.vlgmr.msra.gmra.mrb[0].mxu1 %v5166_v6  ;;  %6207 = vmatprep.mubr.bf16.mxu0 %v5463_v36  ;;  %v3012_v6 = vrot.slane %v3010_v49, 4  ;;  %v3020_v38 = vrot.slane %v5364_v8, 5  ;;  %v7653_v0 = vld [vmem:[%s7071_s29 + $0x4c] sm:$0xf]  ;;  %v6760_v49 = vld [vmem:[%s8894_s1 + $0xb0] sm:$0xff]   ;;  %v2370_v52 = vshrl.u32 %v7548_v11, 16 }
  0xa0   : > { %6028 = vmatpush3.bf16.msra.mxu1 %v7273_v4  ;;  %5999 = vmatprep.mubr.bf16.mxu1 %v5167_v32  ;;  %v3006_v4 = vrot.slane %v5358_v30, 5  ;;  %v6748_v32 = vld [vmem:[%s8894_s1 + $0xa0] sm:$0xff]   ;;  %v3019_v46 = vrot.slane %v3017_v10, 4  ;;  %v5171_v20 = vcombine.low %v6825_v39, %v7653_v0  ;;  %v6754_v23 = vld [vmem:[%s8894_s1 + $0xa8] sm:$0xff]   ;;  %v3018_v42 = vsel %vm7349_vm5, %v5436_v18, %v3017_v10  ;;  %v6752_v18 = vld [vmem:[%s7071_s29 + $0x30] sm:$0xff]  }
  0xa1   : > { %6029 = vmatprep.subr.bf16.mxu1 %v6735_v19  ;;  %v3014_v28 = vsel %vm7349_vm5, %v3012_v6, %v3013_v63  ;;  %v7648_v30 = vld [vmem:[%s7071_s29 + $0x40] sm:$0xf]  ;;  %v7681_v57 = vrot.slane %v2370_v52, 4  ;;  %v6749_v6 = vld [vmem:[%s7071_s29 + $0x24] sm:$0xff]   ;;  %v1280_v7 = vrot.slane %v7587_v61, 5  ;;  %v2376_v8 = vshll.u32 %v7551_v17, 16 }
  0xa2   : > { %v5170_v34 = vcombine.low %v6823_v26, %v7648_v30  ;;  %v5467_v33 = vcombine.low %v3011_v13, %v3014_v28  ;;  %v3021_v43 = vsel %vm7349_vm5, %v3019_v46, %v3020_v38  ;;  %v1220_v63 = vld [vmem:[%s7071_s29] sm:$0xe]  ;;  %v1221_v10 = vld [vmem:[%s7071_s29 + $0xc] sm:$0xe]  ;;  %v1287_v13 = vrot.slane %v7599_v15, 5 }
  0xa3   : > { %v5468_v53 = vcombine.low %v3018_v42, %v3021_v43  ;;  %v1223_v61 = vld [vmem:[%s7071_s29 + $0x24] sm:$0xe]  ;;  %v5176_v15 = vcombine.low %v7401_v16, %v7409_v40  ;;  %v5177_v26 = vcombine.low %v7430_v2, %v7433_v3  ;;  %v5189_v17 = vrot.slane %v1220_v63, 9  ;;  %v6831_v38 = vld [vmem:[%s7071_s29 + $0x20] sm:$0x1]  ;;  %v6761_v2 = vld [vmem:[%s7071_s29 + $0x54] sm:$0xff]  }
  0xa4   : > { %6030 = vmatpush3.bf16.msra.mxu1 %v6735_v19  ;;  %v3007_v19 = vsel %vm7349_vm5, %v3005_v14, %v3006_v4  ;;  %v7670_v14 = vld [vmem:[%s7071_s29 + $0x58] sm:$0xf]  ;;  %v1289_v46 = vrot.slane %v1287_v13, 4  ;;  %v1290_v39 = vrot.slane %v6831_v38, 5  ;;  %v6832_v43 = vld [vmem:[%s7071_s29 + $0x2c] sm:$0x1] }
  0xa5   : > { %6031 = vmatprep.subr.bf16.mxu1 %v6739_v50  ;;  %v5466_v36 = vcombine.low %v3004_v60, %v3007_v19  ;;  %v7696_v60 = vld [vmem:[%s8894_s1 + $0xc0] sm:$0xff]   ;;  %v1222_v19 = vld [vmem:[%s7071_s29 + $0x18] sm:$0xe]  ;;  %v6835_v38 = vld [vmem:[%s7071_s29 + $0x50] sm:$0x1]  ;;  %v1322_v16 = vrot.slane %v7670_v14, 5 }
  0xa6   : > { %6208 = vmatmul.mubr.bf16.gmra.mrb[20].mxu0 %v5464_v45  ;;  %v6827_v45 = vld [vmem:[%s7071_s29 + $0x54] sm:$0xf]  ;;  %v7819_v40 = vld [vmem:[%s7071_s29 + $0x64] sm:$0xf] }
  0xa7   : > { %6000 = vmatmul.mubr.bf16.gmra.mrb[4].mxu1 %v5168_v55  ;;  %6211 = vmatprep.mubr.bf16.mxu0 %v5465_v56  ;;  %v5172_v4 = vcombine.low %v6827_v45, %v7670_v14  ;;  %v5173_v55 = vcombine.low %v7327_v25, %v7330_v35  ;;  %v6766_v56 = vld [vmem:[%s8894_s1 + $0xb8] sm:$0xff]   ;;  %v6830_v25 = vld [vmem:[%s7071_s29 + $0x14] sm:$0x1]  ;;  %v6764_v3 = vld [vmem:[%s7071_s29 + $0x60] sm:$0xff]  }
  0xa8   : > { %6003 = vmatprep.mubr.bf16.mxu1 %v5169_v59  ;;  %6032 = vmatpush3.bf16.msra.mxu1 %v6739_v50  ;;  %v2366_v50 = vshll.u32 %v7548_v11, 16  ;;  %v7684_v59 = vld [vmem:[%s7071_s29 + $0x8] sm:$0x1]  ;;  %v1283_v35 = vrot.slane %v6830_v25, 5 }
  0xa9   : > { %6033 = vmatprep.subr.bf16.mxu1 %v6743_v1  ;;  %v1276_v24 = vrot.slane %v7684_v59, 5 }
  0xaa   : > { %v7679_v11 = vrot.slane %v2366_v50, 5 }
  0xac   : > { %6034 = vmatpush3.bf16.msra.mxu1 %v6743_v1  ;;  %v1273_v1 = vrot.slane %v7563_v62, 5  ;;  %v5174_v62 = vcombine.low %v7345_v5, %v7357_v21  ;;  %v5190_v21 = vrot.slane %v1221_v10, 9  ;;  %v5549_v10 = vld [vmem:[%s7071_s29 + $0x18] sm:$0xf] }
  0xad   : > { %6035 = vmatprep.subr.bf16.mxu1 %v6748_v32 }
  0xae   : > { %6212 = vmatmul.mubr.bf16.gmra.mrb[24].mxu0 %v5466_v36  ;;  %v5175_v36 = vcombine.low %v7368_v47, %v7379_v54  ;;  %v1275_v5 = vrot.slane %v1273_v1, 4  ;;  %v6756_v47 = vld [vmem:[%s8894_s1 + $0x1c8] sm:$0xff]   ;;  %v5191_v54 = vrot.slane %v1222_v19, 9  ;;  %v7739_v59 = vsel %vm7349_vm5, %v5189_v17, %v1273_v1  ;;  %v5550_v19 = vld [vmem:[%s7071_s29 + $0x1c] sm:$0xf] }
  0xaf   : > { %6004 = vmatmul.mubr.bf16.gmra.mrb[8].mxu1 %v5170_v34  ;;  %6215 = vmatprep.mubr.bf16.mxu0 %v5467_v33  ;;  %v1301_v34 = vrot.slane %v7627_v58, 5  ;;  %v1282_v33 = vrot.slane %v1280_v7, 4  ;;  %v5192_v58 = vrot.slane %v1223_v61, 9  ;;  %v1315_v1 = vrot.slane %v7653_v0, 5  ;;  %v6758_v0 = vld [vmem:[%s7071_s29 + $0x48] sm:$0xff]  }
  0xb0   : > { %6007 = vmatprep.mubr.bf16.mxu1 %v5171_v20  ;;  %6036 = vmatpush3.bf16.msra.mxu1 %v6748_v32  ;;  %v1294_v32 = vrot.slane %v7622_v51, 5  ;;  %v1224_v51 = vld [vmem:[%s7071_s29 + $0x30] sm:$0xe]  ;;  %v5178_v20 = vcombine.low %v7451_v31, %v7460_v48  ;;  %v7747_v25 = vsel %vm7349_vm5, %v1275_v5, %v1276_v24  ;;  %v7755_v63 = vsel %vm7349_vm5, %v5191_v54, %v1287_v13  ;;  %v1226_v13 = vld [vmem:[%s7071_s29 + $0x48] sm:$0xe] }
  0xb1   : > { %6037 = vmatprep.subr.bf16.mxu1 %v6754_v23  ;;  %v5193_v50 = vrot.slane %v1224_v51, 9  ;;  %v1303_v52 = vrot.slane %v1301_v34, 4  ;;  %v3780_v5 = vshrl.u32 %v5549_v10, 16  ;;  %v3793_v51 = vshrl.u32 %v5550_v19, 16  ;;  %v6767_v48 = vld [vmem:[%s7071_s29 + $0x6c] sm:$0xff]  }
  0xb2   : > { %v1296_v42 = vrot.slane %v1294_v32, 4  ;;  %v7767_v24 = vsel %vm7349_vm5, %v5192_v58, %v1294_v32  ;;  %v6834_v32 = vld [vmem:[%s7071_s29 + $0x44] sm:$0x1]  ;;  %v5195_v54 = vrot.slane %v1226_v13, 9  ;;  %v5553_v13 = vld [vmem:[%s7071_s29 + $0x28] sm:$0xf] }
  0xb3   : > { %v7777_v61 = vsel %vm7349_vm5, %v5193_v50, %v1301_v34  ;;  %v1311_v17 = vrot.slane %v6834_v32, 5  ;;  %v5551_v50 = vld [vmem:[%s7071_s29 + $0x20] sm:$0x1]  ;;  %v1228_v32 = vld [vmem:[%s7071_s29 + $0x60] sm:$0xe] }
  0xb4   : > { %6038 = vmatpush3.bf16.msra.mxu1 %v6754_v23  ;;  %v5179_v23 = vcombine.low %v7485_v27, %v7488_v29 }
  0xb5   : > { %6039 = vmatprep.subr.bf16.mxu1 %v6760_v49 }
  0xb6   : > { %6216 = vmatmul.mubr.bf16.gmra.mrb[28].mxu0 %v5468_v53  ;;  %v6833_v53 = vld [vmem:[%s7071_s29 + $0x38] sm:$0x1] }
  0xb7   : > { %6008 = vmatmul.mubr.bf16.gmra.mrb[12].mxu1 %v5172_v4  ;;  %6235 = vmatprep.mubr.bf16.mxu0 %v6746_v22  ;;  %v1304_v45 = vrot.slane %v6833_v53, 5  ;;  %v1225_v4 = vld [vmem:[%s7071_s29 + $0x3c] sm:$0xe]  ;;  %v1308_v22 = vrot.slane %v7648_v30, 5  ;;  %v7743_v30 = vsel %vm7349_vm5, %v5190_v21, %v1280_v7  ;;  %v3783_v21 = vshll.u32 %v5549_v10, 16  ;;  %v6772_v53 = vld [vmem:[%s8894_s1 + $0x1e0] sm:$0xff]  }
  0xb8   : > { %6011 = vmatprep.mubr.bf16.mxu1 %v5173_v55  ;;  %6040 = vmatpush3.bf16.msra.mxu1 %v6760_v49  ;;  %v1297_v49 = vrot.slane %v6832_v43, 5  ;;  %v7730_v55 = vrot.slane %v2376_v8, 5  ;;  %v6755_v7 = vld [vmem:[%s7071_s29 + $0x3c] sm:$0xff]   ;;  %v7763_v8 = vsel %vm7349_vm5, %v1289_v46, %v1290_v39  ;;  %v1317_v46 = vrot.slane %v1315_v1, 4  ;;  %v5555_v43 = vld [vmem:[%s7071_s29 + $0x30] sm:$0xf] }
  0xb9   : > { %6041 = vmatprep.subr.bf16.mxu1 %v6766_v56  ;;  %v1318_v39 = vrot.slane %v6835_v38, 5  ;;  %v3782_v10 = vrot.slane %v3780_v5, 4 }
  0xba   : > { %8916 = vst [vmem:[#allocation5_spill] sm:$0xff] %v7730_v55 }
  0xbc   : > { %6042 = vmatpush3.bf16.msra.mxu1 %v6766_v56  ;;  %v6762_v56 = vld [vmem:[%s8894_s1 + $0x1d0] sm:$0xff]  }
  0xbd   : > { %6075 = vmatprep.subr.bf16.mxu1 %v7696_v60 }
  0xbe   : > { %6236 = vmatmul.mubr.bf16.vlgmr.msra.gmra.mrb[0].mxu0 %v6749_v6  ;;  %v7751_v6 = vsel %vm7349_vm5, %v1282_v33, %v1283_v35  ;;  %v7771_v35 = vsel %vm7349_vm5, %v1296_v42, %v1297_v49  ;;  %v3789_v33 = vshll.u32 %v5550_v19, 16  ;;  %v3785_v19 = vrot.slane %v3783_v21, 5  ;;  %v1229_v21 = vld [vmem:[%s7071_s29 + $0x6c] sm:$0xe] }
  0xbf   : > { %6012 = vmatmul.mubr.bf16.gmra.mrb[16].mxu1 %v5174_v62  ;;  %6268 = vmatpush3.bf16.msra.mxu0 %v7535_v44  ;;  %v5194_v62 = vrot.slane %v1225_v4, 9  ;;  %v5198_v58 = vrot.slane %v1229_v21, 9 }
  0xc0   : > { %6015 = vmatprep.mubr.bf16.mxu1 %v5175_v36  ;;  %6239 = vmatprep.mubr.bf16.mxu0 %v6752_v18  ;;  %v7781_v36 = vsel %vm7349_vm5, %v1303_v52, %v1304_v45  ;;  %v1310_v18 = vrot.slane %v1308_v22, 4  ;;  %v5552_v52 = vld [vmem:[%s7071_s29 + $0x24] sm:$0xf]  ;;  %v3817_v45 = vshrl.u32 %v5553_v13, 16 }
  0xc1   : > { %6269 = vmatprep.subr.bf16.mxu0 %v6756_v47  ;;  %v7798_v49 = vsel %vm7349_vm5, %v5194_v62, %v1308_v22  ;;  %v7815_v22 = vld [vmem:[%s7071_s29 + $0x54] sm:$0xe]  ;;  %v3795_v62 = vrot.slane %v3793_v51, 4  ;;  %v3804_v38 = vshrl.u32 %v5552_v52, 16  ;;  %v3807_v28 = vshll.u32 %v5552_v52, 16 }
  0xc2   : > { %v7812_v4 = vsel %vm7349_vm5, %v1310_v18, %v1311_v17  ;;  %v3799_v17 = vshll.u32 %v5551_v50, 16  ;;  %v5196_v5 = vrot.slane %v7815_v22, 9  ;;  %v6776_v50 = vld [vmem:[%s8894_s1 + $0x1e8] sm:$0xff]   ;;  %v1324_v52 = vrot.slane %v1322_v16, 4 }
  0xc3   : > { %6270 = vmatpush3.bf16.msra.mxu0 %v6756_v47  ;;  %v6768_v47 = vld [vmem:[%s8894_s1 + $0x1d8] sm:$0xff]   ;;  %v3786_v22 = vor.u32 %v3785_v19, %v3782_v10  ;;  %v3806_v34 = vrot.slane %v3804_v38, 4  ;;  %v3809_v44 = vrot.slane %v3807_v28, 5  ;;  %v6840_v10 = vld [vmem:[%s7071_s29 + $0x74] sm:$0x1]  ;;  %v3819_v28 = vrot.slane %v3817_v45, 4 }
  0xc4   : > { %6271 = vmatprep.subr.bf16.mxu0 %v6762_v56  ;;  %v7853_v42 = vrot.slane %v3799_v17, 5  ;;  %v1339_v19 = vrot.slane %v6840_v10, 5  ;;  %v3828_v38 = vshrl.u32 %v5555_v43, 16  ;;  %v7878_v27 = vsel %vm7349_vm5, %v5196_v5, %v1322_v16 }
  0xc5   : > { %v3787_v21 = vrot.slane %v3786_v22, 4 }
  0xc6   : > { %6240 = vmatmul.mubr.bf16.gmra.mrb[4].mxu0 %v6755_v7  ;;  %v7825_v7 = vrot.slane %v3789_v33, 5  ;;  %v6838_v33 = vld [vmem:[%s7071_s29 + $0x70] sm:$0xf] }
  0xc7   : > { %6016 = vmatmul.mubr.bf16.gmra.mrb[20].mxu1 %v5176_v15  ;;  %6243 = vmatprep.mubr.bf16.mxu0 %v6758_v0  ;;  %v1329_v15 = vrot.slane %v7819_v40, 5  ;;  %v6837_v0 = vld [vmem:[%s7071_s29 + $0x5c] sm:$0x1]  ;;  %v1336_v51 = vrot.slane %v6838_v33, 5 }
  0xc8   : > { %6019 = vmatprep.mubr.bf16.mxu1 %v5177_v26  ;;  %6272 = vmatpush3.bf16.msra.mxu0 %v6762_v56  ;;  %v1325_v18 = vrot.slane %v6837_v0, 5  ;;  %v7834_v26 = vsel %vm7349_vm5, %v5195_v54, %v1315_v1  ;;  %v7838_v56 = vsel %vm7349_vm5, %v1317_v46, %v1318_v39  ;;  %v6839_v1 = vld [vmem:[%s7071_s29 + $0x68] sm:$0x1]  ;;  %v3813_v0 = vshll.u32 %v5553_v13, 16  ;;  %v6784_v40 = vld [vmem:[%s8894_s1 + $0x1f8] sm:$0xff]  }
  0xc9   : > { %6273 = vmatprep.subr.bf16.mxu0 %v6768_v47  ;;  %v1332_v54 = vrot.slane %v6839_v1, 5  ;;  %v5197_v46 = vrot.slane %v1228_v32, 9  ;;  %v1331_v39 = vrot.slane %v1329_v15, 4  ;;  %v3796_v33 = vor.u32 %v3795_v62, %v7825_v7  ;;  %v5556_v1 = vld [vmem:[%s7071_s29 + $0x34] sm:$0xf] }
  0xca   : > { %v1338_v32 = vrot.slane %v1336_v51, 4  ;;  %v5554_v62 = vld [vmem:[%s7071_s29 + $0x2c] sm:$0x1]  ;;  %v7865_v17 = vrot.slane %v3813_v0, 5  ;;  %v3837_v13 = vshll.u32 %v5556_v1, 16  ;;  %v3841_v31 = vshrl.u32 %v5556_v1, 16 }
  0xcb   : > { %v3797_v10 = vrot.slane %v3796_v33, 4  ;;  %v7882_v29 = vsel %vm7349_vm5, %v1324_v52, %v1325_v18  ;;  %v7889_v45 = vsel %vm7349_vm5, %v5197_v46, %v1329_v15  ;;  %v7893_v14 = vsel %vm7349_vm5, %v1331_v39, %v1332_v54  ;;  %v1230_v18 = vld [vmem:[%s7071_s29 + $0x78] sm:$0xe] }
  0xcc   : > { %6274 = vmatpush3.bf16.msra.mxu0 %v6768_v47  ;;  %v7897_v16 = vsel %vm7349_vm5, %v5198_v58, %v1336_v51  ;;  %v7907_v15 = vsel %vm7349_vm5, %v1338_v32, %v1339_v19  ;;  %v3820_v5 = vor.u32 %v3819_v28, %v7865_v17  ;;  %v3830_v52 = vrot.slane %v3828_v38, 4  ;;  %v5558_v58 = vld [vmem:[%s7071_s29 + $0x3c] sm:$0xf]  ;;  %v5559_v51 = vld [vmem:[%s7071_s29 + $0x40] sm:$0xf] }
  0xcd   : > { %6275 = vmatprep.subr.bf16.mxu0 %v6772_v53  ;;  %v3792_v0 = vsel %vm7103_vm2, %v3787_v21, %v7825_v7  ;;  %v3802_v46 = vsel %vm7103_vm2, %v3797_v10, %v7853_v42  ;;  %v7918_v39 = vrot.slane %v3837_v13, 5  ;;  %v3843_v22 = vrot.slane %v3841_v31, 4  ;;  %v6842_v19 = vld [vmem:[%s7071_s29 + $0x80] sm:$0x1]  ;;  %v8077_v47 = vld [vmem:[%s7071_s29 + $0x68] sm:$0x1] }
  0xce   : > { %6244 = vmatmul.mubr.bf16.gmra.mrb[8].mxu0 %v6761_v2  ;;  %v3831_v2 = vshll.u32 %v5555_v43, 16  ;;  %v3823_v43 = vshll.u32 %v5554_v62, 16  ;;  %v5199_v32 = vrot.slane %v1230_v18, 9  ;;  %v1231_v62 = vld [vmem:[%s7071_s29 + $0x84] sm:$0xe]  ;;  %v3852_v28 = vshrl.u32 %v5558_v58, 16 }
  0xcf   : > { %6020 = vmatmul.mubr.bf16.gmra.mrb[24].mxu1 %v5178_v20  ;;  %6247 = vmatprep.mubr.bf16.mxu0 %v6764_v3  ;;  %v6780_v20 = vld [vmem:[%s8894_s1 + $0x1f0] sm:$0xff]   ;;  %v6841_v3 = vld [vmem:[%s7071_s29 + $0x7c] sm:$0xf]  ;;  %v3855_v7 = vshll.u32 %v5558_v58, 16  ;;  %v3861_v38 = vshll.u32 %v5559_v51, 16  ;;  %v8917_v42 = vcombine.low %v7508_v41, %v7513_v12  ;;  %v7929_v13 = vrot.slane %v3820_v5, 4 }
  0xd0   : > { %6023 = vmatprep.mubr.bf16.mxu1 %v5179_v23  ;;  %6276 = vmatpush3.bf16.msra.mxu0 %v6772_v53  ;;  %v3810_v23 = vor.u32 %v3809_v44, %v3806_v34  ;;  %v6769_v53 = vld [vmem:[%s7071_s29 + $0x78] sm:$0xff]   ;;  %v1343_v44 = vrot.slane %v6841_v3, 5  ;;  %v3833_v54 = vrot.slane %v3831_v2, 5  ;;  %v7922_v1 = vrot.slane %v3823_v43, 5  ;;  %v7934_v21 = vld [vmem:[%s8894_s1 + $0x200] sm:$0xff]   ;;  %8925 = vst [vmem:[#allocation8_spill] sm:$0xff] %v8077_v47 }
  0xd1   : > { %6277 = vmatprep.subr.bf16.mxu0 %v6776_v50  ;;  %v5557_v34 = vld [vmem:[%s7071_s29 + $0x38] sm:$0x1]  ;;  %v3865_v2 = vshrl.u32 %v5559_v51, 16  ;;  %v6771_v43 = vld [vmem:[%s7071_s29 + $0x84] sm:$0xff]   ;;  %v3844_v12 = vor.u32 %v3843_v22, %v7918_v39  ;;  %v3857_v58 = vrot.slane %v3855_v7, 5  ;;  %v7956_v51 = vrot.slane %v3861_v38, 5 }
  0xd2   : > { %v7920_v33 = vrot.slane %v3810_v23, 4  ;;  %v1345_v10 = vrot.slane %v1343_v44, 4  ;;  %v3834_v31 = vor.u32 %v3833_v54, %v3830_v52  ;;  %v8918_v23 = vcombine.low %v7739_v59, %v7747_v25  ;;  %v6843_v18 = vld [vmem:[%s7071_s29 + $0x88] sm:$0xf]  ;;  %v5560_v5 = vld [vmem:[%s7071_s29 + $0x44] sm:$0x1] }
  0xd3   : > { %v1350_v3 = vrot.slane %v6843_v18, 5  ;;  %v7947_v59 = vcombine.low %v3792_v0, %v3802_v46  ;;  %v5561_v52 = vld [vmem:[%s7071_s29 + $0x48] sm:$0xf]  ;;  %v3854_v54 = vrot.slane %v3852_v28, 4  ;;  %v3867_v22 = vrot.slane %v3865_v2, 4 }
  0xd4   : > { %6278 = vmatpush3.bf16.msra.mxu0 %v6776_v50  ;;  %v1346_v50 = vrot.slane %v6842_v19, 5  ;;  %v6773_v19 = vld [vmem:[%s7071_s29 + $0x90] sm:$0xff]   ;;  %v3816_v0 = vsel %vm7103_vm2, %v7920_v33, %v7865_v17  ;;  %v3835_v46 = vrot.slane %v3834_v31, 4  ;;  %v3826_v28 = vsel %vm7103_vm2, %v7929_v13, %v7922_v1  ;;  %v7978_v33 = vld [vmem:[%s7071_s29 + $0x58] sm:$0xf]  ;;  %v6774_v31 = vld [vmem:[%s8894_s1 + $0xc8] sm:$0xff]  }
  0xd5   : > { %6279 = vmatprep.subr.bf16.mxu0 %v6780_v20  ;;  %v3845_v38 = vrot.slane %v3844_v12, 4  ;;  %v1352_v2 = vrot.slane %v1350_v3, 4  ;;  %v5564_v17 = vld [vmem:[%s7071_s29 + $0x54] sm:$0xf]  ;;  %v3871_v1 = vshll.u32 %v5560_v5, 16  ;;  %v3876_v13 = vshrl.u32 %v5561_v52, 16 }
  0xd6   : > { %6248 = vmatmul.mubr.bf16.gmra.mrb[12].mxu0 %v6767_v48  ;;  %v3847_v48 = vshll.u32 %v5557_v34, 16  ;;  %v7974_v7 = vsel %vm7349_vm5, %v1345_v10, %v1346_v50  ;;  %v3879_v50 = vshll.u32 %v5561_v52, 16  ;;  %v3858_v10 = vor.u32 %v3857_v58, %v3854_v54  ;;  %v6775_v54 = vld [vmem:[%s7071_s29 + $0x9c] sm:$0xff]   ;;  %v6849_v41 = vld [vmem:[%s7071_s29 + $0xac] sm:$0xf] }
  0xd7   : > { %6024 = vmatmul.mubr.bf16.gmra.mrb[28].mxu1 %v8917_v42  ;;  %6251 = vmatprep.mubr.bf16.mxu0 %v6769_v53  ;;  %v5200_v53 = vrot.slane %v1231_v62, 9  ;;  %v6844_v42 = vld [vmem:[%s7071_s29 + $0x8c] sm:$0x1]  ;;  %v3909_v5 = vshll.u32 %v7978_v33, 16  ;;  %v8920_v52 = vcombine.low %v7755_v63, %v7763_v8  ;;  %v8014_v63 = vld [vmem:[%s7071_s29 + $0x50] sm:$0x1] }
  0xd8   : > { %6043 = vmatprep.mubr.bf16.mxu1 %v8918_v23  ;;  %6280 = vmatpush3.bf16.msra.mxu0 %v6780_v20  ;;  %v7953_v20 = vsel %vm7349_vm5, %v5199_v32, %v1343_v44  ;;  %v3849_v62 = vrot.slane %v3847_v48, 5  ;;  %v1353_v23 = vrot.slane %v6844_v42, 5  ;;  %v1232_v44 = vld [vmem:[%s7071_s29 + $0x90] sm:$0xe]  ;;  %v7966_v32 = vld [vmem:[%s7071_s29 + $0x4c] sm:$0xf]  ;;  %v3868_v48 = vor.u32 %v3867_v22, %v7956_v51 }
  0xd9   : > { %6281 = vmatprep.subr.bf16.mxu0 %v6784_v40  ;;  %v3885_v12 = vshll.u32 %v7966_v32, 16  ;;  %v3889_v18 = vshrl.u32 %v7966_v32, 16  ;;  %v8919_v42 = vcombine.low %v7743_v30, %v7751_v6  ;;  %v6778_v30 = vld [vmem:[%s8894_s1 + $0xd0] sm:$0xff]   ;;  %v3840_v6 = vsel %vm7103_vm2, %v3835_v46, %v7918_v39  ;;  %v6777_v8 = vld [vmem:[%s7071_s29 + $0xa8] sm:$0xff]   ;;  %v8021_v39 = vld [vmem:[%s7071_s29 + $0x5c] sm:$0x1] }
  0xda   : > { %v3850_v58 = vsel %vm7103_vm2, %v3845_v38, %v3849_v62  ;;  %v5201_v22 = vrot.slane %v1232_v44, 9  ;;  %v3881_v25 = vrot.slane %v3879_v50, 5  ;;  %8921 = vst [vmem:[#allocation6_spill] sm:$0xff] %v8021_v39  ;;  %v3859_v46 = vrot.slane %v3858_v10, 4 }
  0xdb   : > { %v3869_v62 = vrot.slane %v3868_v48, 4  ;;  %v8023_v38 = vrot.slane %v3885_v12, 5  ;;  %v8025_v34 = vrot.slane %v3909_v5, 5  ;;  %v8030_v50 = vcombine.low %v3816_v0, %v3826_v28  ;;  %v5567_v28 = vld [vmem:[%s7071_s29 + $0x60] sm:$0xf] }
  0xdc   : > { %6282 = vmatpush3.bf16.msra.mxu0 %v6784_v40  ;;  %v7986_v40 = vsel %vm7349_vm5, %v5200_v53, %v1350_v3  ;;  %v3900_v53 = vshrl.u32 %v5564_v17, 16  ;;  %v3903_v3 = vshll.u32 %v5564_v17, 16  ;;  %v6845_v17 = vld [vmem:[%s7071_s29 + $0x94] sm:$0xf]  ;;  %v8034_v48 = vcombine.low %v3840_v6, %v3850_v58 }
  0xdd   : > { %6315 = vmatprep.subr.bf16.mxu0 %v7934_v21  ;;  %v3895_v0 = vshll.u32 %v8014_v63, 16  ;;  %v3864_v6 = vsel %vm7103_vm2, %v3859_v46, %v7956_v51  ;;  %v8924_v46 = vcombine.low %v7777_v61, %v7781_v36 }
  0xde   : > { %6252 = vmatmul.mubr.bf16.gmra.mrb[16].mxu0 %v6771_v43  ;;  %v3913_v43 = vshrl.u32 %v7978_v33, 16  ;;  %v3902_v44 = vrot.slane %v3900_v53, 4  ;;  %v6846_v53 = vld [vmem:[%s7071_s29 + $0x98] sm:$0x1] }
  0xdf   : > { %6044 = vmatmul.mubr.bf16.vlgmr.msra.gmra.mrb[0].mxu1 %v8919_v42  ;;  %6255 = vmatprep.mubr.bf16.mxu0 %v6773_v19  ;;  %v8017_v19 = vrot.slane %v3871_v1, 5  ;;  %v1357_v42 = vrot.slane %v6845_v17, 5  ;;  %v6847_v17 = vld [vmem:[%s7071_s29 + $0xa0] sm:$0xf]  ;;  %v3897_v36 = vrot.slane %v3895_v0, 5 }
  0xe0   : > { %6076 = vmatpush3.bf16.msra.mxu1 %v7696_v60  ;;  %6047 = vmatprep.mubr.bf16.mxu1 %v8920_v52  ;;  %v8011_v60 = vsel %vm7349_vm5, %v1352_v2, %v1353_v23  ;;  %v3878_v52 = vrot.slane %v3876_v13, 4  ;;  %v3891_v23 = vrot.slane %v3889_v18, 4  ;;  %v3905_v2 = vrot.slane %v3903_v3, 5  ;;  %v6782_v13 = vld [vmem:[%s8894_s1 + $0xd8] sm:$0xff]  }
  0xe1   : > { %6077 = vmatprep.subr.bf16.mxu1 %v6774_v31  ;;  %v3915_v1 = vrot.slane %v3913_v43, 4  ;;  %v1233_v18 = vld [vmem:[%s7071_s29 + $0x9c] sm:$0xe]  ;;  %v1360_v3 = vrot.slane %v6846_v53, 5  ;;  %v8047_v43 = vld [vmem:[%s7071_s29 + $0x64] sm:$0xf] }
  0xe2   : > { %v3882_v5 = vor.u32 %v3881_v25, %v3878_v52  ;;  %8922 = vst [vmem:[#allocation7_spill] sm:$0xff] %v8047_v43  ;;  %v3892_v58 = vor.u32 %v3891_v23, %v8023_v38  ;;  %v1364_v12 = vrot.slane %v6847_v17, 5  ;;  %v8923_v25 = vcombine.low %v7767_v24, %v7771_v35  ;;  %v6779_v23 = vld [vmem:[%s7071_s29 + $0xb4] sm:$0xff]   ;;  %v6785_v24 = vld [vmem:[%s8894_s1 + $0xe0] sm:$0xff]   ;;  %v5570_v17 = vld [vmem:[%s7071_s29 + $0x6c] sm:$0xf] }
  0xe3   : > { %v1359_v52 = vrot.slane %v1357_v42, 4  ;;  %v3906_v53 = vor.u32 %v3905_v2, %v3902_v44  ;;  %v3916_v51 = vor.u32 %v3915_v1, %v8025_v34  ;;  %v3924_v35 = vshrl.u32 %v5567_v28, 16  ;;  %v6848_v2 = vld [vmem:[%s7071_s29 + $0xa4] sm:$0x1] }
  0xe4   : > { %6078 = vmatpush3.bf16.msra.mxu1 %v6774_v31  ;;  %v8041_v31 = vsel %vm7349_vm5, %v5201_v22, %v1357_v42  ;;  %v3919_v22 = vshll.u32 %v8021_v39, 16  ;;  %v3937_v42 = vshrl.u32 %v8047_v43, 16  ;;  %v3883_v61 = vrot.slane %v3882_v5, 4  ;;  %v8216_v39 = vld [vmem:[%s7071_s29 + $0x98] sm:$0x1] }
  0xe5   : > { %6079 = vmatprep.subr.bf16.mxu1 %v6778_v30  ;;  %v5202_v44 = vrot.slane %v1233_v18, 9  ;;  %v1367_v1 = vrot.slane %v6848_v2, 5  ;;  %v3907_v5 = vrot.slane %v3906_v53, 4  ;;  %v3917_v18 = vrot.slane %v3916_v51, 4  ;;  %8938 = vst [vmem:[#allocation17_spill] sm:$0xff] %v8216_v39 }
  0xe6   : > { %6256 = vmatmul.mubr.bf16.gmra.mrb[20].mxu0 %v6775_v54  ;;  %v3874_v54 = vsel %vm7103_vm2, %v3869_v62, %v8017_v19  ;;  %v3933_v19 = vshll.u32 %v8047_v43, 16  ;;  %v6781_v62 = vld [vmem:[%s7071_s29 + $0xc0] sm:$0xff]   ;;  %v3921_v10 = vrot.slane %v3919_v22, 5  ;;  %v8083_v43 = vsel %vm7349_vm5, %v1359_v52, %v1360_v3 }
  0xe7   : > { %6048 = vmatmul.mubr.bf16.gmra.mrb[4].mxu1 %v8923_v25  ;;  %6259 = vmatprep.mubr.bf16.mxu0 %v6777_v8  ;;  %v3927_v8 = vshll.u32 %v5567_v28, 16  ;;  %v3893_v25 = vrot.slane %v3892_v58, 4  ;;  %v1371_v28 = vrot.slane %v6849_v41, 5  ;;  %v8079_v55 = vcombine.low %v3864_v6, %v3874_v54  ;;  %v6787_v41 = vld [vmem:[%s8894_s1 + $0xe8] sm:$0xff]  }
  0xe8   : > { %6051 = vmatprep.mubr.bf16.mxu1 %v8924_v46  ;;  %6080 = vmatpush3.bf16.msra.mxu1 %v6778_v30  ;;  %v1234_v30 = vld [vmem:[%s7071_s29 + $0xa8] sm:$0xe]  ;;  %v1366_v46 = vrot.slane %v1364_v12, 4  ;;  %v3926_v0 = vrot.slane %v3924_v35, 4  ;;  %v8085_v58 = vrot.slane %v3933_v19, 5  ;;  %v3939_v22 = vrot.slane %v3937_v42, 4 }
  0xe9   : > { %6081 = vmatprep.subr.bf16.mxu1 %v6782_v13  ;;  %v3929_v2 = vrot.slane %v3927_v8, 5  ;;  %v3888_v3 = vsel %vm7103_vm2, %v3883_v61, %v8023_v38  ;;  %v8095_v6 = vsel %vm7349_vm5, %v5202_v44, %v1364_v12  ;;  %v3948_v54 = vshrl.u32 %v5570_v17, 16  ;;  %v6850_v38 = vld [vmem:[%s7071_s29 + $0xb0] sm:$0x1]  ;;  %v1235_v19 = vld [vmem:[%s7071_s29 + $0xb4] sm:$0xe] }
  0xea   : > { %v3951_v52 = vshll.u32 %v5570_v17, 16  ;;  %v3898_v53 = vsel %vm7103_vm2, %v3893_v25, %v3897_v36  ;;  %v8104_v51 = vsel %vm7349_vm5, %v1366_v46, %v1367_v1  ;;  %v5203_v35 = vrot.slane %v1234_v30, 9  ;;  %v8126_v30 = vld [vmem:[%s7071_s29 + $0x74] sm:$0x1]  ;;  %v6851_v25 = vld [vmem:[%s7071_s29 + $0xb8] sm:$0xf] }
  0xeb   : > { %v1374_v8 = vrot.slane %v6850_v38, 5  ;;  %v8927_v12 = vcombine.low %v7798_v49, %v7812_v4  ;;  %v3912_v42 = vsel %vm7103_vm2, %v3907_v5, %v8025_v34  ;;  %v3922_v61 = vsel %vm7103_vm2, %v3917_v18, %v3921_v10  ;;  %v6783_v4 = vld [vmem:[%s7071_s29 + $0xcc] sm:$0xff]   ;;  %8929 = vst [vmem:[#allocation10_spill] sm:$0xff] %v8126_v30  ;;  %v5576_v38 = vld [vmem:[%s7071_s29 + $0x84] sm:$0xf] }
  0xec   : > { %6082 = vmatpush3.bf16.msra.mxu1 %v6782_v13  ;;  %v8098_v13 = vld [vmem:[%s7071_s29 + $0x70] sm:$0xf]  ;;  %v1373_v36 = vrot.slane %v1371_v28, 4  ;;  %v3943_v44 = vshll.u32 %v8077_v47, 16  ;;  %v8928_v49 = vcombine.low %v7834_v26, %v7838_v56  ;;  %v3940_v1 = vor.u32 %v3939_v22, %v8085_v58  ;;  %v8143_v22 = vld [vmem:[%s7071_s29 + $0x7c] sm:$0xf] }
  0xed   : > { %6083 = vmatprep.subr.bf16.mxu1 %v6785_v24  ;;  %8926 = vst [vmem:[#allocation9_spill] sm:$0xff] %v8098_v13  ;;  %v3957_v34 = vshll.u32 %v8098_v13, 16  ;;  %v3961_v10 = vshrl.u32 %v8098_v13, 16  ;;  %v5204_v17 = vrot.slane %v1235_v19, 9  ;;  %v1378_v46 = vrot.slane %v6851_v25, 5  ;;  %8930 = vst [vmem:[#allocation11_spill] sm:$0xff] %v8143_v22 }
  0xee   : > { %6260 = vmatmul.mubr.bf16.gmra.mrb[24].mxu0 %v6779_v23  ;;  %v6789_v23 = vld [vmem:[%s8894_s1 + $0xf0] sm:$0xff]   ;;  %v3950_v26 = vrot.slane %v3948_v54, 4  ;;  %v3953_v56 = vrot.slane %v3951_v52, 5  ;;  %v8134_v18 = vcombine.low %v3888_v3, %v3898_v53  ;;  %v8146_v19 = vcombine.low %v3912_v42, %v3922_v61  ;;  %v6852_v3 = vld [vmem:[%s7071_s29 + $0xbc] sm:$0x1] }
  0xef   : > { %6052 = vmatmul.mubr.bf16.gmra.mrb[8].mxu1 %v8927_v12  ;;  %6263 = vmatprep.mubr.bf16.mxu0 %v6781_v62  ;;  %v3930_v62 = vor.u32 %v3929_v2, %v3926_v0  ;;  %v8140_v2 = vsel %vm7349_vm5, %v5203_v35, %v1371_v28  ;;  %v8150_v54 = vsel %vm7349_vm5, %v1373_v36, %v1374_v8  ;;  %v8152_v52 = vrot.slane %v3943_v44, 5  ;;  %v6791_v12 = vld [vmem:[%s8894_s1 + $0xf8] sm:$0xff]   ;;  %v8159_v28 = vld [vmem:[%s7071_s29 + $0x88] sm:$0xf] }
  0xf0   : > { %6055 = vmatprep.mubr.bf16.mxu1 %v8928_v49  ;;  %6084 = vmatpush3.bf16.msra.mxu1 %v6785_v24  ;;  %v5573_v24 = vld [vmem:[%s7071_s29 + $0x78] sm:$0xf]  ;;  %v1381_v53 = vrot.slane %v6852_v3, 5  ;;  %8931 = vst [vmem:[#allocation12_spill] sm:$0xff] %v8159_v28  ;;  %v8163_v42 = vrot.slane %v3940_v1, 4  ;;  %v8165_v61 = vrot.slane %v3957_v34, 5  ;;  %v8169_v36 = vsel %vm7349_vm5, %v5204_v17, %v1378_v46 }
  0xf1   : > { %6085 = vmatprep.subr.bf16.mxu1 %v6787_v41  ;;  %v8161_v35 = vrot.slane %v3930_v62, 4  ;;  %v3963_v8 = vrot.slane %v3961_v10, 4  ;;  %v1380_v44 = vrot.slane %v1378_v46, 4  ;;  %v3954_v49 = vor.u32 %v3953_v56, %v3950_v26  ;;  %v5579_v3 = vld [vmem:[%s7071_s29 + $0x90] sm:$0xf] }
  0xf2   : > { %v3967_v25 = vshll.u32 %v8126_v30, 16  ;;  %v3975_v0 = vshll.u32 %v5573_v24, 16  ;;  %v3981_v62 = vshll.u32 %v8143_v22, 16  ;;  %v3985_v1 = vshrl.u32 %v8143_v22, 16  ;;  %v8176_v34 = vld [vmem:[%s7071_s29 + $0x94] sm:$0xf] }
  0xf3   : > { %8932 = vst [vmem:[#allocation13_spill] sm:$0xff] %v8176_v34  ;;  %v8933_v10 = vcombine.low %v7878_v27, %v7882_v29  ;;  %v3996_v17 = vshrl.u32 %v5576_v38, 16  ;;  %v3999_v46 = vshll.u32 %v5576_v38, 16  ;;  %v4009_v26 = vshrl.u32 %v8159_v28, 16  ;;  %v5582_v38 = vld [vmem:[%s7071_s29 + $0x9c] sm:$0xf] }
  0xf4   : > { %6086 = vmatpush3.bf16.msra.mxu1 %v6787_v41  ;;  %v3972_v41 = vshrl.u32 %v5573_v24, 16  ;;  %v8934_v56 = vcombine.low %v7889_v45, %v7893_v14  ;;  %v3964_v29 = vor.u32 %v3963_v8, %v8165_v61  ;;  %v4023_v24 = vshll.u32 %v5579_v3, 16  ;;  %v8198_v45 = vld [vmem:[%s7071_s29 + $0x80] sm:$0x1] }
  0xf5   : > { %6087 = vmatprep.subr.bf16.mxu1 %v6789_v23  ;;  %v8195_v5 = vrot.slane %v3967_v25, 5  ;;  %8935 = vst [vmem:[#allocation14_spill] sm:$0xff] %v8198_v45  ;;  %v4029_v14 = vshll.u32 %v8176_v34, 16  ;;  %v3977_v27 = vrot.slane %v3975_v0, 5  ;;  %v3987_v8 = vrot.slane %v3985_v1, 4 }
  0xf6   : > { %6264 = vmatmul.mubr.bf16.gmra.mrb[28].mxu0 %v6783_v4  ;;  %v4005_v4 = vshll.u32 %v8159_v28, 16  ;;  %v8202_v28 = vrot.slane %v3981_v62, 5  ;;  %v8208_v22 = vld [vmem:[%s7071_s29 + $0xa0] sm:$0xf]  ;;  %v3998_v25 = vrot.slane %v3996_v17, 4  ;;  %v4001_v30 = vrot.slane %v3999_v46, 5 }
  0xf7   : > { %6056 = vmatmul.mubr.bf16.gmra.mrb[12].mxu1 %v8933_v10  ;;  %6283 = vmatprep.mubr.bf16.mxu0 %v7947_v59  ;;  %v4020_v59 = vshrl.u32 %v5579_v3, 16  ;;  %v8193_v10 = vrot.slane %v3954_v49, 4  ;;  %v8205_v3 = vld [vmem:[%s7071_s29 + $0x8c] sm:$0x1]  ;;  %8937 = vst [vmem:[#allocation16_spill] sm:$0xff] %v8208_v22  ;;  %v4011_v47 = vrot.slane %v4009_v26, 4  ;;  %v8225_v62 = vsel %vm7349_vm5, %v1380_v44, %v1381_v53 }
  0xf8   : > { %6059 = vmatprep.mubr.bf16.mxu1 %v8934_v56  ;;  %6088 = vmatpush3.bf16.msra.mxu1 %v6789_v23  ;;  %v4033_v23 = vshrl.u32 %v8176_v34, 16  ;;  %v3974_v56 = vrot.slane %v3972_v41, 4  ;;  %8936 = vst [vmem:[#allocation15_spill] sm:$0xff] %v8205_v3  ;;  %v6788_v49 = vld [vmem:[%s8894_s1 + $0x208] sm:$0xff]   ;;  %v8213_v13 = vrot.slane %v4005_v4, 5  ;;  %v4025_v34 = vrot.slane %v4023_v24, 5 }
  0xf9   : > { %6089 = vmatprep.subr.bf16.mxu1 %v6791_v12  ;;  %v5585_v41 = vld [vmem:[%s7071_s29 + $0xa8] sm:$0xf]  ;;  %v4022_v1 = vrot.slane %v4020_v59, 4  ;;  %v8230_v17 = vld [vmem:[%s8894_s1 + $0x100] sm:$0xff]   ;;  %v8233_v46 = vrot.slane %v4029_v14, 5  ;;  %v4044_v26 = vshrl.u32 %v5582_v38, 16  ;;  %v8940_v24 = vcombine.low %v7897_v16, %v7907_v15 }
  0xfa   : > { %8939 = vst [vmem:[#allocation18_spill] sm:$0xff] %v8230_v17  ;;  %v4035_v4 = vrot.slane %v4033_v23, 4  ;;  %v4047_v0 = vshll.u32 %v5582_v38, 16  ;;  %v8236_v53 = vrot.slane %v3964_v29, 4  ;;  %v4053_v44 = vshll.u32 %v8208_v22, 16  ;;  %v6790_v16 = vld [vmem:[%s8894_s1 + $0x210] sm:$0xff]  }
  0xfb   : > { %v4057_v59 = vshrl.u32 %v8208_v22, 16  ;;  %v3978_v14 = vor.u32 %v3977_v27, %v3974_v56  ;;  %v3988_v38 = vor.u32 %v3987_v8, %v8202_v28  ;;  %v4002_v23 = vor.u32 %v4001_v30, %v3998_v25  ;;  %v8248_v29 = vld [vmem:[%s7071_s29 + $0xac] sm:$0xf]  ;;  %v8261_v25 = vld [vmem:[%s7071_s29 + $0xa4] sm:$0x1] }
  0xfc   : > { %6090 = vmatpush3.bf16.msra.mxu1 %v6791_v12  ;;  %v3991_v12 = vshll.u32 %v8198_v45, 16  ;;  %8941 = vst [vmem:[#allocation19_spill] sm:$0xff] %v8248_v29  ;;  %v4012_v15 = vor.u32 %v4011_v47, %v8213_v13  ;;  %v4068_v27 = vshrl.u32 %v5585_v41, 16  ;;  %v4071_v30 = vshll.u32 %v5585_v41, 16 }
  0xfd   : > { %6363 = vmatprep.subr.bf16.mxu1 %v8230_v17  ;;  %v8942_v17 = vcombine.low %v7953_v20, %v7974_v7  ;;  %v4026_v56 = vor.u32 %v4025_v34, %v4022_v1  ;;  %v4036_v8 = vor.u32 %v4035_v4, %v8233_v46  ;;  %v4046_v20 = vrot.slane %v4044_v26, 4 }
  0xfe   : > { %6284 = vmatmul.mubr.bf16.vlgmr.msra.gmra.mrb[0].mxu0 %v8030_v50  ;;  %v4015_v50 = vshll.u32 %v8205_v3, 16  ;;  %v4049_v7 = vrot.slane %v4047_v0, 5  ;;  %v4081_v22 = vshrl.u32 %v8248_v29, 16  ;;  %v3979_v47 = vrot.slane %v3978_v14, 4  ;;  %v6792_v0 = vld [vmem:[%s8894_s1 + $0x218] sm:$0xff]  }
  0xff   : > { %6060 = vmatmul.mubr.bf16.gmra.mrb[16].mxu1 %v8940_v24  ;;  %6316 = vmatpush3.bf16.msra.mxu0 %v7934_v21  ;;  %v4039_v21 = vshll.u32 %v8216_v39, 16  ;;  %v4077_v24 = vshll.u32 %v8248_v29, 16  ;;  %v3989_v39 = vrot.slane %v3988_v38, 4  ;;  %v3993_v3 = vrot.slane %v3991_v12, 5 }
 0x100   : > { %6063 = vmatprep.mubr.bf16.mxu1 %v8942_v17  ;;  %6287 = vmatprep.mubr.bf16.mxu0 %v8034_v48  ;;  %v8263_v17 = vrot.slane %v4053_v44, 5  ;;  %v4059_v48 = vrot.slane %v4057_v59, 4  ;;  %v4017_v41 = vrot.slane %v4015_v50, 5  ;;  %v4003_v34 = vrot.slane %v4002_v23, 4 }
 0x101   : > { %6317 = vmatprep.subr.bf16.mxu0 %v6788_v49  ;;  %v4013_v1 = vrot.slane %v4012_v15, 4  ;;  %v4070_v4 = vrot.slane %v4068_v27, 4  ;;  %v4073_v45 = vrot.slane %v4071_v30, 5  ;;  %v4027_v26 = vrot.slane %v4026_v56, 4  ;;  %v8329_v27 = vld [vmem:[%s7071_s29 + $0xbc] sm:$0x1] }
 0x102   : > { %v4041_v44 = vrot.slane %v4039_v21, 5  ;;  %v4050_v59 = vor.u32 %v4049_v7, %v4046_v20  ;;  %v4063_v29 = vshll.u32 %v8261_v25, 16  ;;  %v4060_v12 = vor.u32 %v4059_v48, %v8263_v17  ;;  %v8296_v21 = vld [vmem:[%s7071_s29 + $0xb0] sm:$0x1] }
 0x103   : > { %6318 = vmatpush3.bf16.msra.mxu0 %v6788_v49  ;;  %v4037_v49 = vrot.slane %v4036_v8, 4  ;;  %v8273_v14 = vrot.slane %v4077_v24, 5  ;;  %v4083_v38 = vrot.slane %v4081_v22, 4  ;;  %v8943_v23 = vor.u32 %v7681_v57, %v7679_v11 }
 0x104   : > { %6319 = vmatprep.subr.bf16.mxu0 %v6790_v16  ;;  %v8944_v15 = vcombine.low %v7986_v40, %v8011_v60  ;;  %v3970_v22 = vsel %vm7103_vm2, %v8236_v53, %v8195_v5  ;;  %v3984_v57 = vsel %vm7103_vm2, %v3979_v47, %v8202_v28  ;;  %v8945_v40 = vcombine.low %v8041_v31, %v8083_v43  ;;  %v6795_v31 = vld [vmem:[%s8894_s1 + $0x220] sm:$0xff]  }
 0x105   : > { %v8278_v50 = vrot.slane %v8943_v23, 4  ;;  %v3994_v60 = vsel %vm7103_vm2, %v3989_v39, %v3993_v3  ;;  %v4074_v5 = vor.u32 %v4073_v45, %v4070_v4  ;;  %v4018_v28 = vsel %vm7103_vm2, %v4013_v1, %v4017_v41  ;;  %v5641_v41 = vld [vmem:[%s7071_s29 + $0x48] sm:$0xe] }
 0x106   : > { %6288 = vmatmul.mubr.bf16.gmra.mrb[4].mxu0 %v8079_v55  ;;  %v3960_v55 = vsel %vm7103_vm2, %v8193_v10, %v8165_v61  ;;  %v5588_v61 = vld [vmem:[%s7071_s29 + $0xb4] sm:$0xf]  ;;  %v8308_v10 = vld [vmem:[%s7071_s29 + $0xb8] sm:$0xf]  ;;  %v4032_v39 = vsel %vm7103_vm2, %v4027_v26, %v8233_v46  ;;  %v8318_v43 = vrot.slane %v4050_v59, 4  ;;  %v8320_v3 = vrot.slane %v4063_v29, 5 }
 0x107   : > { %6064 = vmatmul.mubr.bf16.gmra.mrb[20].mxu1 %v8944_v15  ;;  %6291 = vmatprep.mubr.bf16.mxu0 %v8134_v18  ;;  %v4008_v18 = vsel %vm7103_vm2, %v4003_v34, %v8213_v13  ;;  %v4042_v13 = vsel %vm7103_vm2, %v4037_v49, %v4041_v44  ;;  %v8324_v45 = vrot.slane %v4060_v12, 4  ;;  %v4084_v53 = vor.u32 %v4083_v38, %v8273_v14  ;;  %v5642_v26 = vld [vmem:[%s7071_s29 + $0x54] sm:$0xe] }
 0x108   : > { %6067 = vmatprep.mubr.bf16.mxu1 %v8945_v40  ;;  %6320 = vmatpush3.bf16.msra.mxu0 %v6790_v16  ;;  %v4087_v16 = vshll.u32 %v8296_v21, 16  ;;  %v8946_v46 = vsel %vm7103_vm2, %v8163_v42, %v8152_v52  ;;  %v8947_v29 = vsel %vm7103_vm2, %v8161_v35, %v8085_v58  ;;  %v4092_v56 = vshrl.u32 %v5588_v61, 16 }
 0x109   : > { %6321 = vmatprep.subr.bf16.mxu0 %v6792_v0  ;;  %v5619_v30 = vcombine.low %v8947_v29, %v8946_v46  ;;  %v4095_v8 = vshll.u32 %v5588_v61, 16  ;;  %v4101_v20 = vshll.u32 %v8308_v10, 16  ;;  %v5235_v7 = vcombine.low %v8140_v2, %v8150_v54  ;;  %v6798_v2 = vld [vmem:[%s8894_s1 + $0x228] sm:$0xff]   ;;  %v5591_v54 = vld [vmem:[%s7071_s29 + $0xc0] sm:$0xf]  ;;  %v8951_v29 = vld [vmem:[#allocation8_spill] sm:$0xff] }
 0x10a   : > { %v5236_v48 = vcombine.low %v8169_v36, %v8225_v62  ;;  %v5620_v24 = vcombine.low %v3960_v55, %v3970_v22  ;;  %v8346_v52 = vrot.slane %v4074_v5, 4  ;;  %v5621_v42 = vcombine.low %v3984_v57, %v3994_v60 }
 0x10b   : > { %v8348_v58 = vcombine.low %v4008_v18, %v4018_v28  ;;  %v8350_v35 = vcombine.low %v4032_v39, %v4042_v13  ;;  %v4056_v47 = vsel %vm7103_vm2, %v8318_v43, %v8263_v17  ;;  %v4066_v34 = vsel %vm7103_vm2, %v8324_v45, %v8320_v3  ;;  %v5644_v28 = vld [vmem:[%s7071_s29 + $0x6c] sm:$0xe] }
 0x10c   : > { %6322 = vmatpush3.bf16.msra.mxu0 %v6792_v0  ;;  %v8366_v1 = vrot.slane %v4084_v53, 4  ;;  %v8368_v4 = vrot.slane %v4087_v16, 5  ;;  %v4105_v0 = vshrl.u32 %v8308_v10, 16  ;;  %v8948_v44 = vcombine.low %v8095_v6, %v8104_v51  ;;  %v6801_v6 = vld [vmem:[%s8894_s1 + $0x230] sm:$0xff]   ;;  %v8390_v51 = vld [vmem:[%s7071_s29 + $0xc4] sm:$0xf] }
 0x10d   : > { %6323 = vmatprep.subr.bf16.mxu0 %v6795_v31  ;;  %v8375_v59 = vrot.slane %v4092_v56, 4  ;;  %v8379_v49 = vrot.slane %v4101_v20, 5  ;;  %v4111_v12 = vshll.u32 %v8329_v27, 16  ;;  %v4080_v38 = vsel %vm7103_vm2, %v8346_v52, %v8273_v14  ;;  %v5643_v14 = vld [vmem:[%s7071_s29 + $0x60] sm:$0xe]  ;;  %v8949_v39 = vld [vmem:[#allocation6_spill] sm:$0xff] }
 0x10e   : > { %6292 = vmatmul.mubr.bf16.gmra.mrb[8].mxu0 %v8146_v19  ;;  %v8377_v19 = vrot.slane %v4095_v8, 5  ;;  %v4116_v23 = vshrl.u32 %v5591_v54, 16  ;;  %v5657_v15 = vrot.slane %v5641_v41, 9  ;;  %v4579_v55 = vrot.slane %v7966_v32, 5  ;;  %v6793_v13 = vld [vmem:[%s7071_s29 + $0xc] sm:$0xff]   ;;  %v6804_v56 = vld [vmem:[%s8894_s1 + $0x238] sm:$0xff]  }
 0x10f   : > { %6068 = vmatmul.mubr.bf16.gmra.mrb[24].mxu1 %v8948_v44  ;;  %6295 = vmatprep.mubr.bf16.mxu0 %v5619_v30  ;;  %v4119_v22 = vshll.u32 %v5591_v54, 16  ;;  %v4582_v57 = vrot.slane %v8014_v63, 5  ;;  %v5658_v40 = vrot.slane %v5642_v26, 9  ;;  %v4586_v60 = vrot.slane %v7978_v33, 5  ;;  %v8950_v16 = vld [vmem:[#allocation7_spill] sm:$0xff]  ;;  %v8952_v52 = vld [vmem:[#allocation9_spill] sm:$0xff] }
 0x110   : > { %6071 = vmatprep.mubr.bf16.mxu1 %v5235_v7  ;;  %6324 = vmatpush3.bf16.msra.mxu0 %v6795_v31  ;;  %v4090_v18 = vsel %vm7103_vm2, %v8366_v1, %v8368_v4  ;;  %v8400_v5 = vrot.slane %v4105_v0, 4  ;;  %v8404_v61 = vsel %vm7349_vm5, %v5657_v15, %v4579_v55  ;;  %v4581_v32 = vrot.slane %v4579_v55, 4  ;;  %v8953_v4 = vld [vmem:[#allocation10_spill] sm:$0xff] }
 0x111   : > { %6325 = vmatprep.subr.bf16.mxu0 %v6798_v2  ;;  %v4125_v31 = vshll.u32 %v8390_v51, 16  ;;  %v8410_v63 = vsel %vm7349_vm5, %v5658_v40, %v4586_v60  ;;  %v4588_v33 = vrot.slane %v4586_v60, 4  ;;  %v4589_v3 = vrot.slane %v8949_v39, 5  ;;  %v8441_v26 = vld [vmem:[%s7071_s29 + $0xc8] sm:$0x1]  ;;  %v6794_v40 = vld [vmem:[%s7071_s29 + $0x18] sm:$0xff]  }
 0x112   : > { %v8416_v45 = vsel %vm7349_vm5, %v4581_v32, %v4582_v57  ;;  %v5659_v53 = vrot.slane %v5643_v14, 9  ;;  %v4593_v46 = vrot.slane %v8950_v16, 5  ;;  %v4596_v30 = vrot.slane %v8951_v29, 5  ;;  %v6796_v39 = vld [vmem:[%s7071_s29 + $0x24] sm:$0xff]  }
 0x113   : > { %v5689_v8 = vcombine.low %v8404_v61, %v8416_v45  ;;  %v8427_v20 = vsel %vm7349_vm5, %v4588_v33, %v4589_v3  ;;  %v5660_v7 = vrot.slane %v5644_v28, 9  ;;  %v4603_v0 = vrot.slane %v8953_v4, 5  ;;  %v8955_v28 = vld [vmem:[#allocation14_spill] sm:$0xff]  ;;  %v5350_v61 = vld [vmem:[%s7071_s29 + $0x90] sm:$0xf] }
 0x114   : > { %6326 = vmatpush3.bf16.msra.mxu0 %v6798_v2  ;;  %v4600_v2 = vrot.slane %v8952_v52, 5  ;;  %v5690_v54 = vcombine.low %v8410_v63, %v8427_v20  ;;  %v8434_v41 = vsel %vm7349_vm5, %v5659_v53, %v4593_v46  ;;  %v4595_v1 = vrot.slane %v4593_v46, 4  ;;  %v8956_v53 = vld [vmem:[#allocation5_spill] sm:$0xff]  ;;  %v6810_v45 = vld [vmem:[%s7071_s29 + $0xa8] sm:$0xff]  }
 0x115   : > { %6327 = vmatprep.subr.bf16.mxu0 %v6801_v6  ;;  %v8443_v44 = vrot.slane %v4116_v23, 4  ;;  %v8456_v36 = vcombine.low %v4056_v47, %v4066_v34  ;;  %v4098_v62 = vor.u32 %v8377_v19, %v8375_v59  ;;  %v5645_v23 = vld [vmem:[%s7071_s29 + $0x78] sm:$0xe]  ;;  %v8468_v57 = vrot.slane %v4111_v12, 5  ;;  %v5594_v12 = vld [vmem:[%s7071_s29 + $0xcc] sm:$0xf] }
 0x116   : > { %6296 = vmatmul.mubr.bf16.gmra.mrb[12].mxu0 %v5620_v24  ;;  %v8445_v24 = vrot.slane %v4119_v22, 5  ;;  %v8449_v15 = vsel %vm7349_vm5, %v5660_v7, %v4600_v2  ;;  %v4602_v55 = vrot.slane %v4600_v2, 4  ;;  %v8466_v22 = vcombine.low %v4080_v38, %v4090_v18  ;;  %v5344_v47 = vld [vmem:[%s7071_s29 + $0x78] sm:$0xf]  ;;  %v8954_v18 = vld [vmem:[#allocation11_spill] sm:$0xff] }
 0x117   : > { %6072 = vmatmul.mubr.bf16.gmra.mrb[28].mxu1 %v5236_v48  ;;  %6299 = vmatprep.mubr.bf16.mxu0 %v5621_v42  ;;  %v4129_v48 = vshrl.u32 %v8390_v51, 16  ;;  %v8463_v42 = vsel %vm7349_vm5, %v4595_v1, %v4596_v30  ;;  %v4108_v34 = vor.u32 %v8400_v5, %v8379_v49  ;;  %v8479_v59 = vrot.slane %v4125_v31, 5  ;;  %v8493_v31 = vld [vmem:[%s7071_s29 + $0xd0] sm:$0xf]  ;;  %v8957_v1 = vld [vmem:[#allocation12_spill] sm:$0xff] }
 0x118   : > { %6091 = vmatprep.mubr.bf16.mxu1 %v6793_v13  ;;  %6328 = vmatpush3.bf16.msra.mxu0 %v6801_v6  ;;  %v5691_v17 = vcombine.low %v8434_v41, %v8463_v42  ;;  %v8474_v43 = vsel %vm7349_vm5, %v4602_v55, %v4603_v0  ;;  %v4135_v19 = vshll.u32 %v8441_v26, 16  ;;  %v5646_v6 = vld [vmem:[%s7071_s29 + $0x84] sm:$0xe]  ;;  %v4122_v60 = vor.u32 %v8445_v24, %v8443_v44  ;;  %v8958_v24 = vld [vmem:[#allocation15_spill] sm:$0xff]  ;;  %v6874_v63 = vld [vmem:[%s7071_s29 + $0x8c] sm:$0x1] }
 0x119   : > { %6329 = vmatprep.subr.bf16.mxu0 %v6804_v56  ;;  %v5692_v38 = vcombine.low %v8449_v15, %v8474_v43  ;;  %v5661_v14 = vrot.slane %v5645_v23, 9  ;;  %v4607_v32 = vrot.slane %v8954_v18, 5  ;;  %v4610_v33 = vrot.slane %v8955_v28, 5 }
 0x11a   : > { %v4131_v5 = vrot.slane %v4129_v48, 4  ;;  %v2357_v3 = vshrl.u32 %v5344_v47, 16  ;;  %v2360_v13 = vshll.u32 %v5344_v47, 16  ;;  %v2379_v16 = vsel %vm7103_vm2, %v8278_v50, %v8956_v53 }
 0x11b   : > { %v4140_v46 = vshrl.u32 %v5594_v12, 16  ;;  %v8501_v29 = vsel %vm7349_vm5, %v5661_v14, %v4607_v32  ;;  %v4609_v30 = vrot.slane %v4607_v32, 4  ;;  %v5662_v7 = vrot.slane %v5646_v6, 9  ;;  %v6854_v6 = vld [vmem:[%s8894_s1 + $0x108] sm:$0xff]  }
 0x11c   : > { %6330 = vmatpush3.bf16.msra.mxu0 %v6804_v56  ;;  %v4143_v52 = vshll.u32 %v5594_v12, 16  ;;  %v2359_v2 = vrot.slane %v2357_v3, 4  ;;  %v2362_v56 = vrot.slane %v2360_v13, 5  ;;  %v4614_v4 = vrot.slane %v8957_v1, 5  ;;  %v5647_v12 = vld [vmem:[%s7071_s29 + $0x90] sm:$0xe] }
 0x11d   : > { %v4149_v50 = vshll.u32 %v8493_v31, 16  ;;  %v4153_v0 = vshrl.u32 %v8493_v31, 16  ;;  %v8510_v44 = vsel %vm7349_vm5, %v4609_v30, %v4610_v33  ;;  %v4617_v55 = vrot.slane %v8958_v24, 5  ;;  %v6797_v3 = vld [vmem:[%s7071_s29 + $0x30] sm:$0xff]  }
 0x11e   : > { %6300 = vmatmul.mubr.bf16.gmra.mrb[16].mxu0 %v8348_v58  ;;  %v8959_v58 = vld [vmem:[#allocation18_spill] sm:$0xff]  ;;  %v4132_v48 = vor.u32 %v4131_v5, %v8479_v59  ;;  %v2363_v23 = vor.u32 %v2362_v56, %v2359_v2  ;;  %v4616_v47 = vrot.slane %v4614_v4, 4  ;;  %v4109_v14 = vrot.slane %v4108_v34, 4  ;;  %v8531_v13 = vld [vmem:[%s7071_s29 + $0xd4] sm:$0x1]  ;;  %v8960_v2 = vld [vmem:[#allocation13_spill] sm:$0xff] }
 0x11f   : > { %6092 = vmatmul.mubr.bf16.vlgmr.msra.gmra.mrb[0].mxu1 %v6794_v40  ;;  %6303 = vmatprep.mubr.bf16.mxu0 %v8350_v35  ;;  %v5693_v35 = vcombine.low %v8501_v29, %v8510_v44  ;;  %v4099_v40 = vrot.slane %v4098_v62, 4  ;;  %v4137_v18 = vrot.slane %v4135_v19, 5  ;;  %v8523_v32 = vsel %vm7349_vm5, %v5662_v7, %v4614_v4  ;;  %v6799_v19 = vld [vmem:[%s7071_s29 + $0x3c] sm:$0xff]   ;;  %v6855_v1 = vld [vmem:[%s8894_s1 + $0x110] sm:$0xff]  }
 0x120   : > { %6371 = vmatpush3.bf16.msra.mxu1 %v8959_v58  ;;  %6095 = vmatprep.mubr.bf16.mxu1 %v6796_v39  ;;  %v4142_v28 = vrot.slane %v4140_v46, 4  ;;  %v4145_v33 = vrot.slane %v4143_v52, 5  ;;  %v2364_v39 = vrot.slane %v2363_v23, 4  ;;  %v8527_v5 = vsel %vm7349_vm5, %v4616_v47, %v4617_v55  ;;  %v6856_v47 = vld [vmem:[%s7071_s29 + $0x1c] sm:$0xf] }
 0x121   : > { %6364 = vmatprep.subr.bf16.mxu1 %v6854_v6  ;;  %v8533_v53 = vrot.slane %v4149_v50, 5  ;;  %v4155_v30 = vrot.slane %v4153_v0, 4  ;;  %v5694_v62 = vcombine.low %v8523_v32, %v8527_v5  ;;  %v5663_v34 = vrot.slane %v5647_v12, 9 }
 0x122   : > { %v4123_v7 = vrot.slane %v4122_v60, 4  ;;  %v4133_v46 = vrot.slane %v4132_v48, 4  ;;  %v2369_v52 = vsel %vm7103_vm2, %v2364_v39, %v7679_v11  ;;  %v4621_v56 = vrot.slane %v8960_v2, 5  ;;  %v8961_v11 = vld [vmem:[#allocation17_spill] sm:$0xff]  ;;  %v6800_v39 = vld [vmem:[%s7071_s29 + $0x48] sm:$0xff]  }
 0x123   : > { %v4104_v4 = vsel %vm7103_vm2, %v4099_v40, %v8379_v49  ;;  %v4114_v60 = vsel %vm7103_vm2, %v4109_v14, %v8468_v57  ;;  %v8551_v50 = vcombine.low %v2369_v52, %v2379_v16  ;;  %v4624_v0 = vrot.slane %v8961_v11, 5  ;;  %v5637_v57 = vld [vmem:[%s7071_s29 + $0x18] sm:$0xe]  ;;  %v5648_v16 = vld [vmem:[%s7071_s29 + $0x9c] sm:$0xe] }
 0x124   : > { %6372 = vmatpush3.bf16.msra.mxu1 %v6854_v6  ;;  %v4146_v24 = vor.u32 %v4145_v33, %v4142_v28  ;;  %v4159_v55 = vshll.u32 %v8531_v13, 16  ;;  %v8558_v58 = vsel %vm7349_vm5, %v5663_v34, %v4621_v56  ;;  %v4623_v48 = vrot.slane %v4621_v56, 4  ;;  %v6857_v40 = vld [vmem:[%s8894_s1 + $0x118] sm:$0xff]   ;;  %v6858_v2 = vld [vmem:[%s7071_s29 + $0x20] sm:$0x1] }
 0x125   : > { %6365 = vmatprep.subr.bf16.mxu1 %v6855_v1  ;;  %v4156_v49 = vor.u32 %v4155_v30, %v8533_v53  ;;  %v4138_v23 = vsel %vm7103_vm2, %v4133_v46, %v4137_v18  ;;  %v4551_v12 = vrot.slane %v6856_v47, 5  ;;  %v5626_v6 = vcombine.low %v4104_v4, %v4114_v60  ;;  %v8962_v34 = vld [vmem:[#allocation16_spill] sm:$0xff]  ;;  %v5649_v11 = vld [vmem:[%s7071_s29 + $0xa8] sm:$0xe] }
 0x126   : > { %6304 = vmatmul.mubr.bf16.gmra.mrb[20].mxu0 %v8456_v36  ;;  %v4128_v36 = vsel %vm7103_vm2, %v4123_v7, %v8479_v59  ;;  %v4147_v14 = vrot.slane %v4146_v24, 4  ;;  %v4161_v28 = vrot.slane %v4159_v55, 5  ;;  %v5653_v18 = vrot.slane %v5637_v57, 9  ;;  %v6802_v46 = vld [vmem:[%s7071_s29 + $0x54] sm:$0xff]   ;;  %v5638_v55 = vld [vmem:[%s7071_s29 + $0x24] sm:$0xe] }
 0x127   : > { %6096 = vmatmul.mubr.bf16.gmra.mrb[4].mxu1 %v6797_v3  ;;  %6307 = vmatprep.mubr.bf16.mxu0 %v8466_v22  ;;  %v8572_v22 = vsel %vm7349_vm5, %v4623_v48, %v4624_v0  ;;  %v5664_v33 = vrot.slane %v5648_v16, 9  ;;  %v5627_v3 = vcombine.low %v4128_v36, %v4138_v23  ;;  %v4157_v30 = vrot.slane %v4156_v49, 4  ;;  %v6860_v48 = vld [vmem:[%s7071_s29 + $0x28] sm:$0xf]  ;;  %v6861_v36 = vld [vmem:[%s7071_s29 + $0x34] sm:$0xf] }
 0x128   : > { %6099 = vmatprep.mubr.bf16.mxu1 %v6799_v19  ;;  %6373 = vmatpush3.bf16.msra.mxu1 %v6855_v1  ;;  %v5695_v59 = vcombine.low %v8558_v58, %v8572_v22  ;;  %v4628_v19 = vrot.slane %v8962_v34, 5  ;;  %v4631_v7 = vrot.slane %v8261_v25, 5  ;;  %v4553_v52 = vrot.slane %v4551_v12, 4  ;;  %v6859_v1 = vld [vmem:[%s8894_s1 + $0x120] sm:$0xff]  }
 0x129   : > { %6366 = vmatprep.subr.bf16.mxu1 %v6857_v40  ;;  %v4554_v56 = vrot.slane %v6858_v2, 5  ;;  %v4552_v25 = vsel %vm7349_vm5, %v5653_v18, %v4551_v12  ;;  %v4152_v0 = vsel %vm7103_vm2, %v4147_v14, %v8533_v53  ;;  %v4162_v24 = vsel %vm7103_vm2, %v4157_v30, %v4161_v28  ;;  %v5639_v12 = vld [vmem:[%s7071_s29 + $0x30] sm:$0xe]  ;;  %v6803_v30 = vld [vmem:[%s7071_s29 + $0x60] sm:$0xff]  }
 0x12a   : > { %v8589_v4 = vsel %vm7349_vm5, %v5664_v33, %v4628_v19  ;;  %v4630_v60 = vrot.slane %v4628_v19, 4  ;;  %v4558_v49 = vrot.slane %v6860_v48, 5  ;;  %v4565_v23 = vrot.slane %v6861_v36, 5  ;;  %v6863_v33 = vld [vmem:[%s7071_s29 + $0x2c] sm:$0x1] }
 0x12b   : > { %v4555_v16 = vsel %vm7349_vm5, %v4553_v52, %v4554_v56  ;;  %v5665_v47 = vrot.slane %v5649_v11, 9  ;;  %v5628_v28 = vcombine.low %v4152_v0, %v4162_v24  ;;  %v5654_v18 = vrot.slane %v5638_v55, 9  ;;  %v6805_v52 = vld [vmem:[%s7071_s29 + $0x6c] sm:$0xff]   ;;  %v5650_v11 = vld [vmem:[%s7071_s29 + $0xb4] sm:$0xe] }
 0x12c   : > { %6374 = vmatpush3.bf16.msra.mxu1 %v6857_v40  ;;  %v8603_v57 = vsel %vm7349_vm5, %v4630_v60, %v4631_v7  ;;  %v8963_v40 = vld [vmem:[#allocation19_spill] sm:$0xff]  ;;  %v5685_v34 = vcombine.low %v4552_v25, %v4555_v16  ;;  %v4560_v19 = vrot.slane %v4558_v49, 4  ;;  %v5655_v2 = vrot.slane %v5639_v12, 9  ;;  %v5640_v0 = vld [vmem:[%s7071_s29 + $0x3c] sm:$0xe] }
 0x12d   : > { %6367 = vmatprep.subr.bf16.mxu1 %v6859_v1  ;;  %v5696_v53 = vcombine.low %v8589_v4, %v8603_v57  ;;  %v4635_v14 = vrot.slane %v8963_v40, 5  ;;  %v4567_v56 = vrot.slane %v4565_v23, 4  ;;  %v6865_v24 = vld [vmem:[%s7071_s29 + $0x40] sm:$0xf]  ;;  %v4559_v48 = vsel %vm7349_vm5, %v5654_v18, %v4558_v49  ;;  %v6867_v18 = vld [vmem:[%s7071_s29 + $0x44] sm:$0x1] }
 0x12e   : > { %6308 = vmatmul.mubr.bf16.gmra.mrb[24].mxu0 %v5626_v6  ;;  %v6862_v6 = vld [vmem:[%s8894_s1 + $0x128] sm:$0xff]   ;;  %v4572_v55 = vrot.slane %v6865_v24, 5  ;;  %v4642_v12 = vrot.slane %v8308_v10, 5  ;;  %v4566_v49 = vsel %vm7349_vm5, %v5655_v2, %v4565_v23  ;;  %v6868_v10 = vld [vmem:[%s8894_s1 + $0x138] sm:$0xff]   ;;  %v5651_v23 = vld [vmem:[%s7071_s29 + $0xc0] sm:$0xe] }
 0x12f   : > { %6100 = vmatmul.mubr.bf16.gmra.mrb[8].mxu1 %v6800_v39  ;;  %6311 = vmatprep.mubr.bf16.mxu0 %v5627_v3  ;;  %v4561_v39 = vrot.slane %v6863_v33, 5  ;;  %v4638_v3 = vrot.slane %v8296_v21, 5  ;;  %v8620_v7 = vsel %vm7349_vm5, %v5665_v47, %v4635_v14  ;;  %v6866_v21 = vld [vmem:[%s8894_s1 + $0x130] sm:$0xff]   ;;  %v5666_v47 = vrot.slane %v5650_v11, 9 }
 0x130   : > { %6103 = vmatprep.mubr.bf16.mxu1 %v6802_v46  ;;  %6375 = vmatpush3.bf16.msra.mxu1 %v6859_v1  ;;  %v4637_v46 = vrot.slane %v4635_v14, 4  ;;  %v6864_v1 = vld [vmem:[%s7071_s29 + $0x38] sm:$0x1]  ;;  %v5656_v14 = vrot.slane %v5640_v0, 9  ;;  %v4575_v33 = vrot.slane %v6867_v18, 5  ;;  %v4649_v11 = vrot.slane %v8390_v51, 5 }
 0x131   : > { %6368 = vmatprep.subr.bf16.mxu1 %v6862_v6  ;;  %v4568_v60 = vrot.slane %v6864_v1, 5  ;;  %v4562_v36 = vsel %vm7349_vm5, %v4560_v19, %v4561_v39  ;;  %v4644_v39 = vrot.slane %v4642_v12, 4  ;;  %v5341_v19 = vld [vmem:[%s7071_s29 + $0x6c] sm:$0xf]  ;;  %v6808_v18 = vld [vmem:[%s7071_s29 + $0x90] sm:$0xff]   ;;  %v2400_v20 = vshll.u32 %v6874_v63, 16 }
 0x132   : > { %v8632_v25 = vsel %vm7349_vm5, %v4637_v46, %v4638_v3  ;;  %v5686_v3 = vcombine.low %v4559_v48, %v4562_v36  ;;  %v4573_v1 = vsel %vm7349_vm5, %v5656_v14, %v4572_v55  ;;  %v2333_v0 = vshrl.u32 %v5341_v19, 16  ;;  %v5652_v51 = vld [vmem:[%s7071_s29 + $0xcc] sm:$0xe] }
 0x133   : > { %v5697_v16 = vcombine.low %v8620_v7, %v8632_v25  ;;  %v4569_v40 = vsel %vm7349_vm5, %v4567_v56, %v4568_v60  ;;  %v5667_v56 = vrot.slane %v5651_v23, 9  ;;  %v2336_v24 = vshll.u32 %v5341_v19, 16 }
 0x134   : > { %6376 = vmatpush3.bf16.msra.mxu1 %v6862_v6  ;;  %v4645_v6 = vrot.slane %v8329_v27, 5  ;;  %v8652_v27 = vsel %vm7349_vm5, %v5666_v47, %v4642_v12  ;;  %v4652_v36 = vrot.slane %v8441_v26, 5  ;;  %v4651_v12 = vrot.slane %v4649_v11, 4 }
 0x135   : > { %6369 = vmatprep.subr.bf16.mxu1 %v6866_v21  ;;  %v2338_v26 = vrot.slane %v2336_v24, 5  ;;  %v4659_v23 = vrot.slane %v8531_v13, 5 }
 0x136   : > { %6312 = vmatmul.mubr.bf16.gmra.mrb[28].mxu0 %v5628_v28  ;;  %v4574_v28 = vrot.slane %v4572_v55, 4  ;;  %v8659_v46 = vsel %vm7349_vm5, %v4644_v39, %v4645_v6  ;;  %v8673_v55 = vsel %vm7349_vm5, %v5667_v56, %v4649_v11  ;;  %v4656_v39 = vrot.slane %v8493_v31, 5  ;;  %v6870_v56 = vld [vmem:[%s7071_s29 + $0x74] sm:$0x1] }
 0x137   : > { %6104 = vmatmul.mubr.bf16.gmra.mrb[12].mxu1 %v6803_v30  ;;  %6331 = vmatprep.mubr.bf16.mxu0 %v5685_v34  ;;  %v6806_v30 = vld [vmem:[%s7071_s29 + $0x78] sm:$0xff]   ;;  %v5687_v34 = vcombine.low %v4566_v49, %v4569_v40  ;;  %v5698_v2 = vcombine.low %v8652_v27, %v8659_v46  ;;  %v8678_v49 = vsel %vm7349_vm5, %v4651_v12, %v4652_v36  ;;  %v2335_v40 = vrot.slane %v2333_v0, 4  ;;  %v6871_v0 = vld [vmem:[%s7071_s29 + $0x88] sm:$0xf] }
 0x138   : > { %6107 = vmatprep.mubr.bf16.mxu1 %v6805_v52  ;;  %6377 = vmatpush3.bf16.msra.mxu1 %v6866_v21  ;;  %v6807_v52 = vld [vmem:[%s7071_s29 + $0x84] sm:$0xff]   ;;  %v4576_v60 = vsel %vm7349_vm5, %v4574_v28, %v4575_v33  ;;  %v6869_v21 = vld [vmem:[%s7071_s29 + $0x70] sm:$0xf]  ;;  %v5699_v28 = vcombine.low %v8673_v55, %v8678_v49  ;;  %v4658_v19 = vrot.slane %v4656_v39, 4  ;;  %v2390_v24 = vshll.u32 %v6871_v0, 16 }
 0x139   : > { %6370 = vmatprep.subr.bf16.mxu1 %v6868_v10  ;;  %v2342_v48 = vshll.u32 %v6869_v21, 16  ;;  %v2346_v47 = vshrl.u32 %v6869_v21, 16  ;;  %v5688_v6 = vcombine.low %v4573_v1, %v4576_v60  ;;  %v2352_v1 = vshll.u32 %v6870_v56, 16 }
 0x13a   : > { %v8700_v11 = vsel %vm7349_vm5, %v4658_v19, %v4659_v23  ;;  %v2394_v21 = vshrl.u32 %v6871_v0, 16  ;;  %v6873_v19 = vld [vmem:[%s7071_s29 + $0xa0] sm:$0xf] }
 0x13b   : > { %v8680_v14 = vrot.slane %v2342_v48, 5  ;;  %v2348_v33 = vrot.slane %v2346_v47, 4  ;;  %v2442_v56 = vshrl.u32 %v6873_v19, 16 }
 0x13c   : > { %6378 = vmatpush3.bf16.msra.mxu1 %v6868_v10  ;;  %v5668_v10 = vrot.slane %v5652_v51, 9 }
 0x13d   : > { %v2349_v31 = vor.u32 %v2348_v33, %v8680_v14  ;;  %v2408_v33 = vshll.u32 %v5350_v61, 16 }
 0x13e   : > { %6332 = vmatmul.mubr.bf16.vlgmr.msra.gmra.mrb[0].mxu0 %v5686_v3  ;;  %v6809_v3 = vld [vmem:[%s7071_s29 + $0x9c] sm:$0xff]  }
 0x13f   : > { %6108 = vmatmul.mubr.bf16.gmra.mrb[16].mxu1 %v6806_v30  ;;  %6335 = vmatprep.mubr.bf16.mxu0 %v5687_v34  ;;  %v5347_v30 = vld [vmem:[%s7071_s29 + $0x84] sm:$0xf]  ;;  %v8691_v34 = vsel %vm7349_vm5, %v5668_v10, %v4656_v39  ;;  %v2350_v47 = vrot.slane %v2349_v31, 4  ;;  %v6872_v10 = vld [vmem:[%s7071_s29 + $0x94] sm:$0xf]  ;;  %v2410_v0 = vrot.slane %v2408_v33, 5 }
 0x140   : > { %6111 = vmatprep.mubr.bf16.mxu1 %v6807_v52  ;;  %v2339_v52 = vor.u32 %v2338_v26, %v2335_v40  ;;  %v2381_v13 = vshrl.u32 %v5347_v30, 16  ;;  %v2384_v60 = vshll.u32 %v5347_v30, 16  ;;  %v5700_v48 = vcombine.low %v8691_v34, %v8700_v11 }
 0x141   : > { %v8709_v40 = vrot.slane %v2390_v24, 5  ;;  %v2396_v26 = vrot.slane %v2394_v21, 4  ;;  %v2414_v39 = vshll.u32 %v6872_v10, 16  ;;  %v2418_v23 = vshrl.u32 %v6872_v10, 16  ;;  %v6876_v10 = vld [vmem:[%s7071_s29 + $0xa4] sm:$0x1] }
 0x142   : > { %v2340_v36 = vrot.slane %v2339_v52, 4  ;;  %v2383_v12 = vrot.slane %v2381_v13, 4  ;;  %v2386_v51 = vrot.slane %v2384_v60, 5  ;;  %v2438_v52 = vshll.u32 %v6873_v19, 16  ;;  %v6877_v19 = vld [vmem:[%s7071_s29 + $0xac] sm:$0xf] }
 0x143   : > { %v2397_v13 = vor.u32 %v2396_v26, %v8709_v40  ;;  %v8726_v41 = vrot.slane %v2414_v39, 5  ;;  %v2420_v42 = vrot.slane %v2418_v23, 4  ;;  %v2444_v21 = vrot.slane %v2442_v56, 4  ;;  %v5359_v23 = vld [vmem:[%s7071_s29 + $0xb4] sm:$0xf] }
 0x144   : > { %v2448_v39 = vshll.u32 %v6876_v10, 16  ;;  %v2466_v15 = vshrl.u32 %v6877_v19, 16  ;;  %v2480_v63 = vshll.u32 %v5359_v23, 16 }
 0x145   : > { %v2421_v26 = vor.u32 %v2420_v42, %v8726_v41 }
 0x146   : > { %6336 = vmatmul.mubr.bf16.gmra.mrb[4].mxu0 %v5688_v6  ;;  %v5353_v6 = vld [vmem:[%s7071_s29 + $0x9c] sm:$0xf] }
 0x147   : > { %6112 = vmatmul.mubr.bf16.gmra.mrb[20].mxu1 %v6808_v18  ;;  %6339 = vmatprep.mubr.bf16.mxu0 %v5689_v8  ;;  %v2354_v8 = vrot.slane %v2352_v1, 5  ;;  %v2405_v18 = vshrl.u32 %v5350_v61, 16  ;;  %v2432_v30 = vshll.u32 %v5353_v6, 16  ;;  %v2345_v1 = vsel %vm7103_vm2, %v2340_v36, %v8680_v14  ;;  %v6812_v61 = vld [vmem:[%s7071_s29 + $0xc0] sm:$0xff]  }
 0x148   : > { %6115 = vmatprep.mubr.bf16.mxu1 %v6809_v3  ;;  %v2429_v3 = vshrl.u32 %v5353_v6, 16  ;;  %v8728_v14 = vrot.slane %v2438_v52, 5  ;;  %v2462_v52 = vshll.u32 %v6877_v19, 16 }
 0x149   : > { %v2355_v31 = vsel %vm7103_vm2, %v2350_v47, %v2354_v8  ;;  %v2407_v60 = vrot.slane %v2405_v18, 4  ;;  %v2434_v24 = vrot.slane %v2432_v30, 5  ;;  %v2402_v8 = vrot.slane %v2400_v20, 5  ;;  %v6878_v20 = vld [vmem:[%s7071_s29 + $0xb8] sm:$0xf] }
 0x14a   : > { %v2398_v47 = vrot.slane %v2397_v13, 4  ;;  %v2445_v33 = vor.u32 %v2444_v21, %v8728_v14  ;;  %v2486_v29 = vshll.u32 %v6878_v20, 16  ;;  %v2490_v44 = vshrl.u32 %v6878_v20, 16 }
 0x14c   : > { %v2446_v13 = vrot.slane %v2445_v33, 4 }
 0x14e   : > { %6340 = vmatmul.mubr.bf16.gmra.mrb[8].mxu0 %v5690_v54  ;;  %v2387_v54 = vor.u32 %v2386_v51, %v2383_v12  ;;  %v2411_v12 = vor.u32 %v2410_v0, %v2407_v60  ;;  %v6875_v51 = vld [vmem:[%s7071_s29 + $0x98] sm:$0x1]  ;;  %v2450_v60 = vrot.slane %v2448_v39, 5 }
 0x14f   : > { %6116 = vmatmul.mubr.bf16.gmra.mrb[24].mxu1 %v6810_v45  ;;  %6343 = vmatprep.mubr.bf16.mxu0 %v5691_v17  ;;  %v2431_v17 = vrot.slane %v2429_v3, 4  ;;  %v5389_v45 = vcombine.low %v2345_v1, %v2355_v31  ;;  %v2424_v6 = vshll.u32 %v6875_v51, 16  ;;  %v2477_v31 = vshrl.u32 %v5359_v23, 16 }
 0x150   : > { %6119 = vmatprep.mubr.bf16.mxu1 %v6811_v9  ;;  %v2388_v36 = vrot.slane %v2387_v54, 4  ;;  %v5356_v9 = vld [vmem:[%s7071_s29 + $0xa8] sm:$0xf]  ;;  %v2412_v56 = vrot.slane %v2411_v12, 4  ;;  %v2451_v32 = vsel %vm7103_vm2, %v2446_v13, %v2450_v60 }
 0x151   : > { %v2435_v18 = vor.u32 %v2434_v24, %v2431_v17  ;;  %v2453_v3 = vshrl.u32 %v5356_v9, 16  ;;  %v2456_v30 = vshll.u32 %v5356_v9, 16  ;;  %v2426_v1 = vrot.slane %v2424_v6, 5 }
 0x152   : > { %v2393_v43 = vsel %vm7103_vm2, %v2388_v36, %v8709_v40  ;;  %v2464_v17 = vrot.slane %v2462_v52, 5  ;;  %v2468_v24 = vrot.slane %v2466_v15, 4  ;;  %v2479_v21 = vrot.slane %v2477_v31, 4  ;;  %v5362_v36 = vld [vmem:[%s7071_s29 + $0xc0] sm:$0xf] }
 0x153   : > { %v2436_v54 = vrot.slane %v2435_v18, 4  ;;  %v2455_v0 = vrot.slane %v2453_v3, 4  ;;  %v2458_v42 = vrot.slane %v2456_v30, 5  ;;  %v2501_v9 = vshrl.u32 %v5362_v36, 16  ;;  %v6880_v18 = vld [vmem:[%s7071_s29 + $0xc4] sm:$0xf] }
 0x154   : > { %v2510_v33 = vshll.u32 %v6880_v18, 16 }
 0x155   : > { %v2441_v51 = vsel %vm7103_vm2, %v2436_v54, %v8728_v14  ;;  %v2459_v5 = vor.u32 %v2458_v42, %v2455_v0  ;;  %v2514_v14 = vshrl.u32 %v6880_v18, 16  ;;  %v2503_v19 = vrot.slane %v2501_v9, 4 }
 0x156   : > { %6344 = vmatmul.mubr.bf16.gmra.mrb[12].mxu0 %v5692_v38  ;;  %v2403_v38 = vsel %vm7103_vm2, %v2398_v47, %v2402_v8  ;;  %v2492_v8 = vrot.slane %v2490_v44, 4  ;;  %v2417_v47 = vsel %vm7103_vm2, %v2412_v56, %v8726_v41  ;;  %v6879_v41 = vld [vmem:[%s7071_s29 + $0xb0] sm:$0x1]  ;;  %v5393_v58 = vcombine.low %v2441_v51, %v2451_v32  ;;  %v6882_v44 = vld [vmem:[%s7071_s29 + $0xc8] sm:$0x1] }
 0x157   : > { %6120 = vmatmul.mubr.bf16.gmra.mrb[28].mxu1 %v6812_v61  ;;  %6347 = vmatprep.mubr.bf16.mxu0 %v5693_v35  ;;  %v2422_v35 = vrot.slane %v2421_v26, 4  ;;  %v5391_v40 = vcombine.low %v2393_v43, %v2403_v38  ;;  %v2482_v61 = vrot.slane %v2480_v63, 5  ;;  %v2472_v6 = vshll.u32 %v6879_v41, 16 }
 0x158   : > { %6155 = vmatprep.mubr.bf16.mxu1 %v5389_v45  ;;  %v2488_v45 = vrot.slane %v2486_v29, 5  ;;  %v2504_v26 = vshll.u32 %v5362_v36, 16  ;;  %v2460_v22 = vrot.slane %v2459_v5, 4  ;;  %v2512_v15 = vrot.slane %v2510_v33, 5 }
 0x159   : > { %v2427_v12 = vsel %vm7103_vm2, %v2422_v35, %v2426_v1  ;;  %v2483_v10 = vor.u32 %v2482_v61, %v2479_v21  ;;  %v2474_v30 = vrot.slane %v2472_v6, 5  ;;  %v2516_v43 = vrot.slane %v2514_v14, 4 }
 0x15a   : > { %v2493_v39 = vor.u32 %v2492_v8, %v2488_v45  ;;  %v5392_v3 = vcombine.low %v2417_v47, %v2427_v12  ;;  %v2506_v52 = vrot.slane %v2504_v26, 5  ;;  %v2465_v31 = vsel %vm7103_vm2, %v2460_v22, %v2464_v17 }
 0x15b   : > { %v2484_v38 = vrot.slane %v2483_v10, 4  ;;  %v2517_v29 = vor.u32 %v2516_v43, %v2512_v15  ;;  %v2520_v35 = vshll.u32 %v6882_v44, 16 }
 0x15c   : > { %v2494_v56 = vrot.slane %v2493_v39, 4  ;;  %v2507_v20 = vor.u32 %v2506_v52, %v2503_v19 }
 0x15d   : > { %v2489_v4 = vsel %vm7103_vm2, %v2484_v38, %v2488_v45  ;;  %v2522_v54 = vrot.slane %v2520_v35, 5 }
 0x15e   : > { %6348 = vmatmul.mubr.bf16.gmra.mrb[16].mxu0 %v5694_v62  ;;  %v2469_v62 = vor.u32 %v2468_v24, %v2464_v17  ;;  %v2508_v25 = vrot.slane %v2507_v20, 4 }
 0x15f   : > { %6156 = vmatmul.mubr.bf16.vlgmr.msra.gmra.mrb[16].mxu1 %v8551_v50  ;;  %6351 = vmatprep.mubr.bf16.mxu0 %v5695_v59  ;;  %v6881_v50 = vld [vmem:[%s7071_s29 + $0xbc] sm:$0x1]  ;;  %s161_s29 = sand.u32 1, %s6945_s10  }
 0x160   : > { %6159 = vmatprep.mubr.bf16.mxu1 %v5391_v40  ;;  %v2496_v23 = vshll.u32 %v6881_v50, 16  ;;  %v2470_v59 = vrot.slane %v2469_v62, 4  ;;  %v2513_v13 = vsel %vm7103_vm2, %v2508_v25, %v2512_v15  ;;  %s5123_s6 = sshll.u32 %s161_s29, 8  ;;  %s8847_s12 = scalar_lea.sflag [#allocation3], %s161_s29 }
 0x161   : > { %s8802_s7 = scalar_lea.vmem [#allocation2], %s5123_s6 }
 0x162   : > { %v2498_v1 = vrot.slane %v2496_v23, 5  ;;  %v2475_v63 = vsel %vm7103_vm2, %v2470_v59, %v2474_v30  ;;  %s5030_s15 = sshll.u32 %s8802_s7, 4  ;;  %s8840_s15 = int_to_ptr.vmem [resolvable:$true] %s5030_s15 }
 0x163   : > { %s6883_s23 = scalar_lea.vmem %s8840_s15, 4096  ;;  %p6890_p1 = scmp.lt.s32.totalorder %s8840_s15, %s6888_s25 }
 0x164   : > { %v2499_v57 = vsel %vm7103_vm2, %v2494_v56, %v2498_v1  ;;  %p6884_p12 = scmp.ne.s32.totalorder %s8840_s15, %s6883_s23  ;;  %p6891_p2 = scmp.lt.s32.totalorder %s6889_s26, %s6883_s23 }
 0x165   : > { %v5395_v7 = vcombine.low %v2489_v4, %v2499_v57 }
 0x166   : > { %6352 = vmatmul.mubr.bf16.gmra.mrb[20].mxu0 %v5696_v53  ;;  %v5394_v53 = vcombine.low %v2465_v31, %v2475_v63  ;;  %p6885_p13 = pnand %p6884_p12, %p7021_p4  ;;  %p6892_p3 = por %p6891_p2, %p6890_p1 }
 0x167   : > { %6160 = vmatmul.mubr.bf16.gmra.mrb[20].mxu1 %v5392_v3  ;;  %6355 = vmatprep.mubr.bf16.mxu0 %v5697_v16  ;;  %v2518_v16 = vrot.slane %v2517_v29, 4 }
 0x168   : > { %6163 = vmatprep.mubr.bf16.mxu1 %v5393_v58  ;;  %p6886_p0 = pneg %p6885_p13 }
 0x169   : > { %v2523_v60 = vsel %vm7103_vm2, %v2518_v16, %v2522_v54 }
 0x16a   : > { %v5396_v0 = vcombine.low %v2513_v13, %v2523_v60  ;;  %p6893_p5 = pnand %p6892_p3, %p6886_p0 }
 0x16e   : > { %6356 = vmatmul.mubr.bf16.gmra.mrb[24].mxu0 %v5698_v2 }
 0x16f   : > { %6164 = vmatmul.mubr.bf16.gmra.mrb[24].mxu1 %v5394_v53  ;;  %6359 = vmatprep.mubr.bf16.mxu0 %v5699_v28 }
 0x170   : > { %6167 = vmatprep.mubr.bf16.mxu1 %v5395_v7 }
 0x176   : > { %6360 = vmatmul.mubr.bf16.gmra.mrb[28].mxu0 %v5700_v48 }
 0x177   : > { %6168 = vmatmul.mubr.bf16.gmra.mrb[28].mxu1 %v5396_v0 }
 0x1f2   : > { %v6093_v27 = vpop.f32.mrb[0].mxu1 }
 0x1f3   : > { %v1933_v46 = vpop.f32.mrb[1].mxu1 }
 0x1f4   : > { %v6094_v2 = vpop.f32.mrb[2].mxu1 }
 0x1f5   : > { %v1936_v55 = vpop.f32.mrb[3].mxu1 }
 0x1fa   : > { %v6097_v49 = vpop.f32.mrb[4].mxu1 }
 0x1fb   : > { %v1949_v28 = vpop.f32.mrb[5].mxu1 }
 0x1fc   : > { %v6098_v42 = vpop.f32.mrb[6].mxu1 }
 0x1fd   : > { %v1952_v17 = vpop.f32.mrb[7].mxu1 }
 0x202   : > { %v6101_v24 = vpop.f32.mrb[8].mxu1 }
 0x203   : > { %v1965_v40 = vpop.f32.mrb[9].mxu1 }
 0x204   : > { %v6102_v37 = vpop.f32.mrb[10].mxu1 }
 0x205   : > { %v1968_v21 = vpop.f32.mrb[11].mxu1 }
 0x20a   : > { %v6105_v61 = vpop.f32.mrb[12].mxu1 }
 0x20b   : > { %v1981_v45 = vpop.f32.mrb[13].mxu1 }
 0x20c   : > { %v6106_v34 = vpop.f32.mrb[14].mxu1 }
 0x20d   : > { %v1984_v11 = vpop.f32.mrb[15].mxu1 }
 0x211   : > { %v6333_v48 = vpop.f32.mrb[0].mxu0 }
 0x212   : > { %v6379_v8 = vadd.f32 %v6333_v48, %v6093_v27  ;;  %v4824_v36 = vpop.f32.mrb[1].mxu0 }
 0x213   : > { %v6380_v47 = vadd.f32 %v4824_v36, %v1933_v46  ;;  %v6334_v12 = vpop.f32.mrb[2].mxu0 }
 0x214   : > { %4985 = vst [vmem:[%s8802_s7 + $0x10] sm:$0xff] %v6379_v8  ;;  %v6381_v51 = vadd.f32 %v6334_v12, %v6094_v2  ;;  %v4827_v32 = vpop.f32.mrb[3].mxu0 }
 0x215   : > { %4983 = vst [vmem:[%s8802_s7] sm:$0xff] %v6380_v47  ;;  %v6382_v5 = vadd.f32 %v4827_v32, %v1936_v55 }
 0x216   : > { %4986 = vst [vmem:[%s8802_s7 + $0x18] sm:$0xff] %v6381_v51 }
 0x217   : > { %4984 = vst [vmem:[%s8802_s7 + $0x8] sm:$0xff] %v6382_v5 }
 0x219   : > { %v6337_v62 = vpop.f32.mrb[4].mxu0 }
 0x21a   : > { %v6383_v41 = vadd.f32 %v6337_v62, %v6097_v49  ;;  %v4840_v6 = vpop.f32.mrb[5].mxu0 }
 0x21b   : > { %v6384_v9 = vadd.f32 %v4840_v6, %v1949_v28  ;;  %v6338_v26 = vpop.f32.mrb[6].mxu0 }
 0x21c   : > { %4989 = vst [vmem:[%s8802_s7 + $0x30] sm:$0xff] %v6383_v41  ;;  %v6385_v18 = vadd.f32 %v6338_v26, %v6098_v42  ;;  %v4843_v33 = vpop.f32.mrb[7].mxu0 }
 0x21d   : > { %4987 = vst [vmem:[%s8802_s7 + $0x20] sm:$0xff] %v6384_v9  ;;  %v6386_v14 = vadd.f32 %v4843_v33, %v1952_v17 }
 0x21e   : > { %4990 = vst [vmem:[%s8802_s7 + $0x38] sm:$0xff] %v6385_v18 }
 0x21f   : > { %4988 = vst [vmem:[%s8802_s7 + $0x28] sm:$0xff] %v6386_v14 }
 0x221   : > { %v6341_v10 = vpop.f32.mrb[8].mxu0 }
 0x222   : > { %v6387_v39 = vadd.f32 %v6341_v10, %v6101_v24  ;;  %v4856_v50 = vpop.f32.mrb[9].mxu0 }
 0x223   : > { %v6388_v23 = vadd.f32 %v4856_v50, %v1965_v40  ;;  %v6342_v3 = vpop.f32.mrb[10].mxu0 }
 0x224   : > { %4993 = vst [vmem:[%s8802_s7 + $0x50] sm:$0xff] %v6387_v39  ;;  %v6389_v58 = vadd.f32 %v6342_v3, %v6102_v37  ;;  %v4859_v22 = vpop.f32.mrb[11].mxu0 }
 0x225   : > { %4991 = vst [vmem:[%s8802_s7 + $0x40] sm:$0xff] %v6388_v23  ;;  %v6390_v59 = vadd.f32 %v4859_v22, %v1968_v21 }
 0x226   : > { %4994 = vst [vmem:[%s8802_s7 + $0x58] sm:$0xff] %v6389_v58 }
 0x227   : > { %4992 = vst [vmem:[%s8802_s7 + $0x48] sm:$0xff] %v6390_v59 }
 0x229   : > { %v6345_v30 = vpop.f32.mrb[12].mxu0 }
 0x22a   : > { %v6391_v19 = vadd.f32 %v6345_v30, %v6105_v61  ;;  %v4872_v52 = vpop.f32.mrb[13].mxu0 }
 0x22b   : > { %v6392_v15 = vadd.f32 %v4872_v52, %v1981_v45  ;;  %v6346_v43 = vpop.f32.mrb[14].mxu0 }
 0x22c   : > { %4997 = vst [vmem:[%s8802_s7 + $0x70] sm:$0xff] %v6391_v19  ;;  %v6393_v38 = vadd.f32 %v6346_v43, %v6106_v34  ;;  %v4875_v56 = vpop.f32.mrb[15].mxu0 }
 0x22d   : > { %4995 = vst [vmem:[%s8802_s7 + $0x60] sm:$0xff] %v6392_v15  ;;  %v6394_v1 = vadd.f32 %v4875_v56, %v1984_v11 }
 0x22e   : > { %4998 = vst [vmem:[%s8802_s7 + $0x78] sm:$0xff] %v6393_v38 }
 0x22f   : > { %4996 = vst [vmem:[%s8802_s7 + $0x68] sm:$0xff] %v6394_v1 }
 0x231   : > { %v6349_v31 = vpop.f32.mrb[16].mxu0 }
 0x232   : > { %v6157_v63 = vpop.f32.mrb[16].mxu1  ;;  %v4888_v20 = vpop.f32.mrb[17].mxu0 }
 0x233   : > { %v6395_v29 = vadd.f32 %v6349_v31, %v6157_v63  ;;  %v2751_v44 = vpop.f32.mrb[17].mxu1  ;;  %v6350_v35 = vpop.f32.mrb[18].mxu0 }
 0x234   : > { %v6396_v4 = vadd.f32 %v4888_v20, %v2751_v44  ;;  %v6158_v57 = vpop.f32.mrb[18].mxu1  ;;  %v4891_v53 = vpop.f32.mrb[19].mxu0 }
 0x235   : > { %5001 = vst [vmem:[%s8802_s7 + $0x90] sm:$0xff] %v6395_v29  ;;  %v6397_v7 = vadd.f32 %v6350_v35, %v6158_v57  ;;  %v2754_v25 = vpop.f32.mrb[19].mxu1 }
 0x236   : > { %4999 = vst [vmem:[%s8802_s7 + $0x80] sm:$0xff] %v6396_v4  ;;  %v6398_v16 = vadd.f32 %v4891_v53, %v2754_v25 }
 0x237   : > { %5002 = vst [vmem:[%s8802_s7 + $0x98] sm:$0xff] %v6397_v7 }
 0x238   : > { %5000 = vst [vmem:[%s8802_s7 + $0x88] sm:$0xff] %v6398_v16 }
 0x239   : > { %v6353_v54 = vpop.f32.mrb[20].mxu0 }
 0x23a   : > { %v6161_v13 = vpop.f32.mrb[20].mxu1  ;;  %v4904_v60 = vpop.f32.mrb[21].mxu0 }
 0x23b   : > { %v6399_v0 = vadd.f32 %v6353_v54, %v6161_v13  ;;  %v2767_v27 = vpop.f32.mrb[21].mxu1  ;;  %v6354_v46 = vpop.f32.mrb[22].mxu0 }
 0x23c   : > { %v6400_v2 = vadd.f32 %v4904_v60, %v2767_v27  ;;  %v6162_v55 = vpop.f32.mrb[22].mxu1  ;;  %v4907_v49 = vpop.f32.mrb[23].mxu0 }
 0x23d   : > { %5005 = vst [vmem:[%s8802_s7 + $0xb0] sm:$0xff] %v6399_v0  ;;  %v6401_v28 = vadd.f32 %v6354_v46, %v6162_v55  ;;  %v2770_v42 = vpop.f32.mrb[23].mxu1 }
 0x23e   : > { %5003 = vst [vmem:[%s8802_s7 + $0xa0] sm:$0xff] %v6400_v2  ;;  %v6402_v17 = vadd.f32 %v4907_v49, %v2770_v42 }
 0x23f   : > { %5006 = vst [vmem:[%s8802_s7 + $0xb8] sm:$0xff] %v6401_v28 }
 0x240   : > { %5004 = vst [vmem:[%s8802_s7 + $0xa8] sm:$0xff] %v6402_v17 }
 0x241   : > { %v6357_v24 = vpop.f32.mrb[24].mxu0 }
 0x242   : > { %v6165_v40 = vpop.f32.mrb[24].mxu1  ;;  %v4920_v37 = vpop.f32.mrb[25].mxu0 }
 0x243   : > { %v6403_v21 = vadd.f32 %v6357_v24, %v6165_v40  ;;  %v2783_v61 = vpop.f32.mrb[25].mxu1  ;;  %v6358_v45 = vpop.f32.mrb[26].mxu0 }
 0x244   : > { %v6404_v34 = vadd.f32 %v4920_v37, %v2783_v61  ;;  %v6166_v11 = vpop.f32.mrb[26].mxu1  ;;  %v4923_v48 = vpop.f32.mrb[27].mxu0 }
 0x245   : > { %5009 = vst [vmem:[%s8802_s7 + $0xd0] sm:$0xff] %v6403_v21  ;;  %v6405_v8 = vadd.f32 %v6358_v45, %v6166_v11  ;;  %v2786_v36 = vpop.f32.mrb[27].mxu1 }
 0x246   : > { %5007 = vst [vmem:[%s8802_s7 + $0xc0] sm:$0xff] %v6404_v34  ;;  %v6406_v47 = vadd.f32 %v4923_v48, %v2786_v36 }
 0x247   : > { %5010 = vst [vmem:[%s8802_s7 + $0xd8] sm:$0xff] %v6405_v8 }
 0x248   : > { %5008 = vst [vmem:[%s8802_s7 + $0xc8] sm:$0xff] %v6406_v47 }
 0x249   : > { %v6361_v12 = vpop.f32.mrb[28].mxu0 }
 0x24a   : > { %v6169_v51 = vpop.f32.mrb[28].mxu1  ;;  %v4936_v32 = vpop.f32.mrb[29].mxu0 }
 0x24b   : > { %v6407_v5 = vadd.f32 %v6361_v12, %v6169_v51  ;;  %v2799_v62 = vpop.f32.mrb[29].mxu1  ;;  %v6362_v41 = vpop.f32.mrb[30].mxu0 }
 0x24c   : > { %v6408_v6 = vadd.f32 %v4936_v32, %v2799_v62  ;;  %v6170_v9 = vpop.f32.mrb[30].mxu1  ;;  %v4939_v26 = vpop.f32.mrb[31].mxu0 }
 0x24d   : > { %5013 = vst [vmem:[%s8802_s7 + $0xf0] sm:$0xff] %v6407_v5  ;;  %v6409_v18 = vadd.f32 %v6362_v41, %v6170_v9  ;;  %v2802_v33 = vpop.f32.mrb[31].mxu1 }
 0x24e   : > { %5011 = vst [vmem:[%s8802_s7 + $0xe0] sm:$0xff] %v6408_v6  ;;  %v6410_v14 = vadd.f32 %v4939_v26, %v2802_v33 }
 0x24f   : > { %5014 = vst [vmem:[%s8802_s7 + $0xf8] sm:$0xff] %v6409_v18 }
 0x250   : > { %5012 = vst [vmem:[%s8802_s7 + $0xe8] sm:$0xff] %v6410_v14 }
 0x251   : > { %6896 = shalt.err (!%p6893_p5)
}
 0x252   : > { %s6897_s27 = scalar_lea.hbm %s8838_s20, 4096  ;;  %s6901_s3 = scalar_lea.hbm %s8895_s2, 8192 }
 0x253   : > { %p6898_p6 = scmp.ne.s32.totalorder %s8838_s20, %s6897_s27  ;;  %p6902_p10 = scmp.lt.u32.totalorder %s8838_s20, %s8895_s2 }
 0x254   : > { %p6903_p11 = scmp.lt.u32.totalorder %s6901_s3, %s6897_s27  ;;  %p6905_p13 = scmp.lt.u32.totalorder %s6897_s27, %s8838_s20 }
 0x255   : > { %p6899_p7 = pnand %p6898_p6, %p7021_p4 }
 0x256   : > { %p6904_p12 = por %p6903_p11, %p6902_p10 }
 0x257   : > { %p6900_p9 = pneg %p6899_p7 }
 0x258   : > { %p6906_p0 = por %p6905_p13, %p6904_p12 }
 0x25a   : > { %p6907_p1 = pnand %p6906_p0, %p6900_p9 }
 0x25c   : > { %6910 = shalt.err (!%p6907_p1)
}
 0x25d   : > { %s6964_s29 = smov 128   ;;  %s6965_s6 = smov 8  }
 0x25e   : > { %6636 = dma.vmem_to_hbm [thread:$0]  (%p7021_p4), %s8840_s15, 4096, %s8838_s20, %s8847_s12, %s6964_s29, %s6964_s29, %s6965_s6  }
 0x25f PF: > { %p6642_p2 = scmp.ge.s32.totalorder %s6961_s14, 2  ;;  %s5045_s7 = sand.u32 1, %s6941_s9  }
 0x260   : > { %s5046_s8 = scalar_lea.sflag [#allocation3], %s5045_s7 }
 0x261   : > { %p6639_p3 = pnand %p6642_p2, %p7028_p8 }
 0x263   : > { %6936 = dma.done.wait (!%p6639_p3), %s5046_s8, 4096  }
 0x264   : > { %6938 = vsyncadd (!%p6639_p3), %s5046_s8, 4294963200  ;;  %s15_s14 = sadd.s32 1, %s6961_s14   ;;  %s8964_s9 = smov %s6945_s10 }
 0x265   : > { %p12_p5 = scmp.ge.s32.totalorder %s15_s14, 4   ;;  %s8965_s10 = smov %s6949_s11 }
 0x266   : > { %s8966_s11 = smov %s7034_s22  ;;  %s8967_s12 = smov %s6957_s13 }
 0x267   : > { %s8968_s13 = smov %s8970_s17  ;;  %14 = sbr.rel (!%p12_p5) target bundleno = 4 (0x4), region = 76 }
 0x26e   :  { %5051 = vsyncpa [#allocation3], 1 }
 0x26f   :  { %5053 = vsyncpa [#allocation3 + $0x1], 1 }

</bundles_post_ra>
